<compile_context>
chip_gen: v7x
topology: tpu7x:2x2x1
jax: 0.10.0
libtpu: 0.0.40
codegen_flags: <defaults>
</compile_context>

<pallas_src>
import jax
import jax.numpy as jnp
from jax.experimental import pallas as pl
from jax.experimental.pallas import tpu as pltpu

NEG_INF = -1e30
LANE = 128      # vreg lane width: padding granule for every last dim
SUBLANE = 8     # f32 sublane granule: batch-block granule


# ---------------------------------------------------------------------------
# Kernel
# ---------------------------------------------------------------------------
def decode_kernel(p_ref, q_ref, pm_ref, qm_ref,
                  wsum_ref, wst_ref, wen_ref,
                  wi_ref, wh_ref, bi_ref, bh_ref,
                  wha_ref, whb_ref, whc_ref, bhas_ref,
                  logits1_ref, logits2_ref, haslog_ref):
    Bb, Tp, D = p_ref.shape               # D = padded 2*hidden_size
    mxu_dtype = p_ref.dtype                # bf16 operands for every MXU dot

    p = p_ref[...]                         # [Bb, Tp, D]  bf16
    q = q_ref[...]                         # [Bb, Tq, D]  bf16

    # Raw 0/1 masks -> additive biases, kept 2-D and lane-dense ([Bb, T]).
    pbias = jnp.where(pm_ref[...] > 0.0, 0.0, NEG_INF)    # [Bb, Tp] f32
    qbias = jnp.where(qm_ref[...] > 0.0, 0.0, NEG_INF)    # [Bb, Tq] f32

    def attend(queries, keys, bias):
        """Masked attention with T on the lane axis throughout.

        queries [Bb,K,D] bf16, keys [Bb,T,D] bf16, bias [Bb,T] f32.
        Returns (biased scores [Bb,K,T] f32, context [Bb,K,D] f32).
        Softmax math stays f32 on the VPU/EUP; only MXU operands are bf16.
        """
        s = jnp.einsum('bkd,btd->bkt', queries, keys,
                       preferred_element_type=jnp.float32)
        s = s + bias[:, None, :]                       # lane layouts match
        m = jnp.max(s, axis=-1, keepdims=True)         # one lane (XLU) reduce
        e = jnp.exp(s - m)                             # EUP
        denom = jnp.sum(e, axis=-1, keepdims=True)     # >= exp(0)=1, never 0
        probs = e * pl.reciprocal(denom, approx=True)  # EUP, off the VPU
        ctx = jnp.einsum('bkt,btd->bkd', probs.astype(keys.dtype), keys,
                         preferred_element_type=jnp.float32)
        return s, ctx

    # ---- PointerS summ layers (both heads fused as a K=2 attention) --------
    # The [2,D] weight is expanded once per block (tiny, hoisted) so the
    # scores land directly in the lane-dense [Bb,2,Tq] orientation.
    wsum_b = jnp.broadcast_to(wsum_ref[...][None, :, :], (Bb, 2, D))
    _, q_summ_both = attend(wsum_b, q, qbias)          # [Bb, 2, D] f32
    q_summ = q_summ_both[:, 0, :]                      # [Bb, D]
    q_summ2 = q_summ_both[:, 1, :]                     # [Bb, D]

    # ---- PointerNet: start logits (bilinear p . (W_start q_summ)) ----------
    proj_s = jnp.dot(q_summ.astype(mxu_dtype), wst_ref[...],
                     preferred_element_type=jnp.float32)             # [Bb, D]
    l1, ctx1 = attend(proj_s.astype(mxu_dtype)[:, None, :], p, pbias)
    c = ctx1[:, 0, :]                                  # alpha1-weighted ctx

    # ---- GRU cell: h2 = GRU(input=c, hidden=q_summ) -------------------------
    gi = jnp.dot(c.astype(mxu_dtype), wi_ref[...],
                 preferred_element_type=jnp.float32) + bi_ref[...]   # [Bb,3D]
    gh = jnp.dot(q_summ.astype(mxu_dtype), wh_ref[...],
                 preferred_element_type=jnp.float32) + bh_ref[...]   # [Bb,3D]
    i_r, i_z, i_n = gi[:, :D], gi[:, D:2 * D], gi[:, 2 * D:]
    h_r, h_z, h_n = gh[:, :D], gh[:, D:2 * D], gh[:, 2 * D:]
    r = jax.nn.sigmoid(i_r + h_r)
    z = jax.nn.sigmoid(i_z + h_z)
    n = jnp.tanh(i_n + r * h_n)
    h2 = (1.0 - z) * n + z * q_summ                                   # [Bb, D]

    # ---- PointerNet: end logits ---------------------------------------------
    proj_e = jnp.dot(h2.astype(mxu_dtype), wen_ref[...],
                     preferred_element_type=jnp.float32)              # [Bb, D]
    l2, ctx2 = attend(proj_e.astype(mxu_dtype)[:, None, :], p, pbias)
    p_avg = c + ctx2[:, 0, :]                          # reuse alpha1 context

    # ---- has-answer head: Linear(6H -> 2), concat-free ----------------------
    first_word = p[:, 0, :].astype(jnp.float32)                       # [Bb, D]
    has_log = (jnp.dot(p_avg, wha_ref[...], preferred_element_type=jnp.float32)
               + jnp.dot(first_word, whb_ref[...],
                         preferred_element_type=jnp.float32)
               + jnp.dot(q_summ2, whc_ref[...],
                         preferred_element_type=jnp.float32)
               + bhas_ref[...])                                       # [Bb, 2]

    # Lane-dense, unmasked stores: [Bb, 1, Tp] squeezes to [Bb, Tp] for free.
    logits1_ref[...] = l1[:, 0, :]
    logits2_ref[...] = l2[:, 0, :]
    haslog_ref[...] = has_log


# ---------------------------------------------------------------------------
# Wrapper helpers
# ---------------------------------------------------------------------------
def _round_up(x, m):
    return ((x + m - 1) // m) * m


def _pad_to(x, shape):
    pads = [(0, t - s) for s, t in zip(x.shape, shape)]
    if all(lo == 0 and hi == 0 for lo, hi in pads):
        return x
    return jnp.pad(x, pads)


def _pad_gru(w, b, D, Dp):
    """Pad each (r|z|n) gate chunk of a GRU weight/bias pair from D to Dp."""
    w_chunks = [_pad_to(w[:, i * D:(i + 1) * D], (Dp, Dp)) for i in range(3)]
    b_chunks = [_pad_to(b[:, i * D:(i + 1) * D], (1, Dp)) for i in range(3)]
    return jnp.concatenate(w_chunks, axis=1), jnp.concatenate(b_chunks, axis=1)


def _weight_spec(shape, single_buffer=True):
    """Constant-weight BlockSpec; single-buffered when the API allows it."""
    index_map = lambda b: (0,) * len(shape)
    if single_buffer:
        try:
            return pl.BlockSpec(shape, index_map, pipeline_mode=pl.Buffered(1))
        except (TypeError, AttributeError):
            pass   # older JAX without pipeline_mode: default double-buffering
    return pl.BlockSpec(shape, index_map)


def _vmem_capacity_bytes():
    """Physical VMEM per core (64 MiB on v7x, 128 MiB on v5e/v6e)."""
    try:
        info = pltpu.get_tpu_info()
        cap = int(getattr(info, "vmem_capacity_bytes", 0))
        if cap > 0:
            return cap
    except Exception:
        pass
    return 128 * 1024 * 1024


# ---------------------------------------------------------------------------
# Public entry point (QAxl.decode equivalent)
# ---------------------------------------------------------------------------
@jax.jit
def qaxl_decode(p_states, q_states, p_mask, q_mask, params):
    """Pallas version of QAxl.decode.

    p_states: [B, Tp, 2H] full_p_states     p_mask: [B, Tp] (1 = valid token)
    q_states: [B, Tq, 2H] full_q_states     q_mask: [B, Tq]
    returns (logits1 [B, Tp], logits2 [B, Tp], has_log [B, 2])
    """
    B, Tp, D = p_states.shape
    Tq = q_states.shape[1]

    # ---- generation-aware VMEM budget --------------------------------------
    vmem_cap = _vmem_capacity_bytes()
    vmem_limit = int(min(vmem_cap * 3 // 4, 96 * 1024 * 1024))

    # ---- lane-friendly padding (feature & time -> multiples of 128) --------
    Dp = _round_up(D, LANE)
    Tpp = _round_up(Tp, LANE)
    Tqp = _round_up(Tq, LANE)
    Bp = _round_up(B, SUBLANE)

    # Batch block: multiple of 8, capped by the VMEM generation, and kept
    # small enough that the grid has >= 2 blocks (feeds both v7x TensorCores).
    cap = 32 if vmem_cap >= 96 * 1024 * 1024 else 16
    if Bp >= 2 * SUBLANE:
        cap = min(cap, Bp // 2)
    block_b = SUBLANE
    for cand in range(SUBLANE, cap + 1, SUBLANE):
        if Bp % cand == 0:
            block_b = cand
    grid = (Bp // block_b,)

    mxu_dtype = jnp.bfloat16     # MXU operand dtype (accumulation stays f32)

    # ---- pad + cast activations (zero feature/time pad, zero mask pad) -----
    p_pad = _pad_to(p_states, (Bp, Tpp, Dp)).astype(mxu_dtype)
    q_pad = _pad_to(q_states, (Bp, Tqp, Dp)).astype(mxu_dtype)
    pm_pad = _pad_to(p_mask.astype(jnp.float32), (Bp, Tpp))
    qm_pad = _pad_to(q_mask.astype(jnp.float32), (Bp, Tqp))

    # ---- pad weights (per-gate for the GRU so slices stay at Dp bounds) ----
    w_summ = _pad_to(
        jnp.concatenate([params["w_summ1"], params["w_summ2"]], axis=0),
        (2, Dp)).astype(mxu_dtype)
    w_start = _pad_to(params["w_start_t"], (Dp, Dp)).astype(mxu_dtype)
    w_end = _pad_to(params["w_end_t"], (Dp, Dp)).astype(mxu_dtype)
    gru_wi, gru_bi = _pad_gru(params["gru_wi"], params["gru_bi"], D, Dp)
    gru_wh, gru_bh = _pad_gru(params["gru_wh"], params["gru_bh"], D, Dp)
    gru_wi = gru_wi.astype(mxu_dtype)
    gru_wh = gru_wh.astype(mxu_dtype)
    w_has = params["w_has"]
    w_has_a = _pad_to(w_has[:D], (Dp, 2))          # p_avg slab     (f32)
    w_has_b = _pad_to(w_has[D:2 * D], (Dp, 2))     # first_word slab
    w_has_c = _pad_to(w_has[2 * D:], (Dp, 2))      # q_summ2 slab

    def seq3_spec(t):
        return pl.BlockSpec((block_b, t, Dp), lambda b: (b, 0, 0))

    def seq2_spec(t):
        return pl.BlockSpec((block_b, t), lambda b: (b, 0))

    in_specs = [
        seq3_spec(Tpp), seq3_spec(Tqp),            # p, q states (bf16)
        seq2_spec(Tpp), seq2_spec(Tqp),            # masks (2-D, lane-dense)
        _weight_spec((2, Dp)),
        _weight_spec((Dp, Dp)), _weight_spec((Dp, Dp)),
        _weight_spec((Dp, 3 * Dp)), _weight_spec((Dp, 3 * Dp)),
        _weight_spec((1, 3 * Dp)), _weight_spec((1, 3 * Dp)),
        _weight_spec((Dp, 2)), _weight_spec((Dp, 2)), _weight_spec((Dp, 2)),
        _weight_spec((1, 2)),
    ]
    out_specs = [
        seq2_spec(Tpp), seq2_spec(Tpp),
        pl.BlockSpec((block_b, 2), lambda b: (b, 0)),
    ]
    out_shape = (
        jax.ShapeDtypeStruct((Bp, Tpp), jnp.float32),
        jax.ShapeDtypeStruct((Bp, Tpp), jnp.float32),
        jax.ShapeDtypeStruct((Bp, 2), jnp.float32),
    )

    logits1, logits2, has_log = pl.pallas_call(
        decode_kernel,
        out_shape=out_shape,
        grid_spec=pltpu.PrefetchScalarGridSpec(
            num_scalar_prefetch=0,
            grid=grid,
            in_specs=in_specs,
            out_specs=out_specs,
        ),
        compiler_params=pltpu.CompilerParams(
            dimension_semantics=("parallel",),
            vmem_limit_bytes=vmem_limit,
        ),
    )(p_pad, q_pad, pm_pad, qm_pad,
      w_summ, w_start, w_end,
      gru_wi, gru_wh, gru_bi, gru_bh,
      w_has_a, w_has_b, w_has_c, params["b_has"])

    # Strip batch / time padding.
    return logits1[:B, :Tp], logits2[:B, :Tp], has_log[:B]


# ---------------------------------------------------------------------------
# Pure-JAX reference (exact f32 semantics, for verification)
# ---------------------------------------------------------------------------
def qaxl_decode_ref(p_states, q_states, p_mask, q_mask, params):
    H2 = p_states.shape[-1]
    p_bias = jnp.where(p_mask > 0, 0.0, NEG_INF)[..., None]
    q_bias = jnp.where(q_mask > 0, 0.0, NEG_INF)[..., None]

    def sm(s):
        m = jnp.max(s, axis=0, keepdims=True)
        e = jnp.exp(s - m)
        return e / jnp.sum(e, axis=0, keepdims=True)

    def one(p, q, pb, qb):
        s1 = jnp.sum(q * params["w_summ1"], axis=1, keepdims=True) + qb
        a1 = sm(s1)
        q_summ = jnp.sum(a1 * q, axis=0, keepdims=True)
        proj_s = q_summ @ params["w_start_t"]
        logits1 = jnp.sum(p * proj_s, axis=1, keepdims=True) + pb
        alpha1 = sm(logits1)
        c = jnp.sum(alpha1 * p, axis=0, keepdims=True)
        gi = c @ params["gru_wi"] + params["gru_bi"]
        gh = q_summ @ params["gru_wh"] + params["gru_bh"]
        i_r, i_z, i_n = gi[:, :H2], gi[:, H2:2 * H2], gi[:, 2 * H2:]
        h_r, h_z, h_n = gh[:, :H2], gh[:, H2:2 * H2], gh[:, 2 * H2:]
        r = jax.nn.sigmoid(i_r + h_r)
        z = jax.nn.sigmoid(i_z + h_z)
        n = jnp.tanh(i_n + r * h_n)
        h2 = (1.0 - z) * n + z * q_summ
        proj_e = h2 @ params["w_end_t"]
        logits2 = jnp.sum(p * proj_e, axis=1, keepdims=True) + pb
        alpha2 = sm(logits2)
        p_avg = (jnp.sum(alpha1 * p, axis=0, keepdims=True)
                 + jnp.sum(alpha2 * p, axis=0, keepdims=True))
        s2 = jnp.sum(q * params["w_summ2"], axis=1, keepdims=True) + qb
        a2 = sm(s2)
        q_summ2 = jnp.sum(a2 * q, axis=0, keepdims=True)
        has_inp = jnp.concatenate([p_avg, p[0:1, :], q_summ2], axis=1)
        has_log = has_inp @ params["w_has"] + params["b_has"]
        return logits1[:, 0], logits2[:, 0], has_log[0]

    return jax.vmap(one)(p_states, q_states, p_bias, q_bias)


def make_params(key, hidden_size):
    H2 = 2 * hidden_size
    ks = jax.random.split(key, 10)
    scale = 0.1
    return {
        "w_summ1": scale * jax.random.normal(ks[0], (1, H2), jnp.float32),
        "w_summ2": scale * jax.random.normal(ks[1], (1, H2), jnp.float32),
        "w_start_t": scale * jax.random.normal(ks[2], (H2, H2), jnp.float32),
        "w_end_t": scale * jax.random.normal(ks[3], (H2, H2), jnp.float32),
        "gru_wi": scale * jax.random.normal(ks[4], (H2, 3 * H2), jnp.float32),
        "gru_wh": scale * jax.random.normal(ks[5], (H2, 3 * H2), jnp.float32),
        "gru_bi": scale * jax.random.normal(ks[6], (1, 3 * H2), jnp.float32),
        "gru_bh": scale * jax.random.normal(ks[7], (1, 3 * H2), jnp.float32),
        "w_has": scale * jax.random.normal(ks[8], (3 * H2, 2), jnp.float32),
        "b_has": scale * jax.random.normal(ks[9], (1, 2), jnp.float32),
    }


if __name__ == "__main__":
    hidden_size = 16           # => 2H = 32 feature dim of full_*_states
    B, Tp, Tq = 16, 16, 8      # wrapper pads to B=16, Tp=Tq=128, D=128

    key = jax.random.PRNGKey(0)
    k_p, k_q, k_w = jax.random.split(key, 3)

    full_p_states = jax.random.normal(k_p, (B, Tp, 2 * hidden_size), jnp.float32)
    full_q_states = jax.random.normal(k_q, (B, Tq, 2 * hidden_size), jnp.float32)

    # 1.0 = valid token, 0.0 = padding (token 0 always valid, no empty rows).
    p_lens = Tp - (jnp.arange(B) % 5)
    q_lens = Tq - (jnp.arange(B) % 4)
    p_mask = (jnp.arange(Tp)[None, :] < p_lens[:, None]).astype(jnp.float32)
    q_mask = (jnp.arange(Tq)[None, :] < q_lens[:, None]).astype(jnp.float32)

    params = make_params(k_w, hidden_size)

    logits1, logits2, has_log = qaxl_decode(
        full_p_states, full_q_states, p_mask, q_mask, params)
    jax.block_until_ready((logits1, logits2, has_log))

    # Verify against the exact f32 reference.  The kernel feeds bf16 operands
    # to the MXU and uses the approximate EUP reciprocal in the softmax, so
    # the tolerance is wider than a pure-f32 comparison would need.
    r1, r2, rh = qaxl_decode_ref(
        full_p_states, full_q_states, p_mask, q_mask, params)
    assert jnp.allclose(logits1, r1, atol=1e-1, rtol=1e-1), \
        float(jnp.max(jnp.abs(logits1 - r1)))
    assert jnp.allclose(logits2, r2, atol=1e-1, rtol=1e-1), \
        float(jnp.max(jnp.abs(logits2 - r2)))
    assert jnp.allclose(has_log, rh, atol=1e-1, rtol=1e-1), \
        float(jnp.max(jnp.abs(has_log - rh)))

    print("KERNEL_OK")
</pallas_src>

<mosaic_0001>
module attributes {stable_mosaic.version = 11 : i64} {
  func.func @decode_kernel(%arg0: i32, %arg1: memref<8x128x128xbf16, #tpu.memory_space<vmem>>, %arg2: memref<8x128x128xbf16, #tpu.memory_space<vmem>>, %arg3: memref<8x128xf32, #tpu.memory_space<vmem>>, %arg4: memref<8x128xf32, #tpu.memory_space<vmem>>, %arg5: memref<2x128xbf16, #tpu.memory_space<vmem>>, %arg6: memref<128x128xbf16, #tpu.memory_space<vmem>>, %arg7: memref<128x128xbf16, #tpu.memory_space<vmem>>, %arg8: memref<128x384xbf16, #tpu.memory_space<vmem>>, %arg9: memref<128x384xbf16, #tpu.memory_space<vmem>>, %arg10: memref<1x384xf32, #tpu.memory_space<vmem>>, %arg11: memref<1x384xf32, #tpu.memory_space<vmem>>, %arg12: memref<128x2xf32, #tpu.memory_space<vmem>>, %arg13: memref<128x2xf32, #tpu.memory_space<vmem>>, %arg14: memref<128x2xf32, #tpu.memory_space<vmem>>, %arg15: memref<1x2xf32, #tpu.memory_space<vmem>>, %arg16: memref<8x128xf32, #tpu.memory_space<vmem>>, %arg17: memref<8x128xf32, #tpu.memory_space<vmem>>, %arg18: memref<8x2xf32, #tpu.memory_space<vmem>>) attributes {dimension_semantics = [#tpu.dimension_semantics<parallel>], iteration_bounds = array<i64: 2>, scalar_prefetch = 0 : i64, scratch_operands = 0 : i64, tpu.core_type = #tpu.core_type<tc>, window_params = [{transform_indices = @transform_0, window_bounds = array<i64: 8, 128, 128>}, {transform_indices = @transform_1, window_bounds = array<i64: 8, 128, 128>}, {transform_indices = @transform_2, window_bounds = array<i64: 8, 128>}, {transform_indices = @transform_3, window_bounds = array<i64: 8, 128>}, {pipeline_mode = #tpu.pipeline_mode<synchronous>, transform_indices = @transform_4, window_bounds = array<i64: 2, 128>}, {pipeline_mode = #tpu.pipeline_mode<synchronous>, transform_indices = @transform_5, window_bounds = array<i64: 128, 128>}, {pipeline_mode = #tpu.pipeline_mode<synchronous>, transform_indices = @transform_6, window_bounds = array<i64: 128, 128>}, {pipeline_mode = #tpu.pipeline_mode<synchronous>, transform_indices = @transform_7, window_bounds = array<i64: 128, 384>}, {pipeline_mode = #tpu.pipeline_mode<synchronous>, transform_indices = @transform_8, window_bounds = array<i64: 128, 384>}, {pipeline_mode = #tpu.pipeline_mode<synchronous>, transform_indices = @transform_9, window_bounds = array<i64: 1, 384>}, {pipeline_mode = #tpu.pipeline_mode<synchronous>, transform_indices = @transform_10, window_bounds = array<i64: 1, 384>}, {pipeline_mode = #tpu.pipeline_mode<synchronous>, transform_indices = @transform_11, window_bounds = array<i64: 128, 2>}, {pipeline_mode = #tpu.pipeline_mode<synchronous>, transform_indices = @transform_12, window_bounds = array<i64: 128, 2>}, {pipeline_mode = #tpu.pipeline_mode<synchronous>, transform_indices = @transform_13, window_bounds = array<i64: 128, 2>}, {pipeline_mode = #tpu.pipeline_mode<synchronous>, transform_indices = @transform_14, window_bounds = array<i64: 1, 2>}, {transform_indices = @transform_15, window_bounds = array<i64: 8, 128>}, {transform_indices = @transform_16, window_bounds = array<i64: 8, 128>}, {transform_indices = @transform_17, window_bounds = array<i64: 8, 2>}]} {
    %c0 = arith.constant 0 : index
    %c0_0 = arith.constant 0 : index
    %c0_1 = arith.constant 0 : index
    %0 = vector.load %arg1[%c0, %c0_0, %c0_1] : memref<8x128x128xbf16, #tpu.memory_space<vmem>>, vector<8x128x128xbf16>
    %c0_2 = arith.constant 0 : index
    %c0_3 = arith.constant 0 : index
    %c0_4 = arith.constant 0 : index
    %1 = vector.load %arg2[%c0_2, %c0_3, %c0_4] : memref<8x128x128xbf16, #tpu.memory_space<vmem>>, vector<8x128x128xbf16>
    %c0_5 = arith.constant 0 : index
    %c0_6 = arith.constant 0 : index
    %2 = vector.load %arg3[%c0_5, %c0_6] : memref<8x128xf32, #tpu.memory_space<vmem>>, vector<8x128xf32>
    %cst = arith.constant 0.000000e+00 : f32
    %3 = vector.broadcast %cst : f32 to vector<8x128xf32>
    %4 = arith.cmpf ogt, %2, %3 : vector<8x128xf32>
    %cst_7 = arith.constant 0.000000e+00 : f32
    %cst_8 = arith.constant -1.000000e+30 : f32
    %5 = vector.broadcast %cst_7 : f32 to vector<8x128xf32>
    %6 = vector.broadcast %cst_8 : f32 to vector<8x128xf32>
    %7 = arith.select %4, %5, %6 : vector<8x128xi1>, vector<8x128xf32>
    %c0_9 = arith.constant 0 : index
    %c0_10 = arith.constant 0 : index
    %8 = vector.load %arg4[%c0_9, %c0_10] : memref<8x128xf32, #tpu.memory_space<vmem>>, vector<8x128xf32>
    %cst_11 = arith.constant 0.000000e+00 : f32
    %9 = vector.broadcast %cst_11 : f32 to vector<8x128xf32>
    %10 = arith.cmpf ogt, %8, %9 : vector<8x128xf32>
    %cst_12 = arith.constant 0.000000e+00 : f32
    %cst_13 = arith.constant -1.000000e+30 : f32
    %11 = vector.broadcast %cst_12 : f32 to vector<8x128xf32>
    %12 = vector.broadcast %cst_13 : f32 to vector<8x128xf32>
    %13 = arith.select %10, %11, %12 : vector<8x128xi1>, vector<8x128xf32>
    %c0_14 = arith.constant 0 : index
    %c0_15 = arith.constant 0 : index
    %14 = vector.load %arg5[%c0_14, %c0_15] : memref<2x128xbf16, #tpu.memory_space<vmem>>, vector<2x128xbf16>
    %15 = vector.shape_cast %14 : vector<2x128xbf16> to vector<1x2x128xbf16>
    %16 = vector.shape_cast %15 : vector<1x2x128xbf16> to vector<1x2x128xbf16>
    %17 = vector.broadcast %16 : vector<1x2x128xbf16> to vector<8x2x128xbf16>
    "tpu.trace_start"() <{level = 10 : i32, message = "bkd,btd->bkt"}> : () -> ()
    %cst_16 = arith.constant dense<0.000000e+00> : vector<8x2x128xf32>
    %18 = tpu.matmul %17, %1, %cst_16 {dimension_numbers = #tpu.dot_dimension_numbers<[2], [2], [1], [1], [0, 0, 0, 1, 1, 1], [0], [0]>} : vector<8x2x128xbf16>, vector<8x128x128xbf16>, vector<8x2x128xf32> -> vector<8x2x128xf32>
    "tpu.trace_stop"() : () -> ()
    %19 = vector.shape_cast %13 : vector<8x128xf32> to vector<8x1x128xf32>
    %20 = vector.broadcast %19 : vector<8x1x128xf32> to vector<8x2x128xf32>
    %21 = arith.addf %18, %20 : vector<8x2x128xf32>
    %cst_17 = arith.constant dense<0xFF800000> : vector<8x2xf32>
    %22 = vector.multi_reduction <maximumf>, %21, %cst_17 [2] : vector<8x2x128xf32> to vector<8x2xf32>
    %23 = vector.shape_cast %22 : vector<8x2xf32> to vector<8x2x1xf32>
    %24 = vector.broadcast %23 : vector<8x2x1xf32> to vector<8x2x128xf32>
    %25 = arith.subf %21, %24 : vector<8x2x128xf32>
    %26 = math.exp %25 : vector<8x2x128xf32>
    %cst_18 = arith.constant dense<0.000000e+00> : vector<8x2xf32>
    %27 = vector.multi_reduction <add>, %26, %cst_18 [2] : vector<8x2x128xf32> to vector<8x2xf32>
    %28 = vector.shape_cast %27 : vector<8x2xf32> to vector<8x2x1xf32>
    %29 = tpu.reciprocal %28 {approx = true} : vector<8x2x1xf32> -> vector<8x2x1xf32>
    %30 = vector.broadcast %29 : vector<8x2x1xf32> to vector<8x2x128xf32>
    %31 = arith.mulf %26, %30 : vector<8x2x128xf32>
    %32 = arith.truncf %31 : vector<8x2x128xf32> to vector<8x2x128xbf16>
    "tpu.trace_start"() <{level = 10 : i32, message = "bkt,btd->bkd"}> : () -> ()
    %cst_19 = arith.constant dense<0.000000e+00> : vector<8x2x128xf32>
    %33 = tpu.matmul %32, %1, %cst_19 {dimension_numbers = #tpu.dot_dimension_numbers<[2], [1], [1], [2], [0, 0, 0, 1, 1, 2], [0], [0]>} : vector<8x2x128xbf16>, vector<8x128x128xbf16>, vector<8x2x128xf32> -> vector<8x2x128xf32>
    "tpu.trace_stop"() : () -> ()
    %34 = vector.extract_strided_slice %33 {offsets = [0, 0, 0], sizes = [8, 1, 128], strides = [1, 1, 1]} : vector<8x2x128xf32> to vector<8x1x128xf32>
    %35 = vector.shape_cast %34 : vector<8x1x128xf32> to vector<8x128xf32>
    %36 = vector.extract_strided_slice %33 {offsets = [0, 1, 0], sizes = [8, 1, 128], strides = [1, 1, 1]} : vector<8x2x128xf32> to vector<8x1x128xf32>
    %37 = vector.shape_cast %36 : vector<8x1x128xf32> to vector<8x128xf32>
    %38 = arith.truncf %35 : vector<8x128xf32> to vector<8x128xbf16>
    %c0_20 = arith.constant 0 : index
    %c0_21 = arith.constant 0 : index
    %39 = vector.load %arg6[%c0_20, %c0_21] : memref<128x128xbf16, #tpu.memory_space<vmem>>, vector<128x128xbf16>
    %cst_22 = arith.constant dense<0.000000e+00> : vector<8x128xf32>
    %40 = tpu.matmul %38, %39, %cst_22 {dimension_numbers = #tpu.dot_dimension_numbers<[1], [0], [0], [1], [0, 0, 1, 1], [], []>} : vector<8x128xbf16>, vector<128x128xbf16>, vector<8x128xf32> -> vector<8x128xf32>
    %41 = arith.truncf %40 : vector<8x128xf32> to vector<8x128xbf16>
    %42 = vector.shape_cast %41 : vector<8x128xbf16> to vector<8x1x128xbf16>
    "tpu.trace_start"() <{level = 10 : i32, message = "bkd,btd->bkt"}> : () -> ()
    %cst_23 = arith.constant dense<0.000000e+00> : vector<8x1x128xf32>
    %43 = tpu.matmul %42, %0, %cst_23 {dimension_numbers = #tpu.dot_dimension_numbers<[2], [2], [1], [1], [0, 0, 0, 1, 1, 1], [0], [0]>} : vector<8x1x128xbf16>, vector<8x128x128xbf16>, vector<8x1x128xf32> -> vector<8x1x128xf32>
    "tpu.trace_stop"() : () -> ()
    %44 = vector.shape_cast %7 : vector<8x128xf32> to vector<8x1x128xf32>
    %45 = arith.addf %43, %44 : vector<8x1x128xf32>
    %cst_24 = arith.constant dense<0xFF800000> : vector<8x1xf32>
    %46 = vector.multi_reduction <maximumf>, %45, %cst_24 [2] : vector<8x1x128xf32> to vector<8x1xf32>
    %47 = vector.shape_cast %46 : vector<8x1xf32> to vector<8x1x1xf32>
    %48 = vector.broadcast %47 : vector<8x1x1xf32> to vector<8x1x128xf32>
    %49 = arith.subf %45, %48 : vector<8x1x128xf32>
    %50 = math.exp %49 : vector<8x1x128xf32>
    %cst_25 = arith.constant dense<0.000000e+00> : vector<8x1xf32>
    %51 = vector.multi_reduction <add>, %50, %cst_25 [2] : vector<8x1x128xf32> to vector<8x1xf32>
    %52 = vector.shape_cast %51 : vector<8x1xf32> to vector<8x1x1xf32>
    %53 = tpu.reciprocal %52 {approx = true} : vector<8x1x1xf32> -> vector<8x1x1xf32>
    %54 = vector.broadcast %53 : vector<8x1x1xf32> to vector<8x1x128xf32>
    %55 = arith.mulf %50, %54 : vector<8x1x128xf32>
    %56 = arith.truncf %55 : vector<8x1x128xf32> to vector<8x1x128xbf16>
    "tpu.trace_start"() <{level = 10 : i32, message = "bkt,btd->bkd"}> : () -> ()
    %cst_26 = arith.constant dense<0.000000e+00> : vector<8x1x128xf32>
    %57 = tpu.matmul %56, %0, %cst_26 {dimension_numbers = #tpu.dot_dimension_numbers<[2], [1], [1], [2], [0, 0, 0, 1, 1, 2], [0], [0]>} : vector<8x1x128xbf16>, vector<8x128x128xbf16>, vector<8x1x128xf32> -> vector<8x1x128xf32>
    "tpu.trace_stop"() : () -> ()
    %58 = vector.shape_cast %57 : vector<8x1x128xf32> to vector<8x128xf32>
    %59 = arith.truncf %58 : vector<8x128xf32> to vector<8x128xbf16>
    %c0_27 = arith.constant 0 : index
    %c0_28 = arith.constant 0 : index
    %60 = vector.load %arg8[%c0_27, %c0_28] : memref<128x384xbf16, #tpu.memory_space<vmem>>, vector<128x384xbf16>
    %cst_29 = arith.constant dense<0.000000e+00> : vector<8x384xf32>
    %61 = tpu.matmul %59, %60, %cst_29 {dimension_numbers = #tpu.dot_dimension_numbers<[1], [0], [0], [1], [0, 0, 1, 1], [], []>} : vector<8x128xbf16>, vector<128x384xbf16>, vector<8x384xf32> -> vector<8x384xf32>
    %c0_30 = arith.constant 0 : index
    %c0_31 = arith.constant 0 : index
    %62 = vector.load %arg10[%c0_30, %c0_31] : memref<1x384xf32, #tpu.memory_space<vmem>>, vector<1x384xf32>
    %63 = vector.broadcast %62 : vector<1x384xf32> to vector<8x384xf32>
    %64 = arith.addf %61, %63 : vector<8x384xf32>
    %65 = arith.truncf %35 : vector<8x128xf32> to vector<8x128xbf16>
    %c0_32 = arith.constant 0 : index
    %c0_33 = arith.constant 0 : index
    %66 = vector.load %arg9[%c0_32, %c0_33] : memref<128x384xbf16, #tpu.memory_space<vmem>>, vector<128x384xbf16>
    %cst_34 = arith.constant dense<0.000000e+00> : vector<8x384xf32>
    %67 = tpu.matmul %65, %66, %cst_34 {dimension_numbers = #tpu.dot_dimension_numbers<[1], [0], [0], [1], [0, 0, 1, 1], [], []>} : vector<8x128xbf16>, vector<128x384xbf16>, vector<8x384xf32> -> vector<8x384xf32>
    %c0_35 = arith.constant 0 : index
    %c0_36 = arith.constant 0 : index
    %68 = vector.load %arg11[%c0_35, %c0_36] : memref<1x384xf32, #tpu.memory_space<vmem>>, vector<1x384xf32>
    %69 = vector.broadcast %68 : vector<1x384xf32> to vector<8x384xf32>
    %70 = arith.addf %67, %69 : vector<8x384xf32>
    %71 = vector.extract_strided_slice %64 {offsets = [0, 0], sizes = [8, 128], strides = [1, 1]} : vector<8x384xf32> to vector<8x128xf32>
    %72 = vector.extract_strided_slice %64 {offsets = [0, 128], sizes = [8, 128], strides = [1, 1]} : vector<8x384xf32> to vector<8x128xf32>
    %73 = vector.extract_strided_slice %64 {offsets = [0, 256], sizes = [8, 128], strides = [1, 1]} : vector<8x384xf32> to vector<8x128xf32>
    %74 = vector.extract_strided_slice %70 {offsets = [0, 0], sizes = [8, 128], strides = [1, 1]} : vector<8x384xf32> to vector<8x128xf32>
    %75 = vector.extract_strided_slice %70 {offsets = [0, 128], sizes = [8, 128], strides = [1, 1]} : vector<8x384xf32> to vector<8x128xf32>
    %76 = vector.extract_strided_slice %70 {offsets = [0, 256], sizes = [8, 128], strides = [1, 1]} : vector<8x384xf32> to vector<8x128xf32>
    %77 = arith.addf %71, %74 : vector<8x128xf32>
    %78 = arith.negf %77 : vector<8x128xf32>
    %79 = math.exp %78 : vector<8x128xf32>
    %cst_37 = arith.constant 1.000000e+00 : f32
    %80 = vector.broadcast %cst_37 : f32 to vector<8x128xf32>
    %81 = arith.addf %80, %79 : vector<8x128xf32>
    %82 = arith.divf %80, %81 : vector<8x128xf32>
    %83 = arith.addf %72, %75 : vector<8x128xf32>
    %84 = arith.negf %83 : vector<8x128xf32>
    %85 = math.exp %84 : vector<8x128xf32>
    %cst_38 = arith.constant 1.000000e+00 : f32
    %86 = vector.broadcast %cst_38 : f32 to vector<8x128xf32>
    %87 = arith.addf %86, %85 : vector<8x128xf32>
    %88 = arith.divf %86, %87 : vector<8x128xf32>
    %89 = arith.mulf %82, %76 : vector<8x128xf32>
    %90 = arith.addf %73, %89 : vector<8x128xf32>
    %91 = math.tanh %90 : vector<8x128xf32>
    %cst_39 = arith.constant 1.000000e+00 : f32
    %92 = vector.broadcast %cst_39 : f32 to vector<8x128xf32>
    %93 = arith.subf %92, %88 : vector<8x128xf32>
    %94 = arith.mulf %93, %91 : vector<8x128xf32>
    %95 = arith.mulf %88, %35 : vector<8x128xf32>
    %96 = arith.addf %94, %95 : vector<8x128xf32>
    %97 = arith.truncf %96 : vector<8x128xf32> to vector<8x128xbf16>
    %c0_40 = arith.constant 0 : index
    %c0_41 = arith.constant 0 : index
    %98 = vector.load %arg7[%c0_40, %c0_41] : memref<128x128xbf16, #tpu.memory_space<vmem>>, vector<128x128xbf16>
    %cst_42 = arith.constant dense<0.000000e+00> : vector<8x128xf32>
    %99 = tpu.matmul %97, %98, %cst_42 {dimension_numbers = #tpu.dot_dimension_numbers<[1], [0], [0], [1], [0, 0, 1, 1], [], []>} : vector<8x128xbf16>, vector<128x128xbf16>, vector<8x128xf32> -> vector<8x128xf32>
    %100 = arith.truncf %99 : vector<8x128xf32> to vector<8x128xbf16>
    %101 = vector.shape_cast %100 : vector<8x128xbf16> to vector<8x1x128xbf16>
    "tpu.trace_start"() <{level = 10 : i32, message = "bkd,btd->bkt"}> : () -> ()
    %cst_43 = arith.constant dense<0.000000e+00> : vector<8x1x128xf32>
    %102 = tpu.matmul %101, %0, %cst_43 {dimension_numbers = #tpu.dot_dimension_numbers<[2], [2], [1], [1], [0, 0, 0, 1, 1, 1], [0], [0]>} : vector<8x1x128xbf16>, vector<8x128x128xbf16>, vector<8x1x128xf32> -> vector<8x1x128xf32>
    "tpu.trace_stop"() : () -> ()
    %103 = vector.shape_cast %7 : vector<8x128xf32> to vector<8x1x128xf32>
    %104 = arith.addf %102, %103 : vector<8x1x128xf32>
    %cst_44 = arith.constant dense<0xFF800000> : vector<8x1xf32>
    %105 = vector.multi_reduction <maximumf>, %104, %cst_44 [2] : vector<8x1x128xf32> to vector<8x1xf32>
    %106 = vector.shape_cast %105 : vector<8x1xf32> to vector<8x1x1xf32>
    %107 = vector.broadcast %106 : vector<8x1x1xf32> to vector<8x1x128xf32>
    %108 = arith.subf %104, %107 : vector<8x1x128xf32>
    %109 = math.exp %108 : vector<8x1x128xf32>
    %cst_45 = arith.constant dense<0.000000e+00> : vector<8x1xf32>
    %110 = vector.multi_reduction <add>, %109, %cst_45 [2] : vector<8x1x128xf32> to vector<8x1xf32>
    %111 = vector.shape_cast %110 : vector<8x1xf32> to vector<8x1x1xf32>
    %112 = tpu.reciprocal %111 {approx = true} : vector<8x1x1xf32> -> vector<8x1x1xf32>
    %113 = vector.broadcast %112 : vector<8x1x1xf32> to vector<8x1x128xf32>
    %114 = arith.mulf %109, %113 : vector<8x1x128xf32>
    %115 = arith.truncf %114 : vector<8x1x128xf32> to vector<8x1x128xbf16>
    "tpu.trace_start"() <{level = 10 : i32, message = "bkt,btd->bkd"}> : () -> ()
    %cst_46 = arith.constant dense<0.000000e+00> : vector<8x1x128xf32>
    %116 = tpu.matmul %115, %0, %cst_46 {dimension_numbers = #tpu.dot_dimension_numbers<[2], [1], [1], [2], [0, 0, 0, 1, 1, 2], [0], [0]>} : vector<8x1x128xbf16>, vector<8x128x128xbf16>, vector<8x1x128xf32> -> vector<8x1x128xf32>
    "tpu.trace_stop"() : () -> ()
    %117 = vector.shape_cast %116 : vector<8x1x128xf32> to vector<8x128xf32>
    %118 = arith.addf %58, %117 : vector<8x128xf32>
    %119 = vector.extract_strided_slice %0 {offsets = [0, 0, 0], sizes = [8, 1, 128], strides = [1, 1, 1]} : vector<8x128x128xbf16> to vector<8x1x128xbf16>
    %120 = vector.shape_cast %119 : vector<8x1x128xbf16> to vector<8x128xbf16>
    %121 = arith.extf %120 : vector<8x128xbf16> to vector<8x128xf32>
    %c0_47 = arith.constant 0 : index
    %c0_48 = arith.constant 0 : index
    %122 = vector.load %arg12[%c0_47, %c0_48] : memref<128x2xf32, #tpu.memory_space<vmem>>, vector<128x2xf32>
    %cst_49 = arith.constant dense<0.000000e+00> : vector<8x2xf32>
    %123 = tpu.matmul %118, %122, %cst_49 {dimension_numbers = #tpu.dot_dimension_numbers<[1], [0], [0], [1], [0, 0, 1, 1], [], []>} : vector<8x128xf32>, vector<128x2xf32>, vector<8x2xf32> -> vector<8x2xf32>
    %c0_50 = arith.constant 0 : index
    %c0_51 = arith.constant 0 : index
    %124 = vector.load %arg13[%c0_50, %c0_51] : memref<128x2xf32, #tpu.memory_space<vmem>>, vector<128x2xf32>
    %cst_52 = arith.constant dense<0.000000e+00> : vector<8x2xf32>
    %125 = tpu.matmul %121, %124, %cst_52 {dimension_numbers = #tpu.dot_dimension_numbers<[1], [0], [0], [1], [0, 0, 1, 1], [], []>} : vector<8x128xf32>, vector<128x2xf32>, vector<8x2xf32> -> vector<8x2xf32>
    %126 = arith.addf %123, %125 : vector<8x2xf32>
    %c0_53 = arith.constant 0 : index
    %c0_54 = arith.constant 0 : index
    %127 = vector.load %arg14[%c0_53, %c0_54] : memref<128x2xf32, #tpu.memory_space<vmem>>, vector<128x2xf32>
    %cst_55 = arith.constant dense<0.000000e+00> : vector<8x2xf32>
    %128 = tpu.matmul %37, %127, %cst_55 {dimension_numbers = #tpu.dot_dimension_numbers<[1], [0], [0], [1], [0, 0, 1, 1], [], []>} : vector<8x128xf32>, vector<128x2xf32>, vector<8x2xf32> -> vector<8x2xf32>
    %129 = arith.addf %126, %128 : vector<8x2xf32>
    %c0_56 = arith.constant 0 : index
    %c0_57 = arith.constant 0 : index
    %130 = vector.load %arg15[%c0_56, %c0_57] : memref<1x2xf32, #tpu.memory_space<vmem>>, vector<1x2xf32>
    %131 = vector.broadcast %130 : vector<1x2xf32> to vector<8x2xf32>
    %132 = arith.addf %129, %131 : vector<8x2xf32>
    %133 = vector.shape_cast %45 : vector<8x1x128xf32> to vector<8x128xf32>
    %c0_58 = arith.constant 0 : index
    %c0_59 = arith.constant 0 : index
    %134 = vector.load %arg16[%c0_58, %c0_59] : memref<8x128xf32, #tpu.memory_space<vmem>>, vector<8x128xf32>
    tpu.vector_store %arg16[%c0_58, %c0_59], %133 {strides = array<i32>} : memref<8x128xf32, #tpu.memory_space<vmem>>, vector<8x128xf32>,
    %135 = vector.shape_cast %104 : vector<8x1x128xf32> to vector<8x128xf32>
    %c0_60 = arith.constant 0 : index
    %c0_61 = arith.constant 0 : index
    %136 = vector.load %arg17[%c0_60, %c0_61] : memref<8x128xf32, #tpu.memory_space<vmem>>, vector<8x128xf32>
    tpu.vector_store %arg17[%c0_60, %c0_61], %135 {strides = array<i32>} : memref<8x128xf32, #tpu.memory_space<vmem>>, vector<8x128xf32>,
    %c0_62 = arith.constant 0 : index
    %c0_63 = arith.constant 0 : index
    %137 = vector.load %arg18[%c0_62, %c0_63] : memref<8x2xf32, #tpu.memory_space<vmem>>, vector<8x2xf32>
    tpu.vector_store %arg18[%c0_62, %c0_63], %132 {strides = array<i32>} : memref<8x2xf32, #tpu.memory_space<vmem>>, vector<8x2xf32>,
    return
  }
  func.func @transform_0(%arg0: i32) -> (i32, i32, i32) {
    %c0_i32 = arith.constant 0 : i32
    %c0_i32_0 = arith.constant 0 : i32
    %c0_i32_1 = arith.constant 0 : i32
    return %arg0, %c0_i32, %c0_i32_0 : i32, i32, i32
  }
  func.func @transform_1(%arg0: i32) -> (i32, i32, i32) {
    %c0_i32 = arith.constant 0 : i32
    %c0_i32_0 = arith.constant 0 : i32
    %c0_i32_1 = arith.constant 0 : i32
    return %arg0, %c0_i32, %c0_i32_0 : i32, i32, i32
  }
  func.func @transform_2(%arg0: i32) -> (i32, i32) {
    %c0_i32 = arith.constant 0 : i32
    %c0_i32_0 = arith.constant 0 : i32
    return %arg0, %c0_i32 : i32, i32
  }
  func.func @transform_3(%arg0: i32) -> (i32, i32) {
    %c0_i32 = arith.constant 0 : i32
    %c0_i32_0 = arith.constant 0 : i32
    return %arg0, %c0_i32 : i32, i32
  }
  func.func @transform_4(%arg0: i32) -> (i32, i32) {
    %c0_i32 = arith.constant 0 : i32
    %c0_i32_0 = arith.constant 0 : i32
    %c0_i32_1 = arith.constant 0 : i32
    return %c0_i32, %c0_i32_0 : i32, i32
  }
  func.func @transform_5(%arg0: i32) -> (i32, i32) {
    %c0_i32 = arith.constant 0 : i32
    %c0_i32_0 = arith.constant 0 : i32
    %c0_i32_1 = arith.constant 0 : i32
    return %c0_i32, %c0_i32_0 : i32, i32
  }
  func.func @transform_6(%arg0: i32) -> (i32, i32) {
    %c0_i32 = arith.constant 0 : i32
    %c0_i32_0 = arith.constant 0 : i32
    %c0_i32_1 = arith.constant 0 : i32
    return %c0_i32, %c0_i32_0 : i32, i32
  }
  func.func @transform_7(%arg0: i32) -> (i32, i32) {
    %c0_i32 = arith.constant 0 : i32
    %c0_i32_0 = arith.constant 0 : i32
    %c0_i32_1 = arith.constant 0 : i32
    return %c0_i32, %c0_i32_0 : i32, i32
  }
  func.func @transform_8(%arg0: i32) -> (i32, i32) {
    %c0_i32 = arith.constant 0 : i32
    %c0_i32_0 = arith.constant 0 : i32
    %c0_i32_1 = arith.constant 0 : i32
    return %c0_i32, %c0_i32_0 : i32, i32
  }
  func.func @transform_9(%arg0: i32) -> (i32, i32) {
    %c0_i32 = arith.constant 0 : i32
    %c0_i32_0 = arith.constant 0 : i32
    %c0_i32_1 = arith.constant 0 : i32
    return %c0_i32, %c0_i32_0 : i32, i32
  }
  func.func @transform_10(%arg0: i32) -> (i32, i32) {
    %c0_i32 = arith.constant 0 : i32
    %c0_i32_0 = arith.constant 0 : i32
    %c0_i32_1 = arith.constant 0 : i32
    return %c0_i32, %c0_i32_0 : i32, i32
  }
  func.func @transform_11(%arg0: i32) -> (i32, i32) {
    %c0_i32 = arith.constant 0 : i32
    %c0_i32_0 = arith.constant 0 : i32
    %c0_i32_1 = arith.constant 0 : i32
    return %c0_i32, %c0_i32_0 : i32, i32
  }
  func.func @transform_12(%arg0: i32) -> (i32, i32) {
    %c0_i32 = arith.constant 0 : i32
    %c0_i32_0 = arith.constant 0 : i32
    %c0_i32_1 = arith.constant 0 : i32
    return %c0_i32, %c0_i32_0 : i32, i32
  }
  func.func @transform_13(%arg0: i32) -> (i32, i32) {
    %c0_i32 = arith.constant 0 : i32
    %c0_i32_0 = arith.constant 0 : i32
    %c0_i32_1 = arith.constant 0 : i32
    return %c0_i32, %c0_i32_0 : i32, i32
  }
  func.func @transform_14(%arg0: i32) -> (i32, i32) {
    %c0_i32 = arith.constant 0 : i32
    %c0_i32_0 = arith.constant 0 : i32
    %c0_i32_1 = arith.constant 0 : i32
    return %c0_i32, %c0_i32_0 : i32, i32
  }
  func.func @transform_15(%arg0: i32) -> (i32, i32) {
    %c0_i32 = arith.constant 0 : i32
    %c0_i32_0 = arith.constant 0 : i32
    return %arg0, %c0_i32 : i32, i32
  }
  func.func @transform_16(%arg0: i32) -> (i32, i32) {
    %c0_i32 = arith.constant 0 : i32
    %c0_i32_0 = arith.constant 0 : i32
    return %arg0, %c0_i32 : i32, i32
  }
  func.func @transform_17(%arg0: i32) -> (i32, i32) {
    %c0_i32 = arith.constant 0 : i32
    %c0_i32_0 = arith.constant 0 : i32
    return %arg0, %c0_i32 : i32, i32
  }
}

</mosaic_0001>

<bundles_post_ra>
// kernel: qaxl_decode.1
= control target key start
LH: loop header
LB: loop body
LE: loop exit
PB: predicated region body
PF: predicated region fallthrough
CT: control target
= control target key end

     0   :  { %s11921_s0 = inlined_call_operand.hbm [shape: bf16[16,128,128], index: 0, kind: input, shape index: {}]   ;;  %s11922_s1 = inlined_call_operand.hbm [shape: bf16[16,128,128], index: 1, kind: input, shape index: {}]   ;;  %s11923_s2 = inlined_call_operand.hbm [shape: f32[16,128], index: 2, kind: input, shape index: {}]   ;;  %s11924_s3 = inlined_call_operand.hbm [shape: f32[16,128], index: 3, kind: input, shape index: {}]   ;;  %s11925_s4 = inlined_call_operand.hbm [shape: bf16[2,128], index: 4, kind: input, shape index: {}]   ;;  %s11926_s5 = inlined_call_operand.hbm [shape: bf16[128,128], index: 5, kind: input, shape index: {}]   ;;  %s11927_s6 = inlined_call_operand.hbm [shape: bf16[128,128], index: 6, kind: input, shape index: {}]   ;;  %s11928_s7 = inlined_call_operand.hbm [shape: bf16[128,384], index: 7, kind: input, shape index: {}]   ;;  %s11929_s8 = inlined_call_operand.hbm [shape: bf16[128,384], index: 8, kind: input, shape index: {}]   ;;  %s11930_s9 = inlined_call_operand.hbm [shape: f32[1,384], index: 9, kind: input, shape index: {}]   ;;  %s11931_s10 = inlined_call_operand.hbm [shape: f32[1,384], index: 10, kind: input, shape index: {}]   ;;  %s11932_s11 = inlined_call_operand.hbm [shape: f32[128,2], index: 11, kind: input, shape index: {}]   ;;  %s11933_s12 = inlined_call_operand.hbm [shape: f32[128,2], index: 12, kind: input, shape index: {}]   ;;  %s11934_s13 = inlined_call_operand.hbm [shape: f32[128,2], index: 13, kind: input, shape index: {}]   ;;  %s11935_s14 = inlined_call_operand.hbm [shape: f32[1,2], index: 14, kind: input, shape index: {}]   ;;  %s11936_s15 = inlined_call_operand.hbm [shape: f32[16,128], index: 15, kind: output, shape index: {0}]   ;;  %s11937_s16 = inlined_call_operand.hbm [shape: f32[16,128], index: 16, kind: output, shape index: {1}]   ;;  %s11938_s17 = inlined_call_operand.hbm [shape: f32[16,2], index: 17, kind: output, shape index: {2}]  }
   0x1   :  { %12023 = sst [smem:[#allocation72_spill]] %s11921_s0 }
   0x2   :  { %12024 = sst [smem:[#allocation73_spill]] %s11922_s1 }
   0x3   :  { %12025 = sst [smem:[#allocation74_spill]] %s11923_s2 }
   0x4   :  { %12026 = sst [smem:[#allocation75_spill]] %s11924_s3 }
   0x5   :  { %12027 = sst [smem:[#allocation76_spill]] %s11925_s4 }
   0x6   :  { %12028 = sst [smem:[#allocation77_spill]] %s11926_s5 }
   0x7   :  { %12029 = sst [smem:[#allocation78_spill]] %s11927_s6 }
   0x8   :  { %12030 = sst [smem:[#allocation79_spill]] %s11928_s7 }
   0x9   :  { %12031 = sst [smem:[#allocation80_spill]] %s11929_s8 }
   0xa   :  { %12032 = sst [smem:[#allocation81_spill]] %s11930_s9 }
   0xb   :  { %12033 = sst [smem:[#allocation82_spill]] %s11932_s11 }
   0xc   :  { %12034 = sst [smem:[#allocation83_spill]] %s11934_s13 }
   0xd   :  { %12035 = sst [smem:[#allocation84_spill]] %s11935_s14 }
   0xe   :  { %12036 = sst [smem:[#allocation85_spill]] %s11936_s15 }
   0xf   :  { %12037 = sst [smem:[#allocation86_spill]] %s11937_s16 }
  0x10   :  { %12038 = sst [smem:[#allocation87_spill]] %s11938_s17 }
  0x11   :  { %23 = vsyncpa [#allocation3], 0 }
  0x12   :  { %25 = vsyncpa [#allocation3 + $0x1], 0 }
  0x13   :  { %26 = vsyncpa [#allocation6], 0 }
  0x14   :  { %28 = vsyncpa [#allocation6 + $0x1], 0 }
  0x15   :  { %29 = vsyncpa [#allocation9], 0 }
  0x16   :  { %31 = vsyncpa [#allocation9 + $0x1], 0 }
  0x17   :  { %32 = vsyncpa [#allocation12], 0 }
  0x18   :  { %33 = vsyncpa [#allocation15], 0 }
  0x19   :  { %34 = vsyncpa [#allocation18], 0 }
  0x1a   :  { %35 = vsyncpa [#allocation21], 0 }
  0x1b   :  { %36 = vsyncpa [#allocation24], 0 }
  0x1c   :  { %37 = vsyncpa [#allocation4], 0 }
  0x1d   :  { %39 = vsyncpa [#allocation4 + $0x1], 0 }
  0x1e   :  { %40 = vsyncpa [#allocation28], 0 }
  0x1f   :  { %42 = vsyncpa [#allocation28 + $0x1], 0  ;;  %s9305_s24 = smov 0   ;;  %s9307_s25 = smov 0  }
  0x20   :  { %s9309_s26 = smov 0   ;;  %s9311_s27 = smov 0  }
  0x21 LB: > { %12039 = sst [smem:[#allocation41_spill]] %s9179_s26  ;;  %s9185_s28 = smov [#allocation10]   ;;  %s9183_s27 = sphi %s9311_s27, %s12194_s27   ;;  %s9179_s26 = sphi %s9309_s26, %s12196_s26   ;;  %s9175_s25 = sphi %s9307_s25, %s12198_s25   ;;  %s9171_s24 = sphi %s9305_s24, %s12197_s24  }
  0x22   : > { %s479_s29 = sshll.u32 %s9185_s28, 4  ;;  %s9326_s0 = sadd.s32 4294967295, %s9183_s27   ;;  %s9331_s29 = int_to_ptr.vmem [resolvable:$true] %s479_s29 }
  0x23   : > { %p6007_p0 = scmp.ge.s32.totalorder %s9183_s27, 1  ;;  %p11952_p1 = scmp.eq.s32.totalorder %s9326_s0, 0 }
  0x24   : > { %p466_p2 = scmp.lt.s32.totalorder %s9183_s27, 3  ;;  %s9186_s18 = smov [#allocation11]  }
  0x25   : > { %s489_s19 = sshll.u32 %s9186_s18, 4  ;;  %s9187_s20 = smov [#allocation14]   ;;  %s9340_s19 = int_to_ptr.vmem [resolvable:$true] %s489_s19 }
  0x26   : > { %p9333_p3 = pnand %p6007_p0, %p466_p2  ;;  %s515_s21 = sshll.u32 %s9187_s20, 4  ;;  %s9348_s21 = int_to_ptr.vmem [resolvable:$true] %s515_s21 }
  0x27   : > { %s12043_s4 = sld [smem:[#allocation76_spill]] }
  0x28   : > { %s12040_s30 = scalar_select %p9333_p3, 1, 0 }
  0x29   : > { %p8068_p5 = pneg %p9333_p3 }
  0x2a   : > { %12041 = sst [smem:[#allocation42_spill]] %s12040_s30 }
  0x2b   : > { %p9344_p6 = pnand %p8068_p5, %p11952_p1 }
  0x2d   : > { %s12042_s1 = scalar_select %p9344_p6, 1, 0 }
  0x2e   : > { %s8597_s28 = scalar_lea.hbm %s12043_s4, 16  ;;  %p9358_p8 = pneg %p9344_p6 }
  0x2f   : > { %p8598_p7 = scmp.ne.s32.totalorder %s12043_s4, %s8597_s28  ;;  %p8604_p11 = scmp.lt.u32.totalorder %s8597_s28, %s12043_s4 }
  0x30   : > { %s12044_s18 = scalar_select %p9358_p8, 1, 0 }
  0x31   : > { %p8600_p9 = pnand %p9358_p8, %p8598_p7 }
  0x33   : > { %p8601_p10 = pneg %p8600_p9 }
  0x35   : > { %p8606_p12 = pnand %p8604_p11, %p8601_p10 }
  0x37   : > { %8609 = shalt.err (!%p8606_p12)
}
  0x38   : > { %s8610_s15 = scalar_lea.vmem %s9331_s29, 16  ;;  %s8617_s17 = scalar_lea.vmem %s9331_s29, 32 }
  0x39   : > { %p8611_p13 = scmp.ne.s32.totalorder %s9331_s29, %s8610_s15  ;;  %p8618_p5 = scmp.lt.s32.totalorder %s9331_s29, %s9331_s29 }
  0x3a   : > { %p8619_p7 = scmp.lt.s32.totalorder %s8617_s17, %s8610_s15 }
  0x3b   : > { %p8613_p0 = pnand %p8611_p13, %p9358_p8 }
  0x3c   : > { %p8620_p9 = por %p8619_p7, %p8618_p5 }
  0x3d   : > { %p8614_p2 = pneg %p8613_p0 }
  0x3f   : > { %p8621_p4 = pnand %p8620_p9, %p8614_p2 }
  0x41   : > { %8624 = shalt.err (!%p8621_p4)
}
  0x42   : > { %8071 = dma.hbm_to_vmem [thread:$0]  (!%p9344_p6), %s12043_s4, 16, %s9331_s29, [#allocation9]  }
  0x43   : > { %s12045_s5 = sld [smem:[#allocation77_spill]] }
  0x49   : > { %s8625_s20 = scalar_lea.hbm %s12045_s5, 1024 }
  0x4a   : > { %p8626_p10 = scmp.ne.s32.totalorder %s12045_s5, %s8625_s20  ;;  %p8632_p4 = scmp.lt.u32.totalorder %s8625_s20, %s12045_s5 }
  0x4c   : > { %p8628_p11 = pnand %p8626_p10, %p9358_p8 }
  0x4e   : > { %p8629_p12 = pneg %p8628_p11 }
  0x50   : > { %p8634_p13 = pnand %p8632_p4, %p8629_p12 }
  0x52   : > { %8637 = shalt.err (!%p8634_p13)
}
  0x53   : > { %s8638_s29 = scalar_lea.vmem %s9340_s19, 1024  ;;  %p8646_p7 = scmp.lt.s32.totalorder %s9340_s19, %s9340_s19 }
  0x54   : > { %p8639_p0 = scmp.ne.s32.totalorder %s9340_s19, %s8638_s29  ;;  %p8647_p9 = scmp.lt.s32.totalorder %s8638_s29, %s8638_s29 }
  0x56   : > { %p8641_p2 = pnand %p8639_p0, %p9358_p8  ;;  %p8648_p10 = por %p8647_p9, %p8646_p7 }
  0x58   : > { %p8642_p5 = pneg %p8641_p2 }
  0x5a   : > { %p8649_p11 = pnand %p8648_p10, %p8642_p5 }
  0x5c   : > { %8652 = shalt.err (!%p8649_p11)
}
  0x5d   : > { %s11946_s3 = smov 64   ;;  %s11948_s30 = smov 4  }
  0x5e   : > { %8074 = dma.hbm_to_vmem [thread:$0]  (!%p9344_p6), %s12045_s5, 1024, %s9340_s19, [#allocation12], %s11946_s3, %s11946_s3, %s11948_s30  }
  0x5f   : > { %s12046_s7 = sld [smem:[#allocation79_spill]] }
  0x65   : > { %s8653_s20 = scalar_lea.hbm %s12046_s7, 3072 }
  0x66   : > { %p8654_p12 = scmp.ne.s32.totalorder %s12046_s7, %s8653_s20  ;;  %p8660_p0 = scmp.lt.u32.totalorder %s8653_s20, %s12046_s7 }
  0x68   : > { %p8656_p4 = pnand %p8654_p12, %p9358_p8 }
  0x6a   : > { %p8657_p13 = pneg %p8656_p4 }
  0x6c   : > { %p8662_p2 = pnand %p8660_p0, %p8657_p13 }
  0x6e   : > { %8665 = shalt.err (!%p8662_p2)
}
  0x6f   : > { %s8666_s19 = scalar_lea.vmem %s9348_s21, 3072  ;;  %p8674_p10 = scmp.lt.s32.totalorder %s9348_s21, %s9348_s21 }
  0x70   : > { %p8667_p5 = scmp.ne.s32.totalorder %s9348_s21, %s8666_s19  ;;  %p8675_p11 = scmp.lt.s32.totalorder %s8666_s19, %s8666_s19 }
  0x72   : > { %p8669_p7 = pnand %p8667_p5, %p9358_p8  ;;  %p8676_p12 = por %p8675_p11, %p8674_p10 }
  0x74   : > { %p8670_p9 = pneg %p8669_p7 }
  0x76   : > { %p8677_p4 = pnand %p8676_p12, %p8670_p9 }
  0x78   : > { %8680 = shalt.err (!%p8677_p4)
}
  0x79   : > { %s11957_s16 = smov 192   ;;  %s11958_s4 = smov 12  }
  0x7a   : > { %8080 = dma.hbm_to_vmem [thread:$0]  (!%p9344_p6), %s12046_s7, 3072, %s9348_s21, [#allocation15], %s11957_s16, %s11957_s16, %s11958_s4  }
  0x7b   : > { %s9192_s28 = smov [#allocation17]   ;;  %s9193_s15 = smov [#allocation20]  }
  0x7c   : > { %s542_s20 = sshll.u32 %s9192_s28, 4  ;;  %s563_s17 = sshll.u32 %s9193_s15, 4  ;;  %s543_s20 = int_to_ptr.vmem [resolvable:$true] %s542_s20  ;;  %s564_s17 = int_to_ptr.vmem [resolvable:$true] %s563_s17 }
  0x7d   : > { %s12047_s9 = sld [smem:[#allocation81_spill]] }
  0x83   : > { %s8681_s3 = scalar_lea.hbm %s12047_s9, 48 }
  0x84   : > { %p8682_p13 = scmp.ne.s32.totalorder %s12047_s9, %s8681_s3  ;;  %p8688_p5 = scmp.lt.u32.totalorder %s8681_s3, %s12047_s9 }
  0x86   : > { %p8684_p0 = pnand %p8682_p13, %p9358_p8 }
  0x88   : > { %p8685_p2 = pneg %p8684_p0 }
  0x8a   : > { %p8690_p7 = pnand %p8688_p5, %p8685_p2 }
  0x8c   : > { %8693 = shalt.err (!%p8690_p7)
}
  0x8d   : > { %s8694_s21 = scalar_lea.vmem %s543_s20, 48  ;;  %s8701_s22 = scalar_lea.vmem %s543_s20, 64 }
  0x8e   : > { %p8695_p9 = scmp.ne.s32.totalorder %s543_s20, %s8694_s21  ;;  %p8702_p12 = scmp.lt.s32.totalorder %s543_s20, %s543_s20 }
  0x8f   : > { %p8703_p4 = scmp.lt.s32.totalorder %s8701_s22, %s8694_s21 }
  0x90   : > { %p8697_p10 = pnand %p8695_p9, %p9358_p8 }
  0x91   : > { %p8704_p1 = por %p8703_p4, %p8702_p12 }
  0x92   : > { %p8698_p11 = pneg %p8697_p10 }
  0x94   : > { %p8705_p3 = pnand %p8704_p1, %p8698_p11 }
  0x96   : > { %8708 = shalt.err (!%p8705_p3)
}
  0x97   : > { %8086 = dma.hbm_to_vmem [thread:$0]  (!%p9344_p6), %s12047_s9, 48, %s543_s20, [#allocation18]  }
  0x98   : > { %s12048_s11 = sld [smem:[#allocation82_spill]] }
  0x9e   : > { %s8709_s3 = scalar_lea.hbm %s12048_s11, 2048 }
  0x9f   : > { %p8710_p13 = scmp.ne.s32.totalorder %s12048_s11, %s8709_s3  ;;  %p8716_p3 = scmp.lt.u32.totalorder %s8709_s3, %s12048_s11 }
  0xa1   : > { %p8712_p0 = pnand %p8710_p13, %p9358_p8 }
  0xa3   : > { %p8713_p1 = pneg %p8712_p0 }
  0xa5   : > { %p8718_p2 = pnand %p8716_p3, %p8713_p1 }
  0xa7   : > { %8721 = shalt.err (!%p8718_p2)
}
  0xa8   : > { %s8722_s19 = scalar_lea.vmem %s564_s17, 2048  ;;  %p8730_p10 = scmp.lt.s32.totalorder %s564_s17, %s564_s17 }
  0xa9   : > { %p8723_p5 = scmp.ne.s32.totalorder %s564_s17, %s8722_s19  ;;  %p8731_p11 = scmp.lt.s32.totalorder %s8722_s19, %s8722_s19 }
  0xab   : > { %p8725_p7 = pnand %p8723_p5, %p9358_p8  ;;  %p8732_p12 = por %p8731_p11, %p8730_p10 }
  0xad   : > { %p8726_p9 = pneg %p8725_p7 }
  0xaf   : > { %p8733_p4 = pnand %p8732_p12, %p8726_p9 }
  0xb1   : > { %8736 = shalt.err (!%p8733_p4)
}
  0xb2   : > { %s11955_s20 = smov 128   ;;  %s11956_s21 = smov 8  }
  0xb3   : > { %8092 = dma.hbm_to_vmem [thread:$0]  (!%p9344_p6), %s12048_s11, 2048, %s564_s17, [#allocation21], %s11955_s20, %s11955_s20, %s11956_s21  }
  0xb4   : > { %s9196_s30 = smov [#allocation23]   ;;  %s12049_s13 = sld [smem:[#allocation83_spill]] }
  0xb5   : > { %s589_s2 = sshll.u32 %s9196_s30, 4  ;;  %s590_s2 = int_to_ptr.vmem [resolvable:$true] %s589_s2 }
  0xba   : > { %s8737_s23 = scalar_lea.hbm %s12049_s13, 2048 }
  0xbb   : > { %p8738_p13 = scmp.ne.s32.totalorder %s12049_s13, %s8737_s23  ;;  %p8744_p3 = scmp.lt.u32.totalorder %s8737_s23, %s12049_s13 }
  0xbd   : > { %p8740_p0 = pnand %p8738_p13, %p9358_p8 }
  0xbf   : > { %p8741_p1 = pneg %p8740_p0 }
  0xc1   : > { %p8746_p2 = pnand %p8744_p3, %p8741_p1 }
  0xc3   : > { %8749 = shalt.err (!%p8746_p2)
}
  0xc4   : > { %s8750_s17 = scalar_lea.vmem %s590_s2, 2048  ;;  %p8758_p10 = scmp.lt.s32.totalorder %s590_s2, %s590_s2 }
  0xc5   : > { %p8751_p5 = scmp.ne.s32.totalorder %s590_s2, %s8750_s17  ;;  %p8759_p11 = scmp.lt.s32.totalorder %s8750_s17, %s8750_s17 }
  0xc7   : > { %p8753_p7 = pnand %p8751_p5, %p9358_p8  ;;  %p8760_p12 = por %p8759_p11, %p8758_p10 }
  0xc9   : > { %p8754_p9 = pneg %p8753_p7 }
  0xcb   : > { %p8761_p4 = pnand %p8760_p12, %p8754_p9 }
  0xcd   : > { %8764 = shalt.err (!%p8761_p4)
}
  0xce   : > { %8098 = dma.hbm_to_vmem [thread:$0]  (!%p9344_p6), %s12049_s13, 2048, %s590_s2, [#allocation24], %s11955_s20, %s11955_s20, %s11956_s21  }
  0xcf   : > { %s11954_s30 = sadd.s32 4294967294, %s9183_s27   ;;  %s9494_s14 = sadd.s32 1, %s9183_s27  }
  0xd0   : > { %12050 = sst [smem:[#allocation43_spill]] %s9494_s14  ;;  %s52_s3 = ssub.s32 %s9183_s27, %s9494_s14 }
  0xd1   : > { %s55_s23 = sadd.s32 1, %s9179_s26  ;;  %p53_p13 = scmp.eq.s32.totalorder %s52_s3, 0 }
  0xd2   : > { %p62_p0 = scmp.ne.s32.totalorder %s9179_s26, %s9175_s25  ;;  %p63_p1 = scmp.eq.s32.totalorder %s9183_s27, 0 }
  0xd3   : > { %p68_p3 = scmp.ne.s32.totalorder %s9175_s25, %s9171_s24  ;;  %p12052_p5 = scmp.eq.s32.totalorder %s9326_s0, 0 }
  0xd4   : > { %s9505_s28 = scalar_select %p53_p13, %s9179_s26, %s55_s23  }
  0xd5   : > { %p64_p2 = por %p63_p1, %p62_p0  ;;  %p9509_p7 = por %p12052_p5, %p68_p3 }
  0xd6   : > { %12051 = sst [smem:[#allocation44_spill]] %s9505_s28  ;;  %p401_p9 = scmp.eq.s32.totalorder %s9326_s0, 1 }
  0xd7   : > { %s12053_s15 = scalar_select %p9509_p7, 1, 0 }
  0xd8   : > { %p407_p10 = scmp.eq.s32.totalorder %s11954_s30, 1  ;;  %p8136_p11 = scmp.lt.s32.totalorder %s9183_s27, 2 }
  0xd9   : > { %s9518_s2 = sand.u32 1, %s9179_s26   ;;  %p9520_p12 = por %p401_p9, %p62_p0 }
  0xda   : > { %p9524_p4 = por %p407_p10, %p68_p3  ;;  %s11959_s17 = sshll.u32 %s9518_s2, 9 }
  0xdb   : > { %s12054_s29 = scalar_select %p9520_p12, 1, 0 }
  0xdc   : > { %s12055_s19 = scalar_select %p9524_p4, 1, 0 }
  0xdd   : > { %s11960_s22 = sshll.u32 %s9183_s27, 13  ;;  %p9530_p13 = pnand %p8136_p11, %p64_p2 }
  0xde   : > { %12056 = sst [smem:[#allocation45_spill]] %s12055_s19  ;;  %s11962_s3 = sand.u32 1, %s9183_s27  }
  0xdf   : > { %s12057_s5 = scalar_select %p9530_p13, 1, 0 }
  0xe0   : > { %s12058_s20 = sld [smem:[#allocation73_spill]]  ;;  %s640_s16 = scalar_lea.vmem [#allocation5], %s11959_s17 }
  0xe1   : > { %s648_s4 = sshll.u32 %s640_s16, 4  ;;  %s9197_s7 = smov [#allocation13]   ;;  %s9544_s4 = int_to_ptr.vmem [resolvable:$true] %s648_s4 }
  0xe2   : > { %s9546_s9 = sshll.u32 %s9197_s7, 4  ;;  %s9550_s11 = scalar_lea.sflag [#allocation6], %s11962_s3  ;;  %s503_s9 = int_to_ptr.vmem [resolvable:$true] %s9546_s9 }
  0xe3   : > { %p9556_p1 = pneg %p9530_p13 }
  0xe5   : > { %s12059_s30 = scalar_select %p9556_p1, 1, 0 }
  0xe6   : > { %s9540_s21 = scalar_lea.hbm %s12058_s20, %s11960_s22  ;;  %s8770_s17 = scalar_lea.hbm %s12058_s20, 16384 }
  0xe7   : > { %s8765_s13 = scalar_lea.hbm %s9540_s21, 8192  ;;  %p8771_p5 = scmp.lt.u32.totalorder %s9540_s21, %s12058_s20 }
  0xe8   : > { %p8766_p0 = scmp.ne.s32.totalorder %s9540_s21, %s8765_s13  ;;  %p8772_p9 = scmp.lt.u32.totalorder %s8770_s17, %s8765_s13 }
  0xe9   : > { %p8774_p11 = scmp.lt.u32.totalorder %s8765_s13, %s9540_s21 }
  0xea   : > { %p8768_p3 = pnand %p9556_p1, %p8766_p0  ;;  %p8773_p10 = por %p8772_p9, %p8771_p5 }
  0xec   : > { %p8769_p2 = pneg %p8768_p3  ;;  %p8775_p4 = por %p8774_p11, %p8773_p10 }
  0xee   : > { %p8776_p12 = pnand %p8775_p4, %p8769_p2 }
  0xf0   : > { %8779 = shalt.err (!%p8776_p12)
}
  0xf1   : > { %s8780_s3 = scalar_lea.vmem %s9544_s4, 8192  ;;  %s9198_s16 = smov [#allocation5]  }
  0xf2   : > { %p8781_p0 = scmp.ne.s32.totalorder %s9544_s4, %s8780_s3  ;;  %s8785_s23 = sshll.u32 %s9198_s16, 4  ;;  %s8786_s23 = int_to_ptr.vmem [resolvable:$false] %s8785_s23 }
  0xf3   : > { %s8787_s22 = scalar_lea.vmem %s8786_s23, 16384  ;;  %p8788_p6 = scmp.lt.s32.totalorder %s9544_s4, %s8786_s23 }
  0xf4   : > { %p8783_p3 = pnand %p8781_p0, %p9556_p1  ;;  %p8789_p8 = scmp.lt.s32.totalorder %s8787_s22, %s8780_s3 }
  0xf6   : > { %p8784_p7 = pneg %p8783_p3  ;;  %p8790_p5 = por %p8789_p8, %p8788_p6 }
  0xf8   : > { %p8791_p9 = pnand %p8790_p5, %p8784_p7 }
  0xfa   : > { %8794 = shalt.err (!%p8791_p9)
}
  0xfb   : > { %s12060_s13 = smov 4   ;;  %s12061_s17 = smov 64  }
  0xfc   : > { %8108 = dma.hbm_to_vmem [thread:$0]  (!%p9530_p13), %s9540_s21, 8192, %s9544_s4, %s9550_s11, %s12061_s17, %s12061_s17, %s12060_s13  }
  0xfd   : > { %s12062_s6 = sld [smem:[#allocation78_spill]]  ;;  %p12063_p8 = scmp.ne.s32.totalorder %s12044_s18, 0 }
 0x103   : > { %s8795_s23 = scalar_lea.hbm %s12062_s6, 1024 }
 0x104   : > { %p8796_p6 = scmp.ne.s32.totalorder %s12062_s6, %s8795_s23  ;;  %p8802_p4 = scmp.lt.u32.totalorder %s8795_s23, %s12062_s6 }
 0x106   : > { %p8798_p7 = pnand %p8796_p6, %p12063_p8 }
 0x108   : > { %p8799_p12 = pneg %p8798_p7 }
 0x10a   : > { %p8804_p2 = pnand %p8802_p4, %p8799_p12 }
 0x10c   : > { %8807 = shalt.err (!%p8804_p2)
}
 0x10d   : > { %s8808_s26 = scalar_lea.vmem %s503_s9, 1024  ;;  %p8816_p3 = scmp.lt.s32.totalorder %s503_s9, %s503_s9 }
 0x10e   : > { %p8809_p10 = scmp.ne.s32.totalorder %s503_s9, %s8808_s26  ;;  %p8817_p5 = scmp.lt.s32.totalorder %s8808_s26, %s8808_s26 }
 0x110   : > { %p8811_p11 = pnand %p8809_p10, %p12063_p8  ;;  %p8818_p9 = por %p8817_p5, %p8816_p3 }
 0x112   : > { %p8812_p0 = pneg %p8811_p11 }
 0x114   : > { %p8819_p13 = pnand %p8818_p9, %p8812_p0 }
 0x116   : > { %8822 = shalt.err (!%p8819_p13)
}
 0x117   : > { %p12064_p6 = scmp.ne.s32.totalorder %s12042_s1, 0  ;;  %s9199_s21 = smov [#allocation16]  }
 0x118   : > { %s528_s28 = sshll.u32 %s9199_s21, 4  ;;  %s9200_s7 = smov [#allocation19]   ;;  %s529_s28 = int_to_ptr.vmem [resolvable:$true] %s528_s28 }
 0x119   : > { %8077 = dma.hbm_to_vmem [thread:$0]  (!%p12064_p6), %s12062_s6, 1024, %s503_s9, [#allocation12], %s12061_s17, %s12061_s17, %s12060_s13  }
 0x11a   : > { %s553_s16 = sshll.u32 %s9200_s7, 4  ;;  %s12065_s8 = sld [smem:[#allocation80_spill]]  ;;  %s554_s16 = int_to_ptr.vmem [resolvable:$true] %s553_s16 }
 0x120   : > { %s8823_s3 = scalar_lea.hbm %s12065_s8, 3072 }
 0x121   : > { %p8824_p13 = scmp.ne.s32.totalorder %s12065_s8, %s8823_s3  ;;  %p8830_p4 = scmp.lt.u32.totalorder %s8823_s3, %s12065_s8 }
 0x123   : > { %p8826_p7 = pnand %p8824_p13, %p12063_p8 }
 0x125   : > { %p8827_p12 = pneg %p8826_p7 }
 0x127   : > { %p8832_p2 = pnand %p8830_p4, %p8827_p12 }
 0x129   : > { %8835 = shalt.err (!%p8832_p2)
}
 0x12a   : > { %s8836_s9 = scalar_lea.vmem %s529_s28, 3072  ;;  %p8844_p3 = scmp.lt.s32.totalorder %s529_s28, %s529_s28 }
 0x12b   : > { %p8837_p10 = scmp.ne.s32.totalorder %s529_s28, %s8836_s9  ;;  %p8845_p5 = scmp.lt.s32.totalorder %s8836_s9, %s8836_s9 }
 0x12d   : > { %p8839_p11 = pnand %p8837_p10, %p12063_p8  ;;  %p8846_p9 = por %p8845_p5, %p8844_p3 }
 0x12f   : > { %p8840_p0 = pneg %p8839_p11 }
 0x131   : > { %p8847_p1 = pnand %p8846_p9, %p8840_p0 }
 0x133   : > { %8850 = shalt.err (!%p8847_p1)
}
 0x134   : > { %s12066_s14 = smov 12   ;;  %s12067_s20 = smov 192  }
 0x135   : > { %8083 = dma.hbm_to_vmem [thread:$0]  (!%p12064_p6), %s12065_s8, 3072, %s529_s28, [#allocation15], %s12067_s20, %s12067_s20, %s12066_s14  }
 0x136   : > { %s8851_s26 = scalar_lea.hbm %s11931_s10, 48 }
 0x137   : > { %p8852_p13 = scmp.ne.s32.totalorder %s11931_s10, %s8851_s26  ;;  %p8858_p12 = scmp.lt.u32.totalorder %s8851_s26, %s11931_s10 }
 0x139   : > { %p8854_p1 = pnand %p8852_p13, %p12063_p8 }
 0x13b   : > { %p8855_p7 = pneg %p8854_p1 }
 0x13d   : > { %p8860_p4 = pnand %p8858_p12, %p8855_p7 }
 0x13f   : > { %8863 = shalt.err (!%p8860_p4)
}
 0x140   : > { %s8864_s19 = scalar_lea.vmem %s554_s16, 48  ;;  %s8871_s28 = scalar_lea.vmem %s554_s16, 64 }
 0x141   : > { %p8865_p2 = scmp.ne.s32.totalorder %s554_s16, %s8864_s19  ;;  %p8872_p0 = scmp.lt.s32.totalorder %s554_s16, %s554_s16 }
 0x142   : > { %p8873_p3 = scmp.lt.s32.totalorder %s8871_s28, %s8864_s19 }
 0x143   : > { %p8867_p10 = pnand %p8865_p2, %p12063_p8 }
 0x144   : > { %p8874_p5 = por %p8873_p3, %p8872_p0 }
 0x145   : > { %p8868_p11 = pneg %p8867_p10 }
 0x147   : > { %p8875_p9 = pnand %p8874_p5, %p8868_p11 }
 0x149   : > { %8878 = shalt.err (!%p8875_p9)
}
 0x14a   : > { %8089 = dma.hbm_to_vmem [thread:$0]  (!%p12064_p6), %s11931_s10, 48, %s554_s16, [#allocation18]  }
 0x14b   : > { %s9201_s21 = smov [#allocation22]   ;;  %s9202_s23 = smov [#allocation25]  }
 0x14c   : > { %s576_s7 = sshll.u32 %s9201_s21, 4  ;;  %s603_s26 = sshll.u32 %s9202_s23, 4  ;;  %s577_s7 = int_to_ptr.vmem [resolvable:$true] %s576_s7  ;;  %s604_s26 = int_to_ptr.vmem [resolvable:$true] %s603_s26 }
 0x14d   : > { %s8879_s4 = scalar_lea.hbm %s11933_s12, 2048 }
 0x14e   : > { %p8880_p13 = scmp.ne.s32.totalorder %s11933_s12, %s8879_s4  ;;  %p8886_p12 = scmp.lt.u32.totalorder %s8879_s4, %s11933_s12 }
 0x150   : > { %p8882_p1 = pnand %p8880_p13, %p12063_p8 }
 0x152   : > { %p8883_p7 = pneg %p8882_p1 }
 0x154   : > { %p8888_p4 = pnand %p8886_p12, %p8883_p7 }
 0x156   : > { %8891 = shalt.err (!%p8888_p4)
}
 0x157   : > { %s8892_s16 = scalar_lea.vmem %s577_s7, 2048  ;;  %p8900_p0 = scmp.lt.s32.totalorder %s577_s7, %s577_s7 }
 0x158   : > { %p8893_p2 = scmp.ne.s32.totalorder %s577_s7, %s8892_s16  ;;  %p8901_p3 = scmp.lt.s32.totalorder %s8892_s16, %s8892_s16 }
 0x15a   : > { %p8895_p10 = pnand %p8893_p2, %p12063_p8  ;;  %p8902_p5 = por %p8901_p3, %p8900_p0 }
 0x15c   : > { %p8896_p11 = pneg %p8895_p10 }
 0x15e   : > { %p8903_p9 = pnand %p8902_p5, %p8896_p11 }
 0x160   : > { %8906 = shalt.err (!%p8903_p9)
}
 0x161   : > { %s12068_s20 = smov 8   ;;  %s12069_s21 = smov 128  }
 0x162   : > { %8095 = dma.hbm_to_vmem [thread:$0]  (!%p12064_p6), %s11933_s12, 2048, %s577_s7, [#allocation21], %s12069_s21, %s12069_s21, %s12068_s20  }
 0x163   : > { %s12070_s9 = sld [smem:[#allocation84_spill]] }
 0x169   : > { %s8907_s19 = scalar_lea.hbm %s12070_s9, 16 }
 0x16a   : > { %p8908_p13 = scmp.ne.s32.totalorder %s12070_s9, %s8907_s19  ;;  %p8914_p12 = scmp.lt.u32.totalorder %s8907_s19, %s12070_s9 }
 0x16c   : > { %p8910_p1 = pnand %p8908_p13, %p12063_p8 }
 0x16e   : > { %p8911_p7 = pneg %p8910_p1 }
 0x170   : > { %p8916_p4 = pnand %p8914_p12, %p8911_p7 }
 0x172   : > { %8919 = shalt.err (!%p8916_p4)
}
 0x173   : > { %s8920_s23 = scalar_lea.vmem %s604_s26, 16  ;;  %s8927_s7 = scalar_lea.vmem %s604_s26, 32 }
 0x174   : > { %p8921_p2 = scmp.ne.s32.totalorder %s604_s26, %s8920_s23  ;;  %p8928_p0 = scmp.lt.s32.totalorder %s604_s26, %s604_s26 }
 0x175   : > { %p8929_p3 = scmp.lt.s32.totalorder %s8927_s7, %s8920_s23 }
 0x176   : > { %p8923_p10 = pnand %p8921_p2, %p12063_p8 }
 0x177   : > { %p8930_p5 = por %p8929_p3, %p8928_p0 }
 0x178   : > { %p8924_p11 = pneg %p8923_p10 }
 0x17a   : > { %p8931_p9 = pnand %p8930_p5, %p8924_p11 }
 0x17c   : > { %8934 = shalt.err (!%p8931_p9)
}
 0x17d   : > { %8101 = dma.hbm_to_vmem [thread:$0]  (!%p12064_p6), %s12070_s9, 16, %s604_s26, [#allocation24]  }
 0x17e   : > { %s12071_s6 = sshll.u32 %s9183_s27, 13  ;;  %s12072_s22 = sld [smem:[#allocation72_spill]] }
 0x17f   : > { %s12073_s19 = sshll.u32 %s9518_s2, 9  ;;  %s6028_s14 = sshll.u32 %s9518_s2, 3 }
 0x180   : > { %s618_s1 = scalar_lea.vmem [#allocation2], %s12073_s19  ;;  %s615_s16 = scalar_lea.sflag [#allocation3], %s9518_s2 }
 0x181   : > { %s626_s28 = sshll.u32 %s618_s1, 4  ;;  %p12074_p6 = scmp.ne.s32.totalorder %s12059_s30, 0  ;;  %s9693_s28 = int_to_ptr.vmem [resolvable:$true] %s626_s28 }
 0x184   : > { %s9688_s4 = scalar_lea.hbm %s12072_s22, %s12071_s6  ;;  %s8940_s20 = scalar_lea.hbm %s12072_s22, 16384 }
 0x185   : > { %s8935_s23 = scalar_lea.hbm %s9688_s4, 8192  ;;  %p8941_p7 = scmp.lt.u32.totalorder %s9688_s4, %s12072_s22 }
 0x186   : > { %p8936_p8 = scmp.ne.s32.totalorder %s9688_s4, %s8935_s23  ;;  %p8942_p12 = scmp.lt.u32.totalorder %s8940_s20, %s8935_s23 }
 0x187   : > { %p8944_p2 = scmp.lt.u32.totalorder %s8935_s23, %s9688_s4 }
 0x188   : > { %p8938_p13 = pnand %p8936_p8, %p12074_p6  ;;  %p8943_p4 = por %p8942_p12, %p8941_p7 }
 0x18a   : > { %p8939_p1 = pneg %p8938_p13  ;;  %p8945_p10 = por %p8944_p2, %p8943_p4 }
 0x18c   : > { %p8946_p11 = pnand %p8945_p10, %p8939_p1 }
 0x18e   : > { %8949 = shalt.err (!%p8946_p11)
}
 0x18f   : > { %s8950_s18 = scalar_lea.vmem %s9693_s28, 8192  ;;  %s9203_s3 = smov [#allocation2]  }
 0x190   : > { %p8951_p0 = scmp.ne.s32.totalorder %s9693_s28, %s8950_s18  ;;  %s8955_s19 = sshll.u32 %s9203_s3, 4  ;;  %s8956_s19 = int_to_ptr.vmem [resolvable:$false] %s8955_s19 }
 0x191   : > { %s8957_s1 = scalar_lea.vmem %s8956_s19, 16384  ;;  %p8958_p9 = scmp.lt.s32.totalorder %s9693_s28, %s8956_s19 }
 0x192   : > { %p8953_p3 = pnand %p8951_p0, %p12074_p6  ;;  %p8959_p8 = scmp.lt.s32.totalorder %s8957_s1, %s8950_s18 }
 0x194   : > { %p8954_p5 = pneg %p8953_p3  ;;  %p8960_p13 = por %p8959_p8, %p8958_p9 }
 0x196   : > { %p8961_p7 = pnand %p8960_p13, %p8954_p5 }
 0x198   : > { %8964 = shalt.err (!%p8961_p7)
}
 0x199   : > { %p12075_p1 = scmp.ne.s32.totalorder %s12057_s5, 0  ;;  %s6029_s23 = sshll.u32 %s9183_s27, 7 }
 0x19a   : > { %s662_s26 = scalar_lea.vmem [#allocation7], %s6028_s14  ;;  %s12076_s6 = sld [smem:[#allocation74_spill]] }
 0x19b   : > { %8105 = dma.hbm_to_vmem [thread:$0]  (!%p12075_p1), %s9688_s4, 8192, %s9693_s28, %s615_s16, %s12061_s17, %s12061_s17, %s12060_s13  }
 0x19c   : > { %s669_s7 = sshll.u32 %s662_s26, 4  ;;  %s670_s7 = int_to_ptr.vmem [resolvable:$true] %s669_s7 }
 0x1a0   : > { %s667_s18 = scalar_lea.hbm %s12076_s6, %s6029_s23  ;;  %s8970_s8 = scalar_lea.hbm %s12076_s6, 256 }
 0x1a1   : > { %s8965_s3 = scalar_lea.hbm %s667_s18, 128  ;;  %p8971_p10 = scmp.lt.u32.totalorder %s667_s18, %s12076_s6 }
 0x1a2   : > { %p8966_p12 = scmp.ne.s32.totalorder %s667_s18, %s8965_s3  ;;  %p8972_p11 = scmp.lt.u32.totalorder %s8970_s8, %s8965_s3 }
 0x1a3   : > { %p8974_p3 = scmp.lt.u32.totalorder %s8965_s3, %s667_s18 }
 0x1a4   : > { %p8968_p4 = pnand %p8966_p12, %p12074_p6  ;;  %p8973_p0 = por %p8972_p11, %p8971_p10 }
 0x1a6   : > { %p8969_p2 = pneg %p8968_p4  ;;  %p8975_p5 = por %p8974_p3, %p8973_p0 }
 0x1a8   : > { %p8976_p9 = pnand %p8975_p5, %p8969_p2 }
 0x1aa   : > { %8979 = shalt.err (!%p8976_p9)
}
 0x1ab   : > { %s8980_s4 = scalar_lea.vmem %s670_s7, 128  ;;  %s9204_s28 = smov [#allocation7]  }
 0x1ac   : > { %p8981_p8 = scmp.ne.s32.totalorder %s670_s7, %s8980_s4  ;;  %s8985_s16 = sshll.u32 %s9204_s28, 4  ;;  %s8986_s16 = int_to_ptr.vmem [resolvable:$false] %s8985_s16 }
 0x1ad   : > { %s8987_s26 = scalar_lea.vmem %s8986_s16, 256  ;;  %p8988_p12 = scmp.lt.s32.totalorder %s670_s7, %s8986_s16 }
 0x1ae   : > { %p8983_p13 = pnand %p8981_p8, %p12074_p6  ;;  %p8989_p4 = scmp.lt.s32.totalorder %s8987_s26, %s8980_s4 }
 0x1b0   : > { %p8984_p7 = pneg %p8983_p13  ;;  %p8990_p1 = por %p8989_p4, %p8988_p12 }
 0x1b2   : > { %p8991_p10 = pnand %p8990_p1, %p8984_p7 }
 0x1b4   : > { %8994 = shalt.err (!%p8991_p10)
}
 0x1b5   : > { %p12077_p11 = scmp.ne.s32.totalorder %s12057_s5, 0  ;;  %s12078_s21 = sld [smem:[#allocation75_spill]] }
 0x1b6   : > { %s680_s19 = scalar_lea.vmem [#allocation8], %s6028_s14  ;;  %s12079_s13 = sand.u32 1, %s9183_s27  }
 0x1b7   : > { %8111 = dma.hbm_to_vmem [thread:$0]  (!%p12077_p11), %s667_s18, 128, %s670_s7, %s9550_s11  }
 0x1b8   : > { %s687_s1 = sshll.u32 %s680_s19, 4  ;;  %s677_s17 = scalar_lea.sflag [#allocation9], %s12079_s13  ;;  %s688_s1 = int_to_ptr.vmem [resolvable:$true] %s687_s1 }
 0x1bb   : > { %s9748_s3 = scalar_lea.hbm %s12078_s21, %s6029_s23  ;;  %s9000_s23 = scalar_lea.hbm %s12078_s21, 256 }
 0x1bc   : > { %s8995_s4 = scalar_lea.hbm %s9748_s3, 128  ;;  %p9001_p3 = scmp.lt.u32.totalorder %s9748_s3, %s12078_s21 }
 0x1bd   : > { %p8996_p1 = scmp.ne.s32.totalorder %s9748_s3, %s8995_s4  ;;  %p9002_p5 = scmp.lt.u32.totalorder %s9000_s23, %s8995_s4 }
 0x1be   : > { %p9004_p8 = scmp.lt.u32.totalorder %s8995_s4, %s9748_s3 }
 0x1bf   : > { %p8998_p2 = pnand %p8996_p1, %p12074_p6  ;;  %p9003_p9 = por %p9002_p5, %p9001_p3 }
 0x1c1   : > { %p8999_p0 = pneg %p8998_p2  ;;  %p9005_p13 = por %p9004_p8, %p9003_p9 }
 0x1c3   : > { %p9006_p7 = pnand %p9005_p13, %p8999_p0 }
 0x1c5   : > { %9009 = shalt.err (!%p9006_p7)
}
 0x1c6   : > { %s9010_s14 = scalar_lea.vmem %s688_s1, 128  ;;  %s9205_s28 = smov [#allocation8]  }
 0x1c7   : > { %p9011_p12 = scmp.ne.s32.totalorder %s688_s1, %s9010_s14  ;;  %s9015_s16 = sshll.u32 %s9205_s28, 4  ;;  %s9016_s16 = int_to_ptr.vmem [resolvable:$false] %s9015_s16 }
 0x1c8   : > { %s9017_s26 = scalar_lea.vmem %s9016_s16, 256  ;;  %p9018_p1 = scmp.lt.s32.totalorder %s688_s1, %s9016_s16 }
 0x1c9   : > { %p9013_p4 = pnand %p9011_p12, %p12074_p6  ;;  %p9019_p2 = scmp.lt.s32.totalorder %s9017_s26, %s9010_s14 }
 0x1cb   : > { %p9014_p10 = pneg %p9013_p4  ;;  %p9020_p11 = por %p9019_p2, %p9018_p1 }
 0x1cd   : > { %p9021_p3 = pnand %p9020_p11, %p9014_p10 }
 0x1cf   : > { %9024 = shalt.err (!%p9021_p3)
}
 0x1d0   : > { %p12080_p5 = scmp.ne.s32.totalorder %s12057_s5, 0  ;;  %s12081_s8 = sld [smem:[#allocation42_spill]] }
 0x1d2   : > { %8114 = dma.hbm_to_vmem [thread:$0]  (!%p12080_p5), %s9748_s3, 128, %s688_s1, %s677_s17  }
 0x1d6   : > { %p12082_p0 = scmp.ne.s32.totalorder %s12081_s8, 0 }
 0x1d8   : > { %696 = sbr.rel (%p12082_p0) target bundleno = 4373 (0x1115), region = 80 }
 0x1df   : > { %s9774_s30 = sand.u32 1, %s9175_s25   ;;  %p12083_p6 = scmp.ne.s32.totalorder %s12053_s15, 0 }
 0x1e0   : > { %s6033_s20 = sshll.u32 %s9774_s30, 9  ;;  %s699_s19 = scalar_lea.sflag [#allocation3], %s9774_s30 }
 0x1e1   : > { %s9778_s13 = scalar_lea.vmem [#allocation2], %s6033_s20 }
 0x1e2   : > { %9126 = dma.done.wait (%p12083_p6), %s699_s19, 8192  }
 0x1e3   : > { %9128 = vsyncadd (%p12083_p6), %s699_s19, 4294959104  ;;  %s9785_s5 = sand.u32 1, %s9326_s0   ;;  %s9788_s1 = scalar_lea.vmem [#allocation5], %s6033_s20 }
 0x1e4   : > { %s708_s3 = scalar_lea.sflag [#allocation6], %s9785_s5 }
 0x1e5   : > { %9130 = dma.done.wait (%p12083_p6), %s708_s3, 8320  }
 0x1e6   : > { %9132 = vsyncadd (%p12083_p6), %s708_s3, 4294958976  ;;  %s9795_s17 = sshll.u32 %s9774_s30, 3  ;;  %s726_s11 = scalar_lea.sflag [#allocation9], %s9785_s5 }
 0x1e7   : > { %s720_s4 = scalar_lea.vmem [#allocation7], %s9795_s17  ;;  %s729_s7 = scalar_lea.vmem [#allocation8], %s9795_s17 }
 0x1e8   : > { %9134 = dma.done.wait (%p12083_p6), %s726_s11, 128  }
 0x1e9   : > { %9136 = vsyncadd (%p12083_p6), %s726_s11, 4294967168  ;;  %p12084_p11 = scmp.eq.s32.totalorder %s9326_s0, 0 }
 0x1eb   : > { %9138 = dma.done.wait (%p12084_p11), [#allocation9], 16   ;;  %p12085_p9 = pmov %p12084_p11 }
 0x1ed   : > { %9140 = vsyncadd (%p12085_p9), [#allocation9], 4294967280  ;;  %p12086_p8 = pmov %p12085_p9 }
 0x1ef   : > { %9142 = dma.done.wait (%p12086_p8), [#allocation12], 2048   ;;  %p12087_p13 = pmov %p12086_p8 }
 0x1f0   : > { %p12088_p7 = pmov %p12086_p8 }
 0x1f1   : > { %9144 = vsyncadd (%p12087_p13), [#allocation12], 4294965248 }
 0x1f2   : > { %9146 = dma.done.wait (%p12088_p7), [#allocation15], 6144   ;;  %p12089_p12 = pmov %p12088_p7 }
 0x1f3   : > { %p12090_p4 = pmov %p12088_p7 }
 0x1f4   : > { %9148 = vsyncadd (%p12089_p12), [#allocation15], 4294961152 }
 0x1f5   : > { %9150 = dma.done.wait (%p12090_p4), [#allocation18], 96   ;;  %p12091_p10 = pmov %p12090_p4 }
 0x1f6   : > { %p12092_p1 = pmov %p12090_p4 }
 0x1f7   : > { %9152 = vsyncadd (%p12091_p10), [#allocation18], 4294967200 }
 0x1f8   : > { %9154 = dma.done.wait (%p12092_p1), [#allocation21], 4096   ;;  %p12093_p2 = pmov %p12092_p1 }
 0x1f9   : > { %p12094_p3 = pmov %p12092_p1 }
 0x1fa   : > { %9156 = vsyncadd (%p12093_p2), [#allocation21], 4294963200 }
 0x1fb   : > { %9158 = dma.done.wait (%p12094_p3), [#allocation24], 2064   ;;  %p12095_p5 = pmov %p12092_p1 }
 0x1fc   : > { %v11997_v0 = vmov 0.0   ;;  %vm9207_vm0 = vmmov 0   ;;  %v8204_v1 = vld [vmem:[%s9788_s1] sm:$0xff]   ;;  %v8206_v3 = vld [vmem:[%s9788_s1 + $0x8] sm:$0xff]   ;;  %v8208_v5 = vld [vmem:[%s9788_s1 + $0x10] sm:$0xff]   ;;  %vm1909_vm2 = vcmask 1041408  }
 0x1fd   : > { %9160 = vsyncadd (%p12095_p5), [#allocation24], 4294965232  ;;  %6785 = vmatprep.subr.bf16.mxu0 %v11997_v0  ;;  %6805 = vmatprep.subr.bf16.mxu1 %v11997_v0  ;;  %v8205_v2 = vld [vmem:[%s9788_s1 + $0x40] sm:$0xff]   ;;  %v8207_v4 = vld [vmem:[%s9788_s1 + $0x48] sm:$0xff]   ;;  %vm2367_vm3 = vcmask 1041409   ;;  %vm2370_vm4 = vcmask 1042434  }
 0x1fe   : > { %6801 = vmatprep.mubr.msk.bf16.mxu0 %vm9207_vm0, %v11997_v0  ;;  %6821 = vmatprep.mubr.msk.bf16.mxu1 %vm9207_vm0, %v11997_v0  ;;  %v8209_v6 = vld [vmem:[%s9788_s1 + $0x50] sm:$0xff]   ;;  %v9847_v7 = vld [vmem:[%s9788_s1 + $0x18] sm:$0xff]   ;;  %v9857_v9 = vld [vmem:[%s9788_s1 + $0x20] sm:$0xff]   ;;  %vm2373_vm5 = vcmask 1043459   ;;  %vm2376_vm6 = vcmask 1044484   ;;  %vm2379_vm7 = vcmask 1045509  }
 0x1ff   : > { %6786 = vmatpush3.bf16.xpose.msra.mxu0 %v8204_v1  ;;  %6806 = vmatpush3.bf16.xpose.msra.mxu1 %v8205_v2  ;;  %v9850_v8 = vld [vmem:[%s9788_s1 + $0x58] sm:$0xff]   ;;  %v9860_v10 = vld [vmem:[%s9788_s1 + $0x60] sm:$0xff]   ;;  %v9867_v11 = vld [vmem:[%s9788_s1 + $0x28] sm:$0xff]   ;;  %vm2382_vm8 = vcmask 1046534   ;;  %vm2385_vm9 = vcmask 1047559   ;;  %vm3321_vm11 = vcmask 1040384  }
 0x200   : > { %6787 = vmatprep.subr.bf16.mxu0 %v11997_v0  ;;  %6807 = vmatprep.subr.bf16.mxu1 %v11997_v0  ;;  %v9870_v12 = vld [vmem:[%s9788_s1 + $0x68] sm:$0xff]   ;;  %v9877_v13 = vld [vmem:[%s9788_s1 + $0x30] sm:$0xff]   ;;  %v9887_v15 = vld [vmem:[%s9788_s1 + $0x38] sm:$0xff]   ;;  %s834_s15 = scalar_lea.vmem [#allocation26], %s9795_s17  ;;  %s841_s23 = scalar_lea.vmem [#allocation27], %s9795_s17 }
 0x201   : > { %v9880_v14 = vld [vmem:[%s9788_s1 + $0x70] sm:$0xff]   ;;  %v9890_v16 = vld [vmem:[%s9788_s1 + $0x78] sm:$0xff]   ;;  %v9895_v17 = vld [vmem:[#allocation10] sm:$0x1]  ;;  %s11817_s18 = sshll.u32 %s9326_s0, 7  ;;  %s12186_s28 = sld [smem:[#allocation86_spill]] }
 0x202   : > { %v8220_v18 = vld [vmem:[%s9788_s1 + $0x80] sm:$0xff]   ;;  %v8222_v20 = vld [vmem:[%s9788_s1 + $0x88] sm:$0xff]   ;;  %v9913_v22 = vld [vmem:[%s9788_s1 + $0x90] sm:$0xff]   ;;  %s5692_s26 = sshll.u32 %s841_s23, 4  ;;  %s5661_s8 = scalar_lea.sflag [#allocation28], %s9785_s5  ;;  %s5693_s26 = int_to_ptr.vmem [resolvable:$true] %s5692_s26 }
 0x203   : > { %v8221_v19 = vld [vmem:[%s9788_s1 + $0xc0] sm:$0xff]   ;;  %v8223_v21 = vld [vmem:[%s9788_s1 + $0xc8] sm:$0xff]   ;;  %v9916_v23 = vld [vmem:[%s9788_s1 + $0xd0] sm:$0xff]   ;;  %s9025_s20 = scalar_lea.vmem %s5693_s26, 128  ;;  %p12187_p6 = scmp.ne.s32.totalorder %s12054_s29, 0 }
 0x204   : > { %v9923_v24 = vld [vmem:[%s9788_s1 + $0x98] sm:$0xff]   ;;  %v9933_v26 = vld [vmem:[%s9788_s1 + $0xa0] sm:$0xff]   ;;  %v9943_v28 = vld [vmem:[%s9788_s1 + $0xa8] sm:$0xff]   ;;  %p9026_p0 = scmp.ne.s32.totalorder %s5693_s26, %s9025_s20  ;;  %s9212_s19 = smov [#allocation27]  }
 0x205   : > { %v9926_v25 = vld [vmem:[%s9788_s1 + $0xd8] sm:$0xff]   ;;  %v9936_v27 = vld [vmem:[%s9788_s1 + $0xe0] sm:$0xff]   ;;  %v9946_v29 = vld [vmem:[%s9788_s1 + $0xe8] sm:$0xff]  }
 0x206   : > { %v9953_v30 = vld [vmem:[%s9788_s1 + $0xb0] sm:$0xff]   ;;  %v9963_v32 = vld [vmem:[%s9788_s1 + $0xb8] sm:$0xff]   ;;  %v9973_v34 = vld [vmem:[%s9788_s1 + $0x100] sm:$0xff]   ;;  %p9027_p11 = pnand %p9026_p0, %p12187_p6 }
 0x207   : > { %6788 = vmatpush3.bf16.xpose.msra.mxu0 %v8206_v3  ;;  %6808 = vmatpush3.bf16.xpose.msra.mxu1 %v8207_v4  ;;  %v9956_v31 = vld [vmem:[%s9788_s1 + $0xf0] sm:$0xff]   ;;  %v9966_v33 = vld [vmem:[%s9788_s1 + $0xf8] sm:$0xff]   ;;  %v9976_v35 = vld [vmem:[%s9788_s1 + $0x140] sm:$0xff]   ;;  %v9208_v3 = vmov 1966171168   ;;  %s11823_s16 = scalar_lea.hbm %s12186_s28, %s11817_s18 }
 0x208   : > { %6789 = vmatprep.subr.bf16.mxu0 %v11997_v0  ;;  %6809 = vmatprep.subr.bf16.mxu1 %v11997_v0  ;;  %v9989_v36 = vld [vmem:[%s9788_s1 + $0x108] sm:$0xff]   ;;  %v9999_v38 = vld [vmem:[%s9788_s1 + $0x110] sm:$0xff]   ;;  %v10009_v40 = vld [vmem:[%s9788_s1 + $0x118] sm:$0xff]   ;;  %v1118_v4 = vunpack.c.l.s4 %v9208_v3  ;;  %p9028_p9 = pneg %p9027_p11 }
 0x209   : > { %v9992_v37 = vld [vmem:[%s9788_s1 + $0x148] sm:$0xff]   ;;  %v10002_v39 = vld [vmem:[%s9788_s1 + $0x150] sm:$0xff]   ;;  %v10012_v41 = vld [vmem:[%s9788_s1 + $0x158] sm:$0xff]  }
 0x20a   : > { %v10019_v42 = vld [vmem:[%s9788_s1 + $0x120] sm:$0xff]   ;;  %v10029_v44 = vld [vmem:[%s9788_s1 + $0x128] sm:$0xff]   ;;  %v10039_v46 = vld [vmem:[%s9788_s1 + $0x130] sm:$0xff]  }
 0x20b   : > { %v10022_v43 = vld [vmem:[%s9788_s1 + $0x160] sm:$0xff]   ;;  %v10032_v45 = vld [vmem:[%s9788_s1 + $0x168] sm:$0xff]   ;;  %v10042_v47 = vld [vmem:[%s9788_s1 + $0x170] sm:$0xff]  }
 0x20c   : > { %v10049_v48 = vld [vmem:[%s9788_s1 + $0x138] sm:$0xff]   ;;  %v10059_v50 = vld [vmem:[%s9788_s1 + $0x180] sm:$0xff]   ;;  %v10075_v52 = vld [vmem:[%s9788_s1 + $0x188] sm:$0xff]  }
 0x20d   : > { %v10052_v49 = vld [vmem:[%s9788_s1 + $0x178] sm:$0xff]   ;;  %v10062_v51 = vld [vmem:[%s9788_s1 + $0x1c0] sm:$0xff]   ;;  %v10078_v53 = vld [vmem:[%s9788_s1 + $0x1c8] sm:$0xff]  }
 0x20e   : > { %v10085_v54 = vld [vmem:[%s9788_s1 + $0x190] sm:$0xff]   ;;  %v10095_v56 = vld [vmem:[%s9788_s1 + $0x198] sm:$0xff]   ;;  %v10105_v58 = vld [vmem:[%s9788_s1 + $0x1a0] sm:$0xff]  }
 0x20f   : > { %6790 = vmatpush3.bf16.xpose.msra.mxu0 %v8208_v5  ;;  %6810 = vmatpush3.bf16.xpose.msra.mxu1 %v8209_v6  ;;  %v10088_v55 = vld [vmem:[%s9788_s1 + $0x1d0] sm:$0xff]   ;;  %v10098_v57 = vld [vmem:[%s9788_s1 + $0x1d8] sm:$0xff]   ;;  %v10108_v59 = vld [vmem:[%s9788_s1 + $0x1e0] sm:$0xff]   ;;  %v1120_v5 = vlaneseq }
 0x210   : > { %6791 = vmatprep.subr.bf16.mxu0 %v11997_v0  ;;  %6811 = vmatprep.subr.bf16.mxu1 %v11997_v0  ;;  %v10115_v60 = vld [vmem:[%s9788_s1 + $0x1a8] sm:$0xff]   ;;  %v10125_v62 = vld [vmem:[%s9788_s1 + $0x1b0] sm:$0xff]   ;;  %v10135_v1 = vld [vmem:[%s9788_s1 + $0x1b8] sm:$0xff]  }
 0x211   : > { %v10118_v61 = vld [vmem:[%s9788_s1 + $0x1e8] sm:$0xff]   ;;  %12097 = vst [vmem:[#allocation47_spill] sm:$0xff] %v10125_v62  ;;  %v10128_v63 = vld [vmem:[%s9788_s1 + $0x1f0] sm:$0xff]   ;;  %12099 = vst [vmem:[#allocation49_spill] sm:$0xff] %v10135_v1 }
 0x212   : > { %12096 = vst [vmem:[#allocation46_spill] sm:$0xff] %v10118_v61  ;;  %12098 = vst [vmem:[#allocation48_spill] sm:$0xff] %v10128_v63  ;;  %v10138_v2 = vld [vmem:[%s9788_s1 + $0x1f8] sm:$0xff]   ;;  %v8527_v3 = vld [vmem:[%s9788_s1 + $0x40] sm:$0xff]  }
 0x213   : > { %12100 = vst [vmem:[#allocation50_spill] sm:$0xff] %v10138_v2  ;;  %v1111_v6 = vld [vmem:[%s729_s7] sm:$0xff] }
 0x214   : > { %vm1112_vm1 = vcmp.gt.f32.partialorder %v1111_v6, 0.0 }
 0x217   : > { %6792 = vmatpush3.bf16.xpose.msra.mxu0 %v9847_v7  ;;  %6812 = vmatpush3.bf16.xpose.msra.mxu1 %v9850_v8 }
 0x218   : > { %6793 = vmatprep.subr.bf16.mxu0 %v11997_v0  ;;  %6813 = vmatprep.subr.bf16.mxu1 %v11997_v0 }
 0x21f   : > { %6794 = vmatpush3.bf16.xpose.msra.mxu0 %v9857_v9  ;;  %6814 = vmatpush3.bf16.xpose.msra.mxu1 %v9860_v10 }
 0x220   : > { %6795 = vmatprep.subr.bf16.mxu0 %v11997_v0  ;;  %6815 = vmatprep.subr.bf16.mxu1 %v11997_v0 }
 0x227   : > { %6796 = vmatpush3.bf16.xpose.msra.mxu0 %v9867_v11  ;;  %6816 = vmatpush3.bf16.xpose.msra.mxu1 %v9870_v12 }
 0x228   : > { %6797 = vmatprep.subr.bf16.mxu0 %v11997_v0  ;;  %6817 = vmatprep.subr.bf16.mxu1 %v11997_v0 }
 0x22f   : > { %6798 = vmatpush3.bf16.xpose.msra.mxu0 %v9877_v13  ;;  %6818 = vmatpush3.bf16.xpose.msra.mxu1 %v9880_v14 }
 0x230   : > { %6799 = vmatprep.subr.bf16.mxu0 %v11997_v0  ;;  %6819 = vmatprep.subr.bf16.mxu1 %v11997_v0 }
 0x237   : > { %6800 = vmatpush3.bf16.xpose.msra.mxu0 %v9887_v15  ;;  %6820 = vmatpush3.bf16.xpose.msra.mxu1 %v9890_v16 }
 0x238   : > { %6825 = vmatprep.subr.bf16.mxu0 %v11997_v0  ;;  %6845 = vmatprep.subr.bf16.mxu1 %v11997_v0 }
 0x23e   : > { %6802 = vmatmul.mubr.bf16.vlgmr.msra.gmra.mrb[0].mxu0 %v9895_v17  ;;  %6822 = vmatmul.mubr.bf16.vlgmr.msra.gmra.mrb[0].mxu1 %v9895_v17 }
 0x23f   : > { %6826 = vmatpush3.bf16.xpose.msra.mxu0 %v8220_v18  ;;  %6846 = vmatpush3.bf16.xpose.msra.mxu1 %v8221_v19  ;;  %v1119_v18 = vunpack.c.0.s8 %v1118_v4  ;;  %v10146_v19 = vshrl.u32 %v1120_v5, 7  ;;  %v11977_v4 = vmov -1e+30  }
 0x240   : > { %6827 = vmatprep.subr.bf16.mxu0 %v11997_v0  ;;  %6847 = vmatprep.subr.bf16.mxu1 %v11997_v0  ;;  %v10157_v5 = vsel %vm1112_vm1, 0.0, %v11977_v4  ;;  %v8531_v4 = vld [vmem:[%s9788_s1 + $0x50] sm:$0xff]  }
 0x241   : > { %6841 = vmatprep.mubr.msk.bf16.mxu0 %vm9207_vm0, %v11997_v0  ;;  %6861 = vmatprep.mubr.msk.bf16.mxu1 %vm9207_vm0, %v11997_v0  ;;  %12101 = vst [vmem:[#allocation51_spill] sm:$0xff] %v10146_v19 }
 0x247   : > { %6828 = vmatpush3.bf16.xpose.msra.mxu0 %v8222_v20  ;;  %6848 = vmatpush3.bf16.xpose.msra.mxu1 %v8223_v21  ;;  %v8526_v20 = vld [vmem:[%s9788_s1] sm:$0xff]   ;;  %v10152_v21 = vsub.s32 %v1119_v18, %v10146_v19  ;;  %v8529_v18 = vld [vmem:[%s9788_s1 + $0x48] sm:$0xff]  }
 0x248   : > { %6829 = vmatprep.subr.bf16.mxu0 %v11997_v0  ;;  %6849 = vmatprep.subr.bf16.mxu1 %v11997_v0 }
 0x249   : > { %v1123_v6 = vrot.slane %v10157_v5, %v10152_v21 }
 0x24f   : > { %6830 = vmatpush3.bf16.xpose.msra.mxu0 %v9913_v22  ;;  %6850 = vmatpush3.bf16.xpose.msra.mxu1 %v9916_v23 }
 0x250   : > { %6831 = vmatprep.subr.bf16.mxu0 %v11997_v0  ;;  %6851 = vmatprep.subr.bf16.mxu1 %v11997_v0 }
 0x257   : > { %6832 = vmatpush3.bf16.xpose.msra.mxu0 %v9923_v24  ;;  %6852 = vmatpush3.bf16.xpose.msra.mxu1 %v9926_v25 }
 0x258   : > { %6833 = vmatprep.subr.bf16.mxu0 %v11997_v0  ;;  %6853 = vmatprep.subr.bf16.mxu1 %v11997_v0 }
 0x25f   : > { %6834 = vmatpush3.bf16.xpose.msra.mxu0 %v9933_v26  ;;  %6854 = vmatpush3.bf16.xpose.msra.mxu1 %v9936_v27 }
 0x260   : > { %6835 = vmatprep.subr.bf16.mxu0 %v11997_v0  ;;  %6855 = vmatprep.subr.bf16.mxu1 %v11997_v0 }
 0x267   : > { %6836 = vmatpush3.bf16.xpose.msra.mxu0 %v9943_v28  ;;  %6856 = vmatpush3.bf16.xpose.msra.mxu1 %v9946_v29 }
 0x268   : > { %6837 = vmatprep.subr.bf16.mxu0 %v11997_v0  ;;  %6857 = vmatprep.subr.bf16.mxu1 %v11997_v0 }
 0x26f   : > { %6838 = vmatpush3.bf16.xpose.msra.mxu0 %v9953_v30  ;;  %6858 = vmatpush3.bf16.xpose.msra.mxu1 %v9956_v31 }
 0x270   : > { %6839 = vmatprep.subr.bf16.mxu0 %v11997_v0  ;;  %6859 = vmatprep.subr.bf16.mxu1 %v11997_v0 }
 0x277   : > { %6840 = vmatpush3.bf16.xpose.msra.mxu0 %v9963_v32  ;;  %6860 = vmatpush3.bf16.xpose.msra.mxu1 %v9966_v33 }
 0x278   : > { %6865 = vmatprep.subr.bf16.mxu0 %v11997_v0  ;;  %6885 = vmatprep.subr.bf16.mxu1 %v11997_v0 }
 0x27e   : > { %6842 = vmatmul.mubr.bf16.vlgmr.msra.gmra.mrb[4].mxu0 %v9895_v17  ;;  %6862 = vmatmul.mubr.bf16.vlgmr.msra.gmra.mrb[4].mxu1 %v9895_v17 }
 0x27f   : > { %6866 = vmatpush3.bf16.xpose.msra.mxu0 %v9973_v34  ;;  %6886 = vmatpush3.bf16.xpose.msra.mxu1 %v9976_v35 }
 0x280   : > { %6867 = vmatprep.subr.bf16.mxu0 %v11997_v0  ;;  %6887 = vmatprep.subr.bf16.mxu1 %v11997_v0 }
 0x281   : > { %6881 = vmatprep.mubr.msk.bf16.mxu0 %vm9207_vm0, %v11997_v0  ;;  %6901 = vmatprep.mubr.msk.bf16.mxu1 %vm9207_vm0, %v11997_v0 }
 0x287   : > { %6868 = vmatpush3.bf16.xpose.msra.mxu0 %v9989_v36  ;;  %6888 = vmatpush3.bf16.xpose.msra.mxu1 %v9992_v37 }
 0x288   : > { %6869 = vmatprep.subr.bf16.mxu0 %v11997_v0  ;;  %6889 = vmatprep.subr.bf16.mxu1 %v11997_v0 }
 0x28f   : > { %6870 = vmatpush3.bf16.xpose.msra.mxu0 %v9999_v38  ;;  %6890 = vmatpush3.bf16.xpose.msra.mxu1 %v10002_v39 }
 0x290   : > { %6871 = vmatprep.subr.bf16.mxu0 %v11997_v0  ;;  %6891 = vmatprep.subr.bf16.mxu1 %v11997_v0 }
 0x297   : > { %6872 = vmatpush3.bf16.xpose.msra.mxu0 %v10009_v40  ;;  %6892 = vmatpush3.bf16.xpose.msra.mxu1 %v10012_v41 }
 0x298   : > { %6873 = vmatprep.subr.bf16.mxu0 %v11997_v0  ;;  %6893 = vmatprep.subr.bf16.mxu1 %v11997_v0 }
 0x29f   : > { %6874 = vmatpush3.bf16.xpose.msra.mxu0 %v10019_v42  ;;  %6894 = vmatpush3.bf16.xpose.msra.mxu1 %v10022_v43 }
 0x2a0   : > { %6875 = vmatprep.subr.bf16.mxu0 %v11997_v0  ;;  %6895 = vmatprep.subr.bf16.mxu1 %v11997_v0 }
 0x2a7   : > { %6876 = vmatpush3.bf16.xpose.msra.mxu0 %v10029_v44  ;;  %6896 = vmatpush3.bf16.xpose.msra.mxu1 %v10032_v45 }
 0x2a8   : > { %6877 = vmatprep.subr.bf16.mxu0 %v11997_v0  ;;  %6897 = vmatprep.subr.bf16.mxu1 %v11997_v0 }
 0x2af   : > { %6878 = vmatpush3.bf16.xpose.msra.mxu0 %v10039_v46  ;;  %6898 = vmatpush3.bf16.xpose.msra.mxu1 %v10042_v47 }
 0x2b0   : > { %6879 = vmatprep.subr.bf16.mxu0 %v11997_v0  ;;  %6899 = vmatprep.subr.bf16.mxu1 %v11997_v0 }
 0x2b7   : > { %6880 = vmatpush3.bf16.xpose.msra.mxu0 %v10049_v48  ;;  %6900 = vmatpush3.bf16.xpose.msra.mxu1 %v10052_v49 }
 0x2b8   : > { %6905 = vmatprep.subr.bf16.mxu0 %v11997_v0  ;;  %6925 = vmatprep.subr.bf16.mxu1 %v11997_v0 }
 0x2be   : > { %6882 = vmatmul.mubr.bf16.vlgmr.msra.gmra.mrb[8].mxu0 %v9895_v17  ;;  %6902 = vmatmul.mubr.bf16.vlgmr.msra.gmra.mrb[8].mxu1 %v9895_v17 }
 0x2bf   : > { %6906 = vmatpush3.bf16.xpose.msra.mxu0 %v10059_v50  ;;  %6926 = vmatpush3.bf16.xpose.msra.mxu1 %v10062_v51 }
 0x2c0   : > { %6907 = vmatprep.subr.bf16.mxu0 %v11997_v0  ;;  %6927 = vmatprep.subr.bf16.mxu1 %v11997_v0 }
 0x2c1   : > { %6921 = vmatprep.mubr.msk.bf16.mxu0 %vm9207_vm0, %v11997_v0  ;;  %6941 = vmatprep.mubr.msk.bf16.mxu1 %vm9207_vm0, %v11997_v0 }
 0x2c7   : > { %6908 = vmatpush3.bf16.xpose.msra.mxu0 %v10075_v52  ;;  %6928 = vmatpush3.bf16.xpose.msra.mxu1 %v10078_v53 }
 0x2c8   : > { %6909 = vmatprep.subr.bf16.mxu0 %v11997_v0  ;;  %6929 = vmatprep.subr.bf16.mxu1 %v11997_v0 }
 0x2cf   : > { %6910 = vmatpush3.bf16.xpose.msra.mxu0 %v10085_v54  ;;  %6930 = vmatpush3.bf16.xpose.msra.mxu1 %v10088_v55 }
 0x2d0   : > { %6911 = vmatprep.subr.bf16.mxu0 %v11997_v0  ;;  %6931 = vmatprep.subr.bf16.mxu1 %v11997_v0 }
 0x2d7   : > { %6912 = vmatpush3.bf16.xpose.msra.mxu0 %v10095_v56  ;;  %6932 = vmatpush3.bf16.xpose.msra.mxu1 %v10098_v57 }
 0x2d8   : > { %6913 = vmatprep.subr.bf16.mxu0 %v11997_v0  ;;  %6933 = vmatprep.subr.bf16.mxu1 %v11997_v0 }
 0x2df   : > { %6914 = vmatpush3.bf16.xpose.msra.mxu0 %v10105_v58  ;;  %6934 = vmatpush3.bf16.xpose.msra.mxu1 %v10108_v59 }
 0x2e0   : > { %6915 = vmatprep.subr.bf16.mxu0 %v11997_v0  ;;  %6935 = vmatprep.subr.bf16.mxu1 %v11997_v0 }
 0x2e7   : > { %6916 = vmatpush3.bf16.xpose.msra.mxu0 %v10115_v60  ;;  %6936 = vmatpush3.bf16.xpose.msra.mxu1 %v10118_v61 }
 0x2e8   : > { %6917 = vmatprep.subr.bf16.mxu0 %v11997_v0  ;;  %6937 = vmatprep.subr.bf16.mxu1 %v11997_v0 }
 0x2ef   : > { %6918 = vmatpush3.bf16.xpose.msra.mxu0 %v10125_v62  ;;  %6938 = vmatpush3.bf16.xpose.msra.mxu1 %v10128_v63 }
 0x2f0   : > { %6919 = vmatprep.subr.bf16.mxu0 %v11997_v0  ;;  %6939 = vmatprep.subr.bf16.mxu1 %v11997_v0 }
 0x2f7   : > { %6920 = vmatpush3.bf16.xpose.msra.mxu0 %v10135_v1  ;;  %6940 = vmatpush3.bf16.xpose.msra.mxu1 %v10138_v2  ;;  %v10176_v2 = vsub.s32 0, %v10146_v19 }
 0x2f8   : > { %6945 = vmatprep.subr.bf16.mxu0 %v11997_v0  ;;  %6965 = vmatprep.subr.bf16.mxu1 %v11997_v0 }
 0x2fe   : > { %6922 = vmatmul.mubr.bf16.vlgmr.msra.gmra.mrb[12].mxu0 %v9895_v17  ;;  %6942 = vmatmul.mubr.bf16.vlgmr.msra.gmra.mrb[12].mxu1 %v9895_v17  ;;  %v8528_v17 = vld [vmem:[%s9788_s1 + $0x8] sm:$0xff]  }
 0x2ff   : > { %6946 = vmatpush3.bf16.msra.mxu0 %v8526_v20  ;;  %6966 = vmatpush3.bf16.msra.mxu1 %v8527_v3  ;;  %v8530_v20 = vld [vmem:[%s9788_s1 + $0x10] sm:$0xff]   ;;  %v1131_v3 = vcombine.high %v1123_v6, %v1123_v6 }
 0x300   : > { %6947 = vmatprep.subr.bf16.mxu0 %v11997_v0  ;;  %6967 = vmatprep.subr.bf16.mxu1 %v11997_v0 }
 0x301   : > { %6961 = vmatprep.mubr.msk.bf16.mxu0 %vm9207_vm0, %v11997_v0  ;;  %6981 = vmatprep.mubr.msk.bf16.mxu1 %vm9207_vm0, %v11997_v0 }
 0x303   : > { %6948 = vmatpush3.bf16.msra.mxu0 %v8528_v17  ;;  %6968 = vmatpush3.bf16.msra.mxu1 %v8529_v18  ;;  %v1139_v17 = vrot.slane %v1123_v6, %v10152_v21  ;;  %v1153_v18 = vrot.slane %v1131_v3, %v10152_v21 }
 0x304   : > { %6949 = vmatprep.subr.bf16.mxu0 %v11997_v0  ;;  %6969 = vmatprep.subr.bf16.mxu1 %v11997_v0 }
 0x307   : > { %6950 = vmatpush3.bf16.msra.mxu0 %v8530_v20  ;;  %6970 = vmatpush3.bf16.msra.mxu1 %v8531_v4  ;;  %v1168_v20 = vrot.slane %v1139_v17, %v10176_v2  ;;  %v1172_v4 = vrot.slane %v1153_v18, %v10176_v2 }
 0x308   : > { %6951 = vmatprep.subr.bf16.mxu0 %v11997_v0  ;;  %6971 = vmatprep.subr.bf16.mxu1 %v11997_v0 }
 0x30b   : > { %6952 = vmatpush3.bf16.msra.mxu0 %v9847_v7  ;;  %6972 = vmatpush3.bf16.msra.mxu1 %v9850_v8 }
 0x30c   : > { %6953 = vmatprep.subr.bf16.mxu0 %v11997_v0  ;;  %6973 = vmatprep.subr.bf16.mxu1 %v11997_v0 }
 0x30f   : > { %6954 = vmatpush3.bf16.msra.mxu0 %v9857_v9  ;;  %6974 = vmatpush3.bf16.msra.mxu1 %v9860_v10 }
 0x310   : > { %6955 = vmatprep.subr.bf16.mxu0 %v11997_v0  ;;  %6975 = vmatprep.subr.bf16.mxu1 %v11997_v0 }
 0x311   : > { %v1287_v6 = vpop.f32.mrb[0].mxu0  ;;  %v1375_v3 = vpop.f32.mrb[0].mxu1 }
 0x312   : > { %v10189_v7 = vadd.f32 %v1287_v6, %v1168_v20  ;;  %v6803_v8 = vpop.f32.mrb[1].mxu0  ;;  %v6823_v19 = vpop.f32.mrb[1].mxu1  ;;  %v10192_v63 = vadd.f32 %v1375_v3, %v1172_v4 }
 0x313   : > { %v1290_v1 = vpop.f32.mrb[2].mxu0  ;;  %6956 = vmatpush3.bf16.msra.mxu0 %v9867_v11  ;;  %v1378_v9 = vpop.f32.mrb[2].mxu1  ;;  %6976 = vmatpush3.bf16.msra.mxu1 %v9870_v12  ;;  %v1161_v12 = vcombine.high %v1139_v17, %v1139_v17 }
 0x314   : > { %v6804_v62 = vpop.f32.mrb[3].mxu0  ;;  %v1910_v61 = vsel %vm1909_vm2, %v10189_v7, -inf  ;;  %6957 = vmatprep.subr.bf16.mxu0 %v11997_v0  ;;  %v6824_v10 = vpop.f32.mrb[3].mxu1  ;;  %6977 = vmatprep.subr.bf16.mxu1 %v11997_v0  ;;  %v1913_v11 = vsel %vm1909_vm2, %v10192_v63, -inf  ;;  %v1116_v9 = vcombine.high %v10157_v5, %v10157_v5 }
 0x315   : > { %1911 = vmax.xlane.f32.xlu0 %v1910_v61  ;;  %v1176_v61 = vrot.slane %v1161_v12, %v10176_v2 }
 0x316   : > { %v1130_v10 = vrot.slane %v1116_v9, %v10152_v21 }
 0x317   : > { %6958 = vmatpush3.bf16.msra.mxu0 %v9877_v13  ;;  %6978 = vmatpush3.bf16.msra.mxu1 %v9880_v14  ;;  %v1163_v13 = vcombine.high %v1153_v18, %v1153_v18 }
 0x318   : > { %6959 = vmatprep.subr.bf16.mxu0 %v11997_v0  ;;  %6979 = vmatprep.subr.bf16.mxu1 %v11997_v0  ;;  %v1146_v12 = vrot.slane %v1130_v10, %v10152_v21 }
 0x319   : > { %1914 = vmax.xlane.f32.xlu0 %v1913_v11  ;;  %v1180_v62 = vrot.slane %v1163_v13, %v10176_v2  ;;  %v1132_v11 = vcombine.high %v1130_v10, %v1130_v10 }
 0x31b   : > { %6960 = vmatpush3.bf16.msra.mxu0 %v9887_v15  ;;  %6980 = vmatpush3.bf16.msra.mxu1 %v9890_v16  ;;  %v1160_v13 = vrot.slane %v1132_v11, %v10152_v21 }
 0x31c   : > { %6985 = vmatprep.subr.bf16.mxu0 %v11997_v0  ;;  %7005 = vmatprep.subr.bf16.mxu1 %v11997_v0 }
 0x351   : > { %v1463_v1 = vpop.f32.mrb[4].mxu0  ;;  %v1551_v14 = vpop.f32.mrb[4].mxu1 }
 0x352   : > { %v10211_v19 = vadd.f32 %v1463_v1, %v1176_v61  ;;  %v6843_v20 = vpop.f32.mrb[5].mxu0  ;;  %v6863_v4 = vpop.f32.mrb[5].mxu1  ;;  %v10213_v15 = vadd.f32 %v1551_v14, %v1180_v62  ;;  %v1184_v61 = vrot.slane %v1146_v12, %v10176_v2  ;;  %v1188_v62 = vrot.slane %v1160_v13, %v10176_v2 }
 0x353   : > { %v1466_v6 = vpop.f32.mrb[6].mxu0  ;;  %v1554_v16 = vpop.f32.mrb[6].mxu1 }
 0x354   : > { %v6844_v3 = vpop.f32.mrb[7].mxu0  ;;  %v1916_v8 = vsel %vm1909_vm2, %v10211_v19, -inf  ;;  %v6864_v17 = vpop.f32.mrb[7].mxu1  ;;  %v1919_v18 = vsel %vm1909_vm2, %v10213_v15, -inf }
 0x355   : > { %1917 = vmax.xlane.f32.xlu1 %v1916_v8 }
 0x359   : > { %1920 = vmax.xlane.f32.xlu1 %v1919_v18 }
 0x391   : > { %v1639_v1 = vpop.f32.mrb[8].mxu0  ;;  %v1727_v20 = vpop.f32.mrb[8].mxu1 }
 0x392   : > { %v10226_v14 = vadd.f32 %v1639_v1, %v1184_v61  ;;  %v6883_v4 = vpop.f32.mrb[9].mxu0  ;;  %v1728_v6 = vadd.f32 %v1727_v20, %v1188_v62  ;;  %v6903_v16 = vpop.f32.mrb[9].mxu1 }
 0x393   : > { %v1642_v3 = vpop.f32.mrb[10].mxu0  ;;  %v1730_v5 = vpop.f32.mrb[10].mxu1 }
 0x394   : > { %v6884_v8 = vpop.f32.mrb[11].mxu0  ;;  %v1922_v17 = vsel %vm1909_vm2, %v10226_v14, -inf  ;;  %v6904_v18 = vpop.f32.mrb[11].mxu1  ;;  %v1925_v9 = vsel %vm1909_vm2, %v1728_v6, -inf }
 0x395   : > { %1923 = vmax.xlane.f32.xlu0 %v1922_v17  ;;  %1926 = vmax.xlane.f32.xlu1 %v1925_v9  ;;  %v1162_v8 = vcombine.high %v1146_v12, %v1146_v12  ;;  %v1164_v17 = vcombine.high %v1160_v13, %v1160_v13 }
 0x397   : > { %v1192_v18 = vrot.slane %v1162_v8, %v10176_v2 }
 0x3a2   : > { %v1912_v10 = vpop.xlane.xlu0 %1911 }
 0x3a3   : > { %v1934_v11 = vsub.f32 %v10189_v7, %v1912_v10  ;;  %v1196_v7 = vrot.slane %v1164_v17, %v10176_v2 }
 0x3a5   : > { %v1942_v61 = vmul.f32 1.442695, %v1934_v11 }
 0x3a6   : > { %v1915_v1 = vpop.xlane.xlu0 %1914 }
 0x3a7   : > { %8420 = vpow2.f32 %v1942_v61  ;;  %v1935_v62 = vsub.f32 %v10192_v63, %v1915_v1 }
 0x3a9   : > { %v1944_v20 = vmul.f32 1.442695, %v1935_v62 }
 0x3ab   : > { %8422 = vpow2.f32 %v1944_v20 }
 0x3b1   : > { %v8421_v4 = vpop.eup %8420 }
 0x3b2   : > { %v1958_v16 = vsel %vm1909_vm2, %v8421_v4, 0.0 }
 0x3b3   : > { %1959 = vadd.xlane.f32.xlu0 %v1958_v16 }
 0x3b5   : > { %v8423_v3 = vpop.eup %8422 }
 0x3b6   : > { %v1961_v5 = vsel %vm1909_vm2, %v8423_v3, 0.0 }
 0x3b7   : > { %1962 = vadd.xlane.f32.xlu1 %v1961_v5 }
 0x3d1   : > { %v1815_v9 = vpop.f32.mrb[12].mxu0  ;;  %v1903_v63 = vpop.f32.mrb[12].mxu1 }
 0x3d2   : > { %v10237_v10 = vadd.f32 %v1815_v9, %v1192_v18  ;;  %v6923_v11 = vpop.f32.mrb[13].mxu0  ;;  %v10239_v61 = vadd.f32 %v1903_v63, %v1196_v7  ;;  %v6943_v1 = vpop.f32.mrb[13].mxu1 }
 0x3d3   : > { %v1818_v62 = vpop.f32.mrb[14].mxu0  ;;  %v1906_v20 = vpop.f32.mrb[14].mxu1 }
 0x3d4   : > { %v6924_v16 = vpop.f32.mrb[15].mxu0  ;;  %v1928_v5 = vsel %vm1909_vm2, %v10237_v10, -inf  ;;  %v6944_v12 = vpop.f32.mrb[15].mxu1  ;;  %v1931_v13 = vsel %vm1909_vm2, %v10239_v61, -inf }
 0x3d5   : > { %1929 = vmax.xlane.f32.xlu0 %v1928_v5  ;;  %1932 = vmax.xlane.f32.xlu1 %v1931_v13 }
 0x3e2   : > { %v1918_v8 = vpop.xlane.xlu1 %1917 }
 0x3e3   : > { %v1936_v17 = vsub.f32 %v10211_v19, %v1918_v8 }
 0x3e5   : > { %v1946_v18 = vmul.f32 1.442695, %v1936_v17 }
 0x3e6   : > { %v1921_v9 = vpop.xlane.xlu1 %1920 }
 0x3e7   : > { %8424 = vpow2.f32 %v1946_v18  ;;  %v1937_v7 = vsub.f32 %v10213_v15, %v1921_v9 }
 0x3e9   : > { %v1948_v63 = vmul.f32 1.442695, %v1937_v7 }
 0x3eb   : > { %8426 = vpow2.f32 %v1948_v63 }
 0x3f1   : > { %v10247_v11 = vpop.eup %8424 }
 0x3f2   : > { %v1964_v1 = vsel %vm1909_vm2, %v10247_v11, 0.0 }
 0x3f3   : > { %1965 = vadd.xlane.f32.xlu0 %v1964_v1 }
 0x3f5   : > { %v10251_v62 = vpop.eup %8426 }
 0x3f6   : > { %v1967_v20 = vsel %vm1909_vm2, %v10251_v62, 0.0 }
 0x3f7   : > { %1968 = vadd.xlane.f32.xlu1 %v1967_v20 }
 0x422   : > { %v1924_v19 = vpop.xlane.xlu0 %1923  ;;  %v1927_v16 = vpop.xlane.xlu1 %1926 }
 0x423   : > { %v1938_v5 = vsub.f32 %v10226_v14, %v1924_v19  ;;  %v1939_v12 = vsub.f32 %v1728_v6, %v1927_v16  ;;  %v8532_v16 = vld [vmem:[%s9788_s1 + $0x80] sm:$0xff]  }
 0x425   : > { %v1950_v15 = vmul.f32 1.442695, %v1938_v5  ;;  %v1952_v13 = vmul.f32 1.442695, %v1939_v12  ;;  %v8533_v12 = vld [vmem:[%s9788_s1 + $0x88] sm:$0xff]  }
 0x427   : > { %8428 = vpow2.f32 %v1950_v15  ;;  %v8534_v15 = vld [vmem:[%s9788_s1 + $0xc0] sm:$0xff]  }
 0x428   : > { %8430 = vpow2.f32 %v1952_v13 }
 0x431   : > { %v10256_v8 = vpop.eup %8428 }
 0x432   : > { %v10258_v17 = vpop.eup %8430  ;;  %v1970_v18 = vsel %vm1909_vm2, %v10256_v8, 0.0 }
 0x433   : > { %v1973_v9 = vsel %vm1909_vm2, %v10258_v17, 0.0  ;;  %1971 = vadd.xlane.f32.xlu0 %v1970_v18 }
 0x434   : > { %1974 = vadd.xlane.f32.xlu1 %v1973_v9 }
 0x440   : > { %v1960_v7 = vpop.xlane.xlu0 %1959 }
 0x441   : > { %8432 = vrcp.f32 %v1960_v7 }
 0x444   : > { %v1963_v14 = vpop.xlane.xlu1 %1962 }
 0x445   : > { %8434 = vrcp.f32 %v1963_v14 }
 0x44b   : > { %v8433_v6 = vpop.eup %8432 }
 0x44c   : > { %v1990_v63 = vmul.f32 %v8433_v6, %v8421_v4  ;;  %v8535_v4 = vld [vmem:[%s9788_s1 + $0xc8] sm:$0xff]  }
 0x44e   : > { %v1998_v1 = vpack.c.bf16 %v1990_v63, %v1990_v63 }
 0x44f   : > { %v8435_v20 = vpop.eup %8434 }
 0x450   : > { %6962 = vmatmul.mubr.bf16.vlgmr.msra.gmra.mrb[16].mxu0 %v1998_v1  ;;  %v1991_v19 = vmul.f32 %v8435_v20, %v8423_v3  ;;  %v8268_v20 = vld [vmem:[#allocation11] sm:$0xff]  }
 0x451   : > { %6986 = vmatpush3.bf16.msra.mxu0 %v8532_v16  ;;  %7001 = vmatprep.mubr.msk.bf16.mxu0 %vm9207_vm0, %v11997_v0 }
 0x452   : > { %v1999_v5 = vpack.c.bf16 %v1991_v19, %v1991_v19  ;;  %6987 = vmatprep.subr.bf16.mxu0 %v11997_v0 }
 0x454   : > { %6982 = vmatmul.mubr.bf16.vlgmr.msra.gmra.mrb[16].mxu1 %v1999_v5  ;;  %v8269_v5 = vld [vmem:[#allocation11 + $0x8] sm:$0xff]  }
 0x455   : > { %6988 = vmatpush3.bf16.msra.mxu0 %v8533_v12  ;;  %7006 = vmatpush3.bf16.msra.mxu1 %v8534_v15  ;;  %v8270_v15 = vld [vmem:[#allocation11 + $0x10] sm:$0xff]  }
 0x456   : > { %6989 = vmatprep.subr.bf16.mxu0 %v11997_v0  ;;  %7007 = vmatprep.subr.bf16.mxu1 %v11997_v0 }
 0x457   : > { %7021 = vmatprep.mubr.msk.bf16.mxu1 %vm9207_vm0, %v11997_v0 }
 0x459   : > { %6990 = vmatpush3.bf16.msra.mxu0 %v9913_v22  ;;  %7008 = vmatpush3.bf16.msra.mxu1 %v8535_v4  ;;  %v8271_v4 = vld [vmem:[#allocation11 + $0x18] sm:$0xff]  }
 0x45a   : > { %6991 = vmatprep.subr.bf16.mxu0 %v11997_v0  ;;  %7009 = vmatprep.subr.bf16.mxu1 %v11997_v0 }
 0x45d   : > { %6992 = vmatpush3.bf16.msra.mxu0 %v9923_v24  ;;  %7010 = vmatpush3.bf16.msra.mxu1 %v9916_v23 }
 0x45e   : > { %6993 = vmatprep.subr.bf16.mxu0 %v11997_v0  ;;  %7011 = vmatprep.subr.bf16.mxu1 %v11997_v0 }
 0x461   : > { %6994 = vmatpush3.bf16.msra.mxu0 %v9933_v26  ;;  %7012 = vmatpush3.bf16.msra.mxu1 %v9926_v25 }
 0x462   : > { %v1930_v3 = vpop.xlane.xlu0 %1929  ;;  %7013 = vmatprep.subr.bf16.mxu1 %v11997_v0  ;;  %6995 = vmatprep.subr.bf16.mxu0 %v11997_v0  ;;  %v1933_v22 = vpop.xlane.xlu1 %1932 }
 0x463   : > { %v1940_v13 = vsub.f32 %v10237_v10, %v1930_v3  ;;  %v1941_v24 = vsub.f32 %v10239_v61, %v1933_v22  ;;  %v8272_v3 = vld [vmem:[#allocation11 + $0x20] sm:$0xff]   ;;  %v8273_v22 = vld [vmem:[#allocation11 + $0x28] sm:$0xff]  }
 0x465   : > { %v1954_v18 = vmul.f32 1.442695, %v1940_v13  ;;  %6996 = vmatpush3.bf16.msra.mxu0 %v9943_v28  ;;  %7014 = vmatpush3.bf16.msra.mxu1 %v9936_v27  ;;  %v1956_v23 = vmul.f32 1.442695, %v1941_v24 }
 0x466   : > { %6997 = vmatprep.subr.bf16.mxu0 %v11997_v0  ;;  %7015 = vmatprep.subr.bf16.mxu1 %v11997_v0 }
 0x467   : > { %8436 = vpow2.f32 %v1954_v18 }
 0x468   : > { %8438 = vpow2.f32 %v1956_v23 }
 0x469   : > { %6998 = vmatpush3.bf16.msra.mxu0 %v9953_v30  ;;  %7016 = vmatpush3.bf16.msra.mxu1 %v9946_v29 }
 0x46a   : > { %6999 = vmatprep.subr.bf16.mxu0 %v11997_v0  ;;  %7017 = vmatprep.subr.bf16.mxu1 %v11997_v0 }
 0x46d   : > { %7000 = vmatpush3.bf16.msra.mxu0 %v9963_v32  ;;  %7018 = vmatpush3.bf16.msra.mxu1 %v9956_v31 }
 0x46e   : > { %7019 = vmatprep.subr.bf16.mxu1 %v11997_v0  ;;  %7025 = vmatprep.subr.bf16.mxu0 %v11997_v0 }
 0x471   : > { %v10300_v25 = vpop.eup %8436  ;;  %7020 = vmatpush3.bf16.msra.mxu1 %v9966_v33 }
 0x472   : > { %v10303_v26 = vpop.eup %8438  ;;  %v1976_v27 = vsel %vm1909_vm2, %v10300_v25, 0.0  ;;  %7045 = vmatprep.subr.bf16.mxu1 %v11997_v0 }
 0x473   : > { %v1979_v28 = vsel %vm1909_vm2, %v10303_v26, 0.0  ;;  %1977 = vadd.xlane.f32.xlu0 %v1976_v27 }
 0x474   : > { %1980 = vadd.xlane.f32.xlu1 %v1979_v28 }
 0x480   : > { %v1966_v29 = vpop.xlane.xlu0 %1965 }
 0x481   : > { %8440 = vrcp.f32 %v1966_v29 }
 0x484   : > { %v1969_v30 = vpop.xlane.xlu1 %1968 }
 0x485   : > { %8442 = vrcp.f32 %v1969_v30 }
 0x48b   : > { %v8441_v31 = vpop.eup %8440 }
 0x48c   : > { %v1992_v32 = vmul.f32 %v8441_v31, %v10247_v11  ;;  %v8274_v31 = vld [vmem:[#allocation11 + $0x30] sm:$0xff]  }
 0x48e   : > { %v2000_v33 = vpack.c.bf16 %v1992_v32, %v1992_v32 }
 0x48f   : > { %v8443_v10 = vpop.eup %8442 }
 0x490   : > { %7002 = vmatmul.mubr.bf16.vlgmr.msra.gmra.mrb[20].mxu0 %v2000_v33  ;;  %v1993_v61 = vmul.f32 %v8443_v10, %v10251_v62 }
 0x491   : > { %7026 = vmatpush3.bf16.msra.mxu0 %v9973_v34  ;;  %7041 = vmatprep.mubr.msk.bf16.mxu0 %vm9207_vm0, %v11997_v0 }
 0x492   : > { %v2001_v9 = vpack.c.bf16 %v1993_v61, %v1993_v61  ;;  %7027 = vmatprep.subr.bf16.mxu0 %v11997_v0 }
 0x494   : > { %7022 = vmatmul.mubr.bf16.vlgmr.msra.gmra.mrb[20].mxu1 %v2001_v9 }
 0x495   : > { %7046 = vmatpush3.bf16.msra.mxu1 %v9976_v35  ;;  %7028 = vmatpush3.bf16.msra.mxu0 %v9989_v36 }
 0x496   : > { %7047 = vmatprep.subr.bf16.mxu1 %v11997_v0  ;;  %7029 = vmatprep.subr.bf16.mxu0 %v11997_v0 }
 0x497   : > { %7061 = vmatprep.mubr.msk.bf16.mxu1 %vm9207_vm0, %v11997_v0 }
 0x499   : > { %7048 = vmatpush3.bf16.msra.mxu1 %v9992_v37  ;;  %7030 = vmatpush3.bf16.msra.mxu0 %v9999_v38 }
 0x49a   : > { %7049 = vmatprep.subr.bf16.mxu1 %v11997_v0  ;;  %7031 = vmatprep.subr.bf16.mxu0 %v11997_v0 }
 0x49d   : > { %7050 = vmatpush3.bf16.msra.mxu1 %v10002_v39  ;;  %7032 = vmatpush3.bf16.msra.mxu0 %v10009_v40 }
 0x49e   : > { %7051 = vmatprep.subr.bf16.mxu1 %v11997_v0  ;;  %7033 = vmatprep.subr.bf16.mxu0 %v11997_v0 }
 0x4a1   : > { %7052 = vmatpush3.bf16.msra.mxu1 %v10012_v41  ;;  %7034 = vmatpush3.bf16.msra.mxu0 %v10019_v42  ;;  %v12102_v42 = vld [vmem:[#allocation46_spill] sm:$0xff] }
 0x4a2   : > { %7053 = vmatprep.subr.bf16.mxu1 %v11997_v0  ;;  %7035 = vmatprep.subr.bf16.mxu0 %v11997_v0 }
 0x4a5   : > { %7054 = vmatpush3.bf16.msra.mxu1 %v10022_v43  ;;  %7036 = vmatpush3.bf16.msra.mxu0 %v10029_v44  ;;  %v12103_v43 = vld [vmem:[#allocation47_spill] sm:$0xff]  ;;  %v12104_v44 = vld [vmem:[#allocation48_spill] sm:$0xff] }
 0x4a6   : > { %7055 = vmatprep.subr.bf16.mxu1 %v11997_v0  ;;  %7037 = vmatprep.subr.bf16.mxu0 %v11997_v0 }
 0x4a9   : > { %7056 = vmatpush3.bf16.msra.mxu1 %v10032_v45  ;;  %7038 = vmatpush3.bf16.msra.mxu0 %v10039_v46  ;;  %v12105_v45 = vld [vmem:[#allocation49_spill] sm:$0xff]  ;;  %v12106_v46 = vld [vmem:[#allocation50_spill] sm:$0xff] }
 0x4aa   : > { %7057 = vmatprep.subr.bf16.mxu1 %v11997_v0  ;;  %7039 = vmatprep.subr.bf16.mxu0 %v11997_v0 }
 0x4ad   : > { %7058 = vmatpush3.bf16.msra.mxu1 %v10042_v47  ;;  %7040 = vmatpush3.bf16.msra.mxu0 %v10049_v48 }
 0x4ae   : > { %7059 = vmatprep.subr.bf16.mxu1 %v11997_v0  ;;  %7065 = vmatprep.subr.bf16.mxu0 %v11997_v0 }
 0x4b1   : > { %7060 = vmatpush3.bf16.msra.mxu1 %v10052_v49 }
 0x4b2   : > { %7085 = vmatprep.subr.bf16.mxu1 %v11997_v0 }
 0x4c0   : > { %v1972_v34 = vpop.xlane.xlu0 %1971 }
 0x4c1   : > { %v1975_v35 = vpop.xlane.xlu1 %1974  ;;  %8444 = vrcp.f32 %v1972_v34 }
 0x4c2   : > { %8446 = vrcp.f32 %v1975_v35 }
 0x4cb   : > { %v8445_v36 = vpop.eup %8444 }
 0x4cc   : > { %v8447_v37 = vpop.eup %8446  ;;  %v1994_v38 = vmul.f32 %v8445_v36, %v10256_v8 }
 0x4cd   : > { %v1995_v39 = vmul.f32 %v8447_v37, %v10258_v17 }
 0x4ce   : > { %v2002_v40 = vpack.c.bf16 %v1994_v38, %v1994_v38 }
 0x4cf   : > { %v2003_v41 = vpack.c.bf16 %v1995_v39, %v1995_v39 }
 0x4d0   : > { %7042 = vmatmul.mubr.bf16.vlgmr.msra.gmra.mrb[24].mxu0 %v2002_v40 }
 0x4d1   : > { %7062 = vmatmul.mubr.bf16.vlgmr.msra.gmra.mrb[24].mxu1 %v2003_v41  ;;  %7066 = vmatpush3.bf16.msra.mxu0 %v10059_v50  ;;  %v8275_v41 = vld [vmem:[#allocation11 + $0x38] sm:$0xff]  }
 0x4d2   : > { %7086 = vmatpush3.bf16.msra.mxu1 %v10062_v51  ;;  %7067 = vmatprep.subr.bf16.mxu0 %v11997_v0 }
 0x4d3   : > { %7087 = vmatprep.subr.bf16.mxu1 %v11997_v0  ;;  %7081 = vmatprep.mubr.msk.bf16.mxu0 %vm9207_vm0, %v11997_v0 }
 0x4d4   : > { %7101 = vmatprep.mubr.msk.bf16.mxu1 %vm9207_vm0, %v11997_v0 }
 0x4d5   : > { %7068 = vmatpush3.bf16.msra.mxu0 %v10075_v52 }
 0x4d6   : > { %7088 = vmatpush3.bf16.msra.mxu1 %v10078_v53  ;;  %7069 = vmatprep.subr.bf16.mxu0 %v11997_v0 }
 0x4d7   : > { %7089 = vmatprep.subr.bf16.mxu1 %v11997_v0 }
 0x4d9   : > { %7070 = vmatpush3.bf16.msra.mxu0 %v10085_v54 }
 0x4da   : > { %7090 = vmatpush3.bf16.msra.mxu1 %v10088_v55  ;;  %7071 = vmatprep.subr.bf16.mxu0 %v11997_v0 }
 0x4db   : > { %7091 = vmatprep.subr.bf16.mxu1 %v11997_v0 }
 0x4dd   : > { %7072 = vmatpush3.bf16.msra.mxu0 %v10095_v56 }
 0x4de   : > { %7092 = vmatpush3.bf16.msra.mxu1 %v10098_v57  ;;  %7073 = vmatprep.subr.bf16.mxu0 %v11997_v0 }
 0x4df   : > { %7093 = vmatprep.subr.bf16.mxu1 %v11997_v0 }
 0x4e1   : > { %7074 = vmatpush3.bf16.msra.mxu0 %v10105_v58 }
 0x4e2   : > { %7094 = vmatpush3.bf16.msra.mxu1 %v10108_v59  ;;  %7075 = vmatprep.subr.bf16.mxu0 %v11997_v0 }
 0x4e3   : > { %7095 = vmatprep.subr.bf16.mxu1 %v11997_v0 }
 0x4e5   : > { %7076 = vmatpush3.bf16.msra.mxu0 %v10115_v60 }
 0x4e6   : > { %7096 = vmatpush3.bf16.msra.mxu1 %v12102_v42  ;;  %7077 = vmatprep.subr.bf16.mxu0 %v11997_v0 }
 0x4e7   : > { %7097 = vmatprep.subr.bf16.mxu1 %v11997_v0 }
 0x4e9   : > { %7078 = vmatpush3.bf16.msra.mxu0 %v12103_v43 }
 0x4ea   : > { %7098 = vmatpush3.bf16.msra.mxu1 %v12104_v44  ;;  %7079 = vmatprep.subr.bf16.mxu0 %v11997_v0  ;;  %v10410_v44 = vld [vmem:[%s9778_s13] sm:$0xff]  }
 0x4eb   : > { %7099 = vmatprep.subr.bf16.mxu1 %v11997_v0 }
 0x4ed   : > { %7080 = vmatpush3.bf16.msra.mxu0 %v12105_v45  ;;  %v10413_v45 = vld [vmem:[%s9778_s13 + $0x40] sm:$0xff]  }
 0x4ee   : > { %7100 = vmatpush3.bf16.msra.mxu1 %v12106_v46  ;;  %7105 = vmatprep.subr.bf16.mxu0 %v11997_v0  ;;  %v5269_v46 = vunpack.c.l.bf16 %v10410_v44 }
 0x4ef   : > { %7125 = vmatprep.subr.bf16.mxu1 %v11997_v0 }
 0x500   : > { %v1978_v47 = vpop.xlane.xlu0 %1977 }
 0x501   : > { %v1981_v48 = vpop.xlane.xlu1 %1980  ;;  %8448 = vrcp.f32 %v1978_v47  ;;  %v5270_v47 = vunpack.c.l.bf16 %v10413_v45 }
 0x502   : > { %8450 = vrcp.f32 %v1981_v48 }
 0x503   : > { %v5317_v48 = vrot.slane %v5270_v47, 7  ;;  %v10481_v47 = vld [vmem:[%s9778_s13 + $0x50] sm:$0xff]  }
 0x50b   : > { %v8449_v49 = vpop.eup %8448 }
 0x50c   : > { %v8451_v50 = vpop.eup %8450  ;;  %v1996_v51 = vmul.f32 %v8449_v49, %v10300_v25  ;;  %v10420_v49 = vsel %vm2367_vm3, %v5317_v48, %v5269_v46  ;;  %v10476_v46 = vld [vmem:[%s9778_s13 + $0x48] sm:$0xff]   ;;  %v10486_v48 = vld [vmem:[%s9778_s13 + $0x58] sm:$0xff]  }
 0x50d   : > { %v1997_v52 = vmul.f32 %v8451_v50, %v10303_v26  ;;  %v10423_v50 = vld [vmem:[%s9778_s13 + $0x8] sm:$0xff]  }
 0x50e   : > { %v2004_v53 = vpack.c.bf16 %v1996_v51, %v1996_v51  ;;  %v10428_v51 = vld [vmem:[%s9778_s13 + $0x10] sm:$0xff]  }
 0x50f   : > { %v2005_v54 = vpack.c.bf16 %v1997_v52, %v1997_v52  ;;  %v10433_v52 = vld [vmem:[%s9778_s13 + $0x18] sm:$0xff]  }
 0x510   : > { %7082 = vmatmul.mubr.bf16.vlgmr.msra.gmra.mrb[28].mxu0 %v2004_v53  ;;  %v10438_v53 = vld [vmem:[%s9778_s13 + $0x20] sm:$0xff]  }
 0x511   : > { %7102 = vmatmul.mubr.bf16.vlgmr.msra.gmra.mrb[28].mxu1 %v2005_v54  ;;  %7121 = vmatprep.mubr.msk.bf16.mxu0 %vm9207_vm0, %v11997_v0  ;;  %v10443_v54 = vld [vmem:[%s9778_s13 + $0x28] sm:$0xff]  }
 0x512   : > { %7141 = vmatprep.mubr.msk.bf16.mxu1 %vm9207_vm0, %v11997_v0  ;;  %7106 = vmatpush3.bf16.msra.mxu0 %v8268_v20 }
 0x513   : > { %7107 = vmatprep.subr.bf16.mxu0 %v11997_v0  ;;  %7126 = vmatpush3.bf16.xpose.msra.mxu1 %v10410_v44 }
 0x514   : > { %7127 = vmatprep.subr.bf16.mxu1 %v11997_v0 }
 0x516   : > { %7108 = vmatpush3.bf16.msra.mxu0 %v8269_v5 }
 0x517   : > { %7109 = vmatprep.subr.bf16.mxu0 %v11997_v0 }
 0x51a   : > { %7110 = vmatpush3.bf16.msra.mxu0 %v8270_v15 }
 0x51b   : > { %7111 = vmatprep.subr.bf16.mxu0 %v11997_v0  ;;  %7128 = vmatpush3.bf16.xpose.msra.mxu1 %v10423_v50 }
 0x51c   : > { %7129 = vmatprep.subr.bf16.mxu1 %v11997_v0 }
 0x51e   : > { %7112 = vmatpush3.bf16.msra.mxu0 %v8271_v4 }
 0x51f   : > { %7113 = vmatprep.subr.bf16.mxu0 %v11997_v0 }
 0x522   : > { %7114 = vmatpush3.bf16.msra.mxu0 %v8272_v3 }
 0x523   : > { %v2040_v55 = vpop.f32.mrb[16].mxu0  ;;  %7115 = vmatprep.subr.bf16.mxu0 %v11997_v0  ;;  %7130 = vmatpush3.bf16.xpose.msra.mxu1 %v10428_v51 }
 0x524   : > { %v6963_v56 = vpop.f32.mrb[17].mxu0  ;;  %v5511_v58 = vrot.slane %v2040_v55, 1  ;;  %v2326_v11 = vpack.c.bf16 %v2040_v55, %v2040_v55  ;;  %7131 = vmatprep.subr.bf16.mxu1 %v11997_v0 }
 0x525   : > { %v2043_v57 = vpop.f32.mrb[18].mxu0 }
 0x526   : > { %v6964_v59 = vpop.f32.mrb[19].mxu0  ;;  %v2358_v19 = vunpack.c.l.b16 %v2326_v11  ;;  %7116 = vmatpush3.bf16.msra.mxu0 %v8273_v22 }
 0x527   : > { %v2080_v60 = vpop.f32.mrb[16].mxu1  ;;  %7117 = vmatprep.subr.bf16.mxu0 %v11997_v0 }
 0x528   : > { %v2327_v62 = vpack.c.bf16 %v2080_v60, %v2080_v60  ;;  %v4321_v8 = vrot.slane %v2080_v60, 7  ;;  %v5512_v17 = vsel %vm2367_vm3, %v2080_v60, %v5511_v58  ;;  %v6983_v7 = vpop.f32.mrb[17].mxu1 }
 0x529   : > { %v2083_v14 = vpop.f32.mrb[18].mxu1 }
 0x52a   : > { %v2359_v6 = vunpack.c.l.b16 %v2327_v62  ;;  %v4322_v63 = vsel %vm2367_vm3, %v4321_v8, %v2040_v55  ;;  %v6984_v1 = vpop.f32.mrb[19].mxu1  ;;  %7118 = vmatpush3.bf16.msra.mxu0 %v8274_v31  ;;  %v10448_v55 = vld [vmem:[%s9778_s13 + $0x30] sm:$0xff]  }
 0x52b   : > { %7119 = vmatprep.subr.bf16.mxu0 %v11997_v0  ;;  %7132 = vmatpush3.bf16.xpose.msra.mxu1 %v10433_v52 }
 0x52c   : > { %v2366_v16 = vrot.slane %v2359_v6, 7  ;;  %7133 = vmatprep.subr.bf16.mxu1 %v11997_v0 }
 0x52e   : > { %v2368_v12 = vsel %vm2367_vm3, %v2366_v16, %v2358_v19  ;;  %7120 = vmatpush3.bf16.msra.mxu0 %v8275_v41 }
 0x52f   : > { %7145 = vmatprep.subr.bf16.mxu0 %v11997_v0 }
 0x533   : > { %7134 = vmatpush3.bf16.xpose.msra.mxu1 %v10438_v53 }
 0x534   : > { %7135 = vmatprep.subr.bf16.mxu1 %v11997_v0 }
 0x53b   : > { %7136 = vmatpush3.bf16.xpose.msra.mxu1 %v10443_v54 }
 0x53c   : > { %7137 = vmatprep.subr.bf16.mxu1 %v11997_v0 }
 0x543   : > { %7138 = vmatpush3.bf16.xpose.msra.mxu1 %v10448_v55 }
 0x544   : > { %7139 = vmatprep.subr.bf16.mxu1 %v11997_v0 }
 0x563   : > { %v2120_v13 = vpop.f32.mrb[20].mxu0 }
 0x564   : > { %v2328_v24 = vpack.c.bf16 %v2120_v13, %v2120_v13  ;;  %v4323_v18 = vrot.slane %v2120_v13, 6  ;;  %v5513_v23 = vrot.slane %v2120_v13, 7  ;;  %v7003_v25 = vpop.f32.mrb[21].mxu0 }
 0x565   : > { %v2123_v26 = vpop.f32.mrb[22].mxu0 }
 0x566   : > { %v2360_v27 = vunpack.c.l.b16 %v2328_v24  ;;  %v4324_v28 = vsel %vm2370_vm4, %v4323_v18, %v4322_v63  ;;  %v5514_v29 = vsel %vm2370_vm4, %v5513_v23, %v5512_v17  ;;  %v7004_v30 = vpop.f32.mrb[23].mxu0 }
 0x567   : > { %v2160_v32 = vpop.f32.mrb[20].mxu1 }
 0x568   : > { %v2369_v33 = vrot.slane %v2360_v27, 6  ;;  %v2329_v10 = vpack.c.bf16 %v2160_v32, %v2160_v32  ;;  %v4325_v61 = vrot.slane %v2160_v32, 5  ;;  %v5515_v9 = vrot.slane %v2160_v32, 6  ;;  %v7023_v34 = vpop.f32.mrb[21].mxu1 }
 0x569   : > { %v2163_v35 = vpop.f32.mrb[22].mxu1 }
 0x56a   : > { %v2371_v36 = vsel %vm2370_vm4, %v2369_v33, %v2368_v12  ;;  %v2361_v37 = vunpack.c.l.b16 %v2329_v10  ;;  %v4326_v38 = vsel %vm2373_vm5, %v4325_v61, %v4324_v28  ;;  %v5516_v39 = vsel %vm2373_vm5, %v5515_v9, %v5514_v29  ;;  %v7024_v40 = vpop.f32.mrb[23].mxu1 }
 0x56c   : > { %v2372_v42 = vrot.slane %v2361_v37, 5 }
 0x56e   : > { %v2374_v43 = vsel %vm2373_vm5, %v2372_v42, %v2371_v36 }
 0x5a3   : > { %v2200_v56 = vpop.f32.mrb[24].mxu0 }
 0x5a4   : > { %v2330_v57 = vpack.c.bf16 %v2200_v56, %v2200_v56  ;;  %v4327_v58 = vrot.slane %v2200_v56, 4  ;;  %v5517_v59 = vrot.slane %v2200_v56, 5  ;;  %v2240_v60 = vpop.f32.mrb[24].mxu1  ;;  %v7043_v11 = vpop.f32.mrb[25].mxu0  ;;  %v10491_v56 = vld [vmem:[%s9778_s13 + $0x60] sm:$0xff]  }
 0x5a5   : > { %v2331_v62 = vpack.c.bf16 %v2240_v60, %v2240_v60  ;;  %v4329_v8 = vrot.slane %v2240_v60, 3  ;;  %v5519_v17 = vrot.slane %v2240_v60, 4  ;;  %v7063_v7 = vpop.f32.mrb[25].mxu1  ;;  %v2203_v14 = vpop.f32.mrb[26].mxu0  ;;  %v10510_v60 = vld [vmem:[%s9778_s13 + $0x78] sm:$0xff]   ;;  %v10516_v11 = vld [vmem:[%s9778_s13 + $0x80] sm:$0xff]  }
 0x5a6   : > { %v2362_v6 = vunpack.c.l.b16 %v2330_v57  ;;  %v4328_v63 = vsel %vm2376_vm6, %v4327_v58, %v4326_v38  ;;  %v5518_v1 = vsel %vm2376_vm6, %v5517_v59, %v5516_v39  ;;  %v2243_v20 = vpop.f32.mrb[26].mxu1  ;;  %v7044_v19 = vpop.f32.mrb[27].mxu0  ;;  %v10496_v57 = vld [vmem:[%s9778_s13 + $0x68] sm:$0xff]   ;;  %v10501_v58 = vld [vmem:[%s9778_s13 + $0x70] sm:$0xff]   ;;  %v10506_v59 = vld [vmem:[%s9778_s13 + $0x38] sm:$0xff]  }
 0x5a7   : > { %v2363_v16 = vunpack.c.l.b16 %v2331_v62  ;;  %v4330_v5 = vsel %vm2379_vm7, %v4329_v8, %v4328_v63  ;;  %v7064_v12 = vpop.f32.mrb[27].mxu1  ;;  %v5520_v15 = vsel %vm2379_vm7, %v5519_v17, %v5518_v1  ;;  %7140 = vmatpush3.bf16.xpose.msra.mxu1 %v10506_v59  ;;  %v5271_v62 = vunpack.c.l.bf16 %v10516_v11 }
 0x5a8   : > { %v2375_v4 = vrot.slane %v2362_v6, 4  ;;  %7165 = vmatprep.subr.bf16.mxu1 %v11997_v0  ;;  %v10531_v12 = vld [vmem:[%s9778_s13 + $0xc0] sm:$0xff]  }
 0x5a9   : > { %v2378_v3 = vrot.slane %v2363_v16, 3  ;;  %v5319_v8 = vrot.slane %v5271_v62, 6  ;;  %v10646_v62 = vld [vmem:[%s9778_s13 + $0x110] sm:$0xff]  }
 0x5aa   : > { %v2377_v22 = vsel %vm2376_vm6, %v2375_v4, %v2374_v43 }
 0x5ab   : > { %v2380_v13 = vsel %vm2379_vm7, %v2378_v3, %v2377_v22  ;;  %v10521_v17 = vsel %vm2370_vm4, %v5319_v8, %v10420_v49  ;;  %v10544_v3 = vld [vmem:[%s9778_s13 + $0x88] sm:$0xff]   ;;  %v10649_v8 = vld [vmem:[%s9778_s13 + $0x150] sm:$0xff]  }
 0x5ac   : > { %12110 = vst [vmem:[#allocation49_spill] sm:$0xff] %v10521_v17  ;;  %v10547_v22 = vld [vmem:[%s9778_s13 + $0xc8] sm:$0xff]   ;;  %v10757_v17 = vld [vmem:[%s9778_s13 + $0x1e0] sm:$0xff]  }
 0x5ad   : > { %12116 = vst [vmem:[#allocation56_spill] sm:$0xff] %v10757_v17 }
 0x5e3   : > { %v2280_v24 = vpop.f32.mrb[28].mxu0 }
 0x5e4   : > { %v2332_v18 = vpack.c.bf16 %v2280_v24, %v2280_v24  ;;  %v4331_v23 = vrot.slane %v2280_v24, 2  ;;  %v5521_v25 = vrot.slane %v2280_v24, 3  ;;  %v2320_v26 = vpop.f32.mrb[28].mxu1  ;;  %v7083_v27 = vpop.f32.mrb[29].mxu0  ;;  %v10557_v24 = vld [vmem:[%s9778_s13 + $0xd0] sm:$0xff]  }
 0x5e5   : > { %v2333_v28 = vpack.c.bf16 %v2320_v26, %v2320_v26  ;;  %v4333_v29 = vrot.slane %v2320_v26, 1  ;;  %v5523_v30 = vrot.slane %v2320_v26, 2  ;;  %v7103_v31 = vpop.f32.mrb[29].mxu1  ;;  %v2283_v32 = vpop.f32.mrb[30].mxu0  ;;  %v10577_v26 = vld [vmem:[%s9778_s13 + $0xe0] sm:$0xff]   ;;  %v10584_v27 = vld [vmem:[%s9778_s13 + $0xa8] sm:$0xff]  }
 0x5e6   : > { %v2364_v33 = vunpack.c.l.b16 %v2332_v18  ;;  %v4332_v10 = vsel %vm2382_vm8, %v4331_v23, %v4330_v5  ;;  %v2323_v61 = vpop.f32.mrb[30].mxu1  ;;  %v7084_v9 = vpop.f32.mrb[31].mxu0  ;;  %v5522_v34 = vsel %vm2382_vm8, %v5521_v25, %v5520_v15  ;;  %v10564_v18 = vld [vmem:[%s9778_s13 + $0x98] sm:$0xff]   ;;  %v10574_v25 = vld [vmem:[%s9778_s13 + $0xa0] sm:$0xff]  }
 0x5e7   : > { %v2365_v35 = vunpack.c.l.b16 %v2333_v28  ;;  %v10461_v36 = vsel %vm2385_vm9, %v4333_v29, %v4332_v10  ;;  %v7104_v37 = vpop.f32.mrb[31].mxu1  ;;  %v10464_v38 = vsel %vm2385_vm9, %v5523_v30, %v5522_v34  ;;  %v10567_v23 = vld [vmem:[%s9778_s13 + $0xd8] sm:$0xff]   ;;  %v10587_v28 = vld [vmem:[%s9778_s13 + $0xe8] sm:$0xff]   ;;  %v10594_v29 = vld [vmem:[%s9778_s13 + $0xb0] sm:$0xff]  }
 0x5e8   : > { %12107 = vst [vmem:[#allocation46_spill] sm:$0xff] %v10461_v36  ;;  %12108 = vst [vmem:[#allocation47_spill] sm:$0xff] %v10464_v38  ;;  %v2381_v39 = vrot.slane %v2364_v33, 2  ;;  %v10597_v30 = vld [vmem:[%s9778_s13 + $0xf0] sm:$0xff]   ;;  %v10607_v33 = vld [vmem:[%s9778_s13 + $0xb8] sm:$0xff]  }
 0x5e9   : > { %v2384_v40 = vrot.slane %v2365_v35, 1  ;;  %v10610_v10 = vld [vmem:[%s9778_s13 + $0xf8] sm:$0xff]   ;;  %v10618_v34 = vld [vmem:[%s9778_s13 + $0x100] sm:$0xff]   ;;  %v10764_v36 = vld [vmem:[%s9778_s13 + $0x1a8] sm:$0xff]  }
 0x5ea   : > { %v2383_v41 = vsel %vm2382_vm8, %v2381_v39, %v2380_v13  ;;  %v10554_v13 = vld [vmem:[%s9778_s13 + $0x90] sm:$0xff]   ;;  %v10623_v37 = vld [vmem:[%s9778_s13 + $0x140] sm:$0xff]   ;;  %12117 = vst [vmem:[#allocation57_spill] sm:$0xff] %v10764_v36 }
 0x5eb   : > { %v2386_v42 = vsel %vm2385_vm9, %v2384_v40, %v2383_v41  ;;  %v10636_v41 = vld [vmem:[%s9778_s13 + $0x108] sm:$0xff]   ;;  %v10754_v38 = vld [vmem:[%s9778_s13 + $0x1a0] sm:$0xff]  }
 0x5ec   : > { %v10468_v43 = vpack.c.b16 %v2386_v42, %v2386_v42  ;;  %v10639_v42 = vld [vmem:[%s9778_s13 + $0x148] sm:$0xff]   ;;  %12115 = vst [vmem:[#allocation55_spill] sm:$0xff] %v10754_v38 }
 0x5ee   : > { %12109 = vst [vmem:[#allocation48_spill] sm:$0xff] %v10468_v43  ;;  %7122 = vmatmul.mubr.bf16.vlgmr.msra.gmra.mrb[32].mxu0 %v10468_v43  ;;  %v10767_v43 = vld [vmem:[%s9778_s13 + $0x1e8] sm:$0xff]  }
 0x5ef   : > { %7146 = vmatpush3.bf16.xpose.msra.mxu0 %v10413_v45  ;;  %7161 = vmatprep.mubr.msk.bf16.mxu0 %vm9207_vm0, %v11997_v0  ;;  %12118 = vst [vmem:[#allocation58_spill] sm:$0xff] %v10767_v43 }
 0x5f0   : > { %7147 = vmatprep.subr.bf16.mxu0 %v11997_v0 }
 0x5f7   : > { %7148 = vmatpush3.bf16.xpose.msra.mxu0 %v10476_v46 }
 0x5f8   : > { %7149 = vmatprep.subr.bf16.mxu0 %v11997_v0 }
 0x5ff   : > { %7150 = vmatpush3.bf16.xpose.msra.mxu0 %v10481_v47 }
 0x600   : > { %7151 = vmatprep.subr.bf16.mxu0 %v11997_v0 }
 0x607   : > { %7152 = vmatpush3.bf16.xpose.msra.mxu0 %v10486_v48 }
 0x608   : > { %7153 = vmatprep.subr.bf16.mxu0 %v11997_v0 }
 0x60f   : > { %7154 = vmatpush3.bf16.xpose.msra.mxu0 %v10491_v56 }
 0x610   : > { %7155 = vmatprep.subr.bf16.mxu0 %v11997_v0 }
 0x617   : > { %7156 = vmatpush3.bf16.xpose.msra.mxu0 %v10496_v57 }
 0x618   : > { %7157 = vmatprep.subr.bf16.mxu0 %v11997_v0 }
 0x61f   : > { %7158 = vmatpush3.bf16.xpose.msra.mxu0 %v10501_v58 }
 0x620   : > { %7159 = vmatprep.subr.bf16.mxu0 %v11997_v0 }
 0x627   : > { %7160 = vmatpush3.bf16.xpose.msra.mxu0 %v10510_v60 }
 0x628   : > { %7185 = vmatprep.subr.bf16.mxu0 %v11997_v0 }
 0x6c1   : > { %v2471_v7 = vpop.f32.mrb[32].mxu0 }
 0x6c2   : > { %v2477_v14 = vpack.c.bf16 %v2471_v7, %v2471_v7  ;;  %v7123_v6 = vpop.f32.mrb[33].mxu0  ;;  %v10656_v7 = vld [vmem:[%s9778_s13 + $0x118] sm:$0xff]  }
 0x6c3   : > { %v2474_v63 = vpop.f32.mrb[34].mxu0  ;;  %v10666_v6 = vld [vmem:[%s9778_s13 + $0x120] sm:$0xff]  }
 0x6c4   : > { %v2485_v1 = vrot.slane %v2477_v14, %v10152_v21  ;;  %v7124_v20 = vpop.f32.mrb[35].mxu0  ;;  %v10659_v14 = vld [vmem:[%s9778_s13 + $0x158] sm:$0xff]   ;;  %v10669_v63 = vld [vmem:[%s9778_s13 + $0x160] sm:$0xff]  }
 0x6c5   : > { %v10679_v20 = vld [vmem:[%s9778_s13 + $0x168] sm:$0xff]  }
 0x6c6   : > { %v10525_v19 = vrot.slane %v2485_v1, %v10152_v21  ;;  %v2486_v31 = vcombine.high %v2485_v1, %v2485_v1  ;;  %v10676_v1 = vld [vmem:[%s9778_s13 + $0x128] sm:$0xff]  }
 0x6c8   : > { %v2504_v16 = vunpack.i.h.s16 %v10525_v19  ;;  %v6123_v5 = vpack.i.b16 %v10525_v19, %v10525_v19  ;;  %v10603_v32 = vrot.slane %v2486_v31, %v10152_v21 }
 0x6ca   : > { %v2573_v49 = vrot.slane %v6123_v5, %v10176_v2  ;;  %v2663_v15 = vpack.i.b16 %v2504_v16, %v2504_v16  ;;  %v2506_v61 = vunpack.i.h.s16 %v10603_v32  ;;  %v6140_v9 = vpack.i.b16 %v10603_v32, %v10603_v32  ;;  %v10686_v16 = vld [vmem:[%s9778_s13 + $0x130] sm:$0xff]  }
 0x6cb   : > { %v10689_v5 = vld [vmem:[%s9778_s13 + $0x170] sm:$0xff]  }
 0x6cc   : > { %7142 = vmatmul.mubr.bf16.vlgmr.msra.gmra.mrb[32].mxu1 %v2573_v49  ;;  %v2667_v4 = vrot.slane %v2663_v15, %v10176_v2  ;;  %v2851_v35 = vpack.i.b16 %v2506_v61, %v2506_v61  ;;  %v2761_v39 = vrot.slane %v6140_v9, %v10176_v2  ;;  %v2501_v49 = vcombine.high %v10525_v19, %v10525_v19  ;;  %v10698_v15 = vld [vmem:[%s9778_s13 + $0x138] sm:$0xff]   ;;  %v10706_v9 = vld [vmem:[%s9778_s13 + $0x180] sm:$0xff]  }
 0x6cd   : > { %7166 = vmatpush3.bf16.xpose.msra.mxu1 %v10516_v11  ;;  %7181 = vmatprep.mubr.msk.bf16.mxu1 %vm9207_vm0, %v11997_v0  ;;  %v10711_v19 = vld [vmem:[%s9778_s13 + $0x1c0] sm:$0xff]  }
 0x6ce   : > { %7162 = vmatmul.mubr.bf16.vlgmr.msra.gmra.mrb[36].mxu0 %v2667_v4  ;;  %7167 = vmatprep.subr.bf16.mxu1 %v11997_v0  ;;  %v2855_v40 = vrot.slane %v2851_v35, %v10176_v2  ;;  %v10701_v4 = vld [vmem:[%s9778_s13 + $0x178] sm:$0xff]   ;;  %v2508_v31 = vunpack.i.h.s16 %v2501_v49  ;;  %v6157_v61 = vpack.i.b16 %v2501_v49, %v2501_v49  ;;  %v10724_v49 = vld [vmem:[%s9778_s13 + $0x188] sm:$0xff]  }
 0x6cf   : > { %7186 = vmatpush3.bf16.xpose.msra.mxu0 %v10531_v12  ;;  %7201 = vmatprep.mubr.msk.bf16.mxu0 %vm9207_vm0, %v11997_v0 }
 0x6d0   : > { %7187 = vmatprep.subr.bf16.mxu0 %v11997_v0  ;;  %v3039_v35 = vpack.i.b16 %v2508_v31, %v2508_v31  ;;  %v10727_v31 = vld [vmem:[%s9778_s13 + $0x1c8] sm:$0xff]  }
 0x6d5   : > { %7168 = vmatpush3.bf16.xpose.msra.mxu1 %v10544_v3 }
 0x6d6   : > { %7169 = vmatprep.subr.bf16.mxu1 %v11997_v0 }
 0x6d7   : > { %7188 = vmatpush3.bf16.xpose.msra.mxu0 %v10547_v22 }
 0x6d8   : > { %7189 = vmatprep.subr.bf16.mxu0 %v11997_v0 }
 0x6dd   : > { %7170 = vmatpush3.bf16.xpose.msra.mxu1 %v10554_v13 }
 0x6de   : > { %7171 = vmatprep.subr.bf16.mxu1 %v11997_v0 }
 0x6df   : > { %7190 = vmatpush3.bf16.xpose.msra.mxu0 %v10557_v24 }
 0x6e0   : > { %7191 = vmatprep.subr.bf16.mxu0 %v11997_v0 }
 0x6e5   : > { %7172 = vmatpush3.bf16.xpose.msra.mxu1 %v10564_v18 }
 0x6e6   : > { %7173 = vmatprep.subr.bf16.mxu1 %v11997_v0 }
 0x6e7   : > { %7192 = vmatpush3.bf16.xpose.msra.mxu0 %v10567_v23 }
 0x6e8   : > { %7193 = vmatprep.subr.bf16.mxu0 %v11997_v0 }
 0x6ed   : > { %7174 = vmatpush3.bf16.xpose.msra.mxu1 %v10574_v25 }
 0x6ee   : > { %7175 = vmatprep.subr.bf16.mxu1 %v11997_v0 }
 0x6ef   : > { %7194 = vmatpush3.bf16.xpose.msra.mxu0 %v10577_v26 }
 0x6f0   : > { %7195 = vmatprep.subr.bf16.mxu0 %v11997_v0 }
 0x6f5   : > { %7176 = vmatpush3.bf16.xpose.msra.mxu1 %v10584_v27 }
 0x6f6   : > { %7177 = vmatprep.subr.bf16.mxu1 %v11997_v0 }
 0x6f7   : > { %7196 = vmatpush3.bf16.xpose.msra.mxu0 %v10587_v28 }
 0x6f8   : > { %7197 = vmatprep.subr.bf16.mxu0 %v11997_v0 }
 0x6fd   : > { %7178 = vmatpush3.bf16.xpose.msra.mxu1 %v10594_v29 }
 0x6fe   : > { %7179 = vmatprep.subr.bf16.mxu1 %v11997_v0 }
 0x6ff   : > { %7198 = vmatpush3.bf16.xpose.msra.mxu0 %v10597_v30 }
 0x700   : > { %7199 = vmatprep.subr.bf16.mxu0 %v11997_v0 }
 0x705   : > { %7180 = vmatpush3.bf16.xpose.msra.mxu1 %v10607_v33 }
 0x706   : > { %7205 = vmatprep.subr.bf16.mxu1 %v11997_v0 }
 0x707   : > { %7200 = vmatpush3.bf16.xpose.msra.mxu0 %v10610_v10 }
 0x708   : > { %7225 = vmatprep.subr.bf16.mxu0 %v11997_v0 }
 0x70c   : > { %7182 = vmatmul.mubr.bf16.vlgmr.msra.gmra.mrb[36].mxu1 %v2761_v39  ;;  %v2949_v39 = vrot.slane %v6157_v61, %v10176_v2  ;;  %v10734_v61 = vld [vmem:[%s9778_s13 + $0x190] sm:$0xff]  }
 0x70d   : > { %7206 = vmatpush3.bf16.xpose.msra.mxu1 %v10618_v34  ;;  %7221 = vmatprep.mubr.msk.bf16.mxu1 %vm9207_vm0, %v11997_v0  ;;  %12111 = vst [vmem:[#allocation50_spill] sm:$0xff] %v10734_v61 }
 0x70e   : > { %7202 = vmatmul.mubr.bf16.vlgmr.msra.gmra.mrb[40].mxu0 %v2855_v40  ;;  %7207 = vmatprep.subr.bf16.mxu1 %v11997_v0  ;;  %v3043_v40 = vrot.slane %v3039_v35, %v10176_v2  ;;  %v10737_v35 = vld [vmem:[%s9778_s13 + $0x1d0] sm:$0xff]  }
 0x70f   : > { %7226 = vmatpush3.bf16.xpose.msra.mxu0 %v10623_v37  ;;  %7241 = vmatprep.mubr.msk.bf16.mxu0 %vm9207_vm0, %v11997_v0  ;;  %12112 = vst [vmem:[#allocation52_spill] sm:$0xff] %v10737_v35 }
 0x710   : > { %7227 = vmatprep.subr.bf16.mxu0 %v11997_v0 }
 0x715   : > { %7208 = vmatpush3.bf16.xpose.msra.mxu1 %v10636_v41 }
 0x716   : > { %7209 = vmatprep.subr.bf16.mxu1 %v11997_v0 }
 0x717   : > { %7228 = vmatpush3.bf16.xpose.msra.mxu0 %v10639_v42 }
 0x718   : > { %7229 = vmatprep.subr.bf16.mxu0 %v11997_v0 }
 0x71d   : > { %7210 = vmatpush3.bf16.xpose.msra.mxu1 %v10646_v62 }
 0x71e   : > { %7211 = vmatprep.subr.bf16.mxu1 %v11997_v0 }
 0x71f   : > { %7230 = vmatpush3.bf16.xpose.msra.mxu0 %v10649_v8 }
 0x720   : > { %7231 = vmatprep.subr.bf16.mxu0 %v11997_v0 }
 0x725   : > { %7212 = vmatpush3.bf16.xpose.msra.mxu1 %v10656_v7 }
 0x726   : > { %7213 = vmatprep.subr.bf16.mxu1 %v11997_v0 }
 0x727   : > { %7232 = vmatpush3.bf16.xpose.msra.mxu0 %v10659_v14 }
 0x728   : > { %7233 = vmatprep.subr.bf16.mxu0 %v11997_v0 }
 0x72d   : > { %7214 = vmatpush3.bf16.xpose.msra.mxu1 %v10666_v6 }
 0x72e   : > { %7215 = vmatprep.subr.bf16.mxu1 %v11997_v0 }
 0x72f   : > { %7234 = vmatpush3.bf16.xpose.msra.mxu0 %v10669_v63 }
 0x730   : > { %7235 = vmatprep.subr.bf16.mxu0 %v11997_v0 }
 0x735   : > { %7216 = vmatpush3.bf16.xpose.msra.mxu1 %v10676_v1 }
 0x736   : > { %7217 = vmatprep.subr.bf16.mxu1 %v11997_v0 }
 0x737   : > { %7236 = vmatpush3.bf16.xpose.msra.mxu0 %v10679_v20 }
 0x738   : > { %7237 = vmatprep.subr.bf16.mxu0 %v11997_v0 }
 0x73d   : > { %7218 = vmatpush3.bf16.xpose.msra.mxu1 %v10686_v16 }
 0x73e   : > { %7219 = vmatprep.subr.bf16.mxu1 %v11997_v0 }
 0x73f   : > { %7238 = vmatpush3.bf16.xpose.msra.mxu0 %v10689_v5 }
 0x740   : > { %7239 = vmatprep.subr.bf16.mxu0 %v11997_v0 }
 0x745   : > { %7220 = vmatpush3.bf16.xpose.msra.mxu1 %v10698_v15 }
 0x746   : > { %7245 = vmatprep.subr.bf16.mxu1 %v11997_v0 }
 0x747   : > { %7240 = vmatpush3.bf16.xpose.msra.mxu0 %v10701_v4 }
 0x748   : > { %7265 = vmatprep.subr.bf16.mxu0 %v11997_v0 }
 0x74c   : > { %7222 = vmatmul.mubr.bf16.vlgmr.msra.gmra.mrb[40].mxu1 %v2949_v39  ;;  %v10744_v39 = vld [vmem:[%s9778_s13 + $0x198] sm:$0xff]  }
 0x74d   : > { %7246 = vmatpush3.bf16.xpose.msra.mxu1 %v10706_v9  ;;  %7261 = vmatprep.mubr.msk.bf16.mxu1 %vm9207_vm0, %v11997_v0  ;;  %12113 = vst [vmem:[#allocation53_spill] sm:$0xff] %v10744_v39 }
 0x74e   : > { %7242 = vmatmul.mubr.bf16.vlgmr.msra.gmra.mrb[44].mxu0 %v3043_v40  ;;  %7247 = vmatprep.subr.bf16.mxu1 %v11997_v0  ;;  %v10747_v40 = vld [vmem:[%s9778_s13 + $0x1d8] sm:$0xff]  }
 0x74f   : > { %7266 = vmatpush3.bf16.xpose.msra.mxu0 %v10711_v19  ;;  %7281 = vmatprep.mubr.msk.bf16.mxu0 %vm9207_vm0, %v11997_v0  ;;  %12114 = vst [vmem:[#allocation54_spill] sm:$0xff] %v10747_v40 }
 0x750   : > { %7267 = vmatprep.subr.bf16.mxu0 %v11997_v0 }
 0x755   : > { %7248 = vmatpush3.bf16.xpose.msra.mxu1 %v10724_v49 }
 0x756   : > { %7249 = vmatprep.subr.bf16.mxu1 %v11997_v0 }
 0x757   : > { %7268 = vmatpush3.bf16.xpose.msra.mxu0 %v10727_v31 }
 0x758   : > { %7269 = vmatprep.subr.bf16.mxu0 %v11997_v0 }
 0x75d   : > { %7250 = vmatpush3.bf16.xpose.msra.mxu1 %v10734_v61  ;;  %v1108_v61 = vld [vmem:[%s720_s4] sm:$0xff] }
 0x75e   : > { %7251 = vmatprep.subr.bf16.mxu1 %v11997_v0  ;;  %vm1109_vm10 = vcmp.gt.f32.partialorder %v1108_v61, 0.0 }
 0x75f   : > { %7270 = vmatpush3.bf16.xpose.msra.mxu0 %v10737_v35 }
 0x760   : > { %7271 = vmatprep.subr.bf16.mxu0 %v11997_v0 }
 0x765   : > { %7252 = vmatpush3.bf16.xpose.msra.mxu1 %v10744_v39 }
 0x766   : > { %7253 = vmatprep.subr.bf16.mxu1 %v11997_v0 }
 0x767   : > { %7272 = vmatpush3.bf16.xpose.msra.mxu0 %v10747_v40  ;;  %v10777_v40 = vld [vmem:[%s9778_s13 + $0x1f0] sm:$0xff]  }
 0x768   : > { %7273 = vmatprep.subr.bf16.mxu0 %v11997_v0  ;;  %12120 = vst [vmem:[#allocation60_spill] sm:$0xff] %v10777_v40 }
 0x76d   : > { %7254 = vmatpush3.bf16.xpose.msra.mxu1 %v10754_v38  ;;  %v10774_v38 = vld [vmem:[%s9778_s13 + $0x1b0] sm:$0xff]  }
 0x76e   : > { %7255 = vmatprep.subr.bf16.mxu1 %v11997_v0  ;;  %12119 = vst [vmem:[#allocation59_spill] sm:$0xff] %v10774_v38 }
 0x76f   : > { %7274 = vmatpush3.bf16.xpose.msra.mxu0 %v10757_v17  ;;  %v10786_v17 = vld [vmem:[%s9778_s13 + $0x1b8] sm:$0xff]  }
 0x770   : > { %7275 = vmatprep.subr.bf16.mxu0 %v11997_v0 }
 0x775   : > { %7256 = vmatpush3.bf16.xpose.msra.mxu1 %v10764_v36  ;;  %v2502_v36 = vcombine.high %v10603_v32, %v10603_v32 }
 0x776   : > { %7257 = vmatprep.subr.bf16.mxu1 %v11997_v0 }
 0x777   : > { %7276 = vmatpush3.bf16.xpose.msra.mxu0 %v10767_v43  ;;  %v10789_v43 = vld [vmem:[%s9778_s13 + $0x1f8] sm:$0xff]   ;;  %v2510_v39 = vunpack.i.h.s16 %v2502_v36  ;;  %v6174_v35 = vpack.i.b16 %v2502_v36, %v2502_v36  ;;  %v12121_v36 = vmov -1e+30  }
 0x778   : > { %7277 = vmatprep.subr.bf16.mxu0 %v11997_v0 }
 0x77d   : > { %7258 = vmatpush3.bf16.xpose.msra.mxu1 %v10774_v38  ;;  %v3227_v38 = vpack.i.b16 %v2510_v39, %v2510_v39 }
 0x77e   : > { %7259 = vmatprep.subr.bf16.mxu1 %v11997_v0 }
 0x77f   : > { %7278 = vmatpush3.bf16.xpose.msra.mxu0 %v10777_v40  ;;  %v3137_v40 = vrot.slane %v6174_v35, %v10176_v2  ;;  %v3231_v32 = vrot.slane %v3227_v38, %v10176_v2  ;;  %v10810_v38 = vsel %vm1109_vm10, 0.0, %v12121_v36 }
 0x780   : > { %7279 = vmatprep.subr.bf16.mxu0 %v11997_v0  ;;  %v2519_v35 = vrot.slane %v10810_v38, %v10152_v21 }
 0x785   : > { %7260 = vmatpush3.bf16.xpose.msra.mxu1 %v10786_v17 }
 0x786   : > { %7285 = vmatprep.subr.bf16.mxu1 %v11997_v0 }
 0x787   : > { %7280 = vmatpush3.bf16.xpose.msra.mxu0 %v10789_v43 }
 0x788   : > { %7305 = vmatprep.subr.bf16.mxu0 %v11997_v0 }
 0x78c   : > { %7262 = vmatmul.mubr.bf16.vlgmr.msra.gmra.mrb[44].mxu1 %v3137_v40 }
 0x78d   : > { %7286 = vmatpush3.bf16.msra.mxu1 %v10410_v44  ;;  %7301 = vmatprep.mubr.msk.bf16.mxu1 %vm9207_vm0, %v11997_v0 }
 0x78e   : > { %7282 = vmatmul.mubr.bf16.vlgmr.msra.gmra.mrb[48].mxu0 %v3231_v32  ;;  %7287 = vmatprep.subr.bf16.mxu1 %v11997_v0 }
 0x78f   : > { %7306 = vmatpush3.bf16.msra.mxu0 %v10413_v45  ;;  %7321 = vmatprep.mubr.msk.bf16.mxu0 %vm9207_vm0, %v11997_v0 }
 0x790   : > { %7307 = vmatprep.subr.bf16.mxu0 %v11997_v0 }
 0x791   : > { %7288 = vmatpush3.bf16.msra.mxu1 %v10423_v50  ;;  %v2527_v50 = vcombine.high %v2519_v35, %v2519_v35 }
 0x792   : > { %7289 = vmatprep.subr.bf16.mxu1 %v11997_v0 }
 0x793   : > { %7308 = vmatpush3.bf16.msra.mxu0 %v10476_v46  ;;  %v10824_v46 = vrot.slane %v2519_v35, %v10152_v21 }
 0x794   : > { %7309 = vmatprep.subr.bf16.mxu0 %v11997_v0 }
 0x795   : > { %7290 = vmatpush3.bf16.msra.mxu1 %v10428_v51  ;;  %12122 = vst [vmem:[#allocation61_spill] sm:$0xff] %v10824_v46  ;;  %v10829_v51 = vrot.slane %v2527_v50, %v10152_v21 }
 0x796   : > { %7291 = vmatprep.subr.bf16.mxu1 %v11997_v0 }
 0x797   : > { %7310 = vmatpush3.bf16.msra.mxu0 %v10481_v47  ;;  %12123 = vst [vmem:[#allocation62_spill] sm:$0xff] %v10829_v51 }
 0x798   : > { %7311 = vmatprep.subr.bf16.mxu0 %v11997_v0 }
 0x799   : > { %7292 = vmatpush3.bf16.msra.mxu1 %v10433_v52 }
 0x79a   : > { %7293 = vmatprep.subr.bf16.mxu1 %v11997_v0 }
 0x79b   : > { %7312 = vmatpush3.bf16.msra.mxu0 %v10486_v48 }
 0x79c   : > { %7313 = vmatprep.subr.bf16.mxu0 %v11997_v0 }
 0x79d   : > { %7294 = vmatpush3.bf16.msra.mxu1 %v10438_v53 }
 0x79e   : > { %7295 = vmatprep.subr.bf16.mxu1 %v11997_v0 }
 0x79f   : > { %v2657_v47 = vpop.f32.mrb[32].mxu1  ;;  %7314 = vmatpush3.bf16.msra.mxu0 %v10491_v56 }
 0x7a0   : > { %v10834_v52 = vadd.f32 %v2657_v47, %v10824_v46  ;;  %v7143_v48 = vpop.f32.mrb[33].mxu1  ;;  %7315 = vmatprep.subr.bf16.mxu0 %v11997_v0 }
 0x7a1   : > { %v2660_v61 = vpop.f32.mrb[34].mxu1  ;;  %v2751_v39 = vpop.f32.mrb[36].mxu0  ;;  %7296 = vmatpush3.bf16.msra.mxu1 %v10443_v54  ;;  %v10858_v54 = vcombine.high %v10824_v46, %v10824_v46 }
 0x7a2   : > { %v10839_v53 = vadd.f32 %v2751_v39, %v10829_v51  ;;  %v7144_v40 = vpop.f32.mrb[35].mxu1  ;;  %v7163_v32 = vpop.f32.mrb[37].mxu0  ;;  %v3322_v36 = vsel %vm3321_vm11, %v10834_v52, -inf  ;;  %7297 = vmatprep.subr.bf16.mxu1 %v11997_v0 }
 0x7a3   : > { %v2754_v56 = vpop.f32.mrb[38].mxu0  ;;  %3323 = vmax.xlane.f32.xlu0 %v3322_v36  ;;  %7316 = vmatpush3.bf16.msra.mxu0 %v10496_v57  ;;  %12124 = vst [vmem:[#allocation63_spill] sm:$0xff] %v10858_v54 }
 0x7a4   : > { %v7164_v35 = vpop.f32.mrb[39].mxu0  ;;  %v3325_v50 = vsel %vm3321_vm11, %v10839_v53, -inf  ;;  %7317 = vmatprep.subr.bf16.mxu0 %v11997_v0 }
 0x7a5   : > { %3326 = vmax.xlane.f32.xlu1 %v3325_v50  ;;  %7298 = vmatpush3.bf16.msra.mxu1 %v10448_v55  ;;  %v10862_v55 = vcombine.high %v10829_v51, %v10829_v51  ;;  %v2512_v35 = vcombine.high %v10810_v38, %v10810_v38 }
 0x7a6   : > { %7299 = vmatprep.subr.bf16.mxu1 %v11997_v0 }
 0x7a7   : > { %7318 = vmatpush3.bf16.msra.mxu0 %v10501_v58  ;;  %12125 = vst [vmem:[#allocation64_spill] sm:$0xff] %v10862_v55  ;;  %v2526_v50 = vrot.slane %v2512_v35, %v10152_v21 }
 0x7a8   : > { %7319 = vmatprep.subr.bf16.mxu0 %v11997_v0 }
 0x7a9   : > { %7300 = vmatpush3.bf16.msra.mxu1 %v10506_v59 }
 0x7aa   : > { %7325 = vmatprep.subr.bf16.mxu1 %v11997_v0 }
 0x7ab   : > { %7320 = vmatpush3.bf16.msra.mxu0 %v10510_v60 }
 0x7ac   : > { %7345 = vmatprep.subr.bf16.mxu0 %v11997_v0 }
 0x7df   : > { %v2845_v57 = vpop.f32.mrb[36].mxu1 }
 0x7e0   : > { %v10865_v58 = vadd.f32 %v2845_v57, %v10858_v54  ;;  %v7183_v47 = vpop.f32.mrb[37].mxu1  ;;  %v2528_v57 = vcombine.high %v2526_v50, %v2526_v50 }
 0x7e1   : > { %v2848_v59 = vpop.f32.mrb[38].mxu1  ;;  %v2939_v48 = vpop.f32.mrb[40].mxu0  ;;  %v10878_v47 = vrot.slane %v2526_v50, %v10152_v21 }
 0x7e2   : > { %v10868_v61 = vadd.f32 %v2939_v48, %v10862_v55  ;;  %v7184_v60 = vpop.f32.mrb[39].mxu1  ;;  %v7203_v39 = vpop.f32.mrb[41].mxu0  ;;  %v3328_v40 = vsel %vm3321_vm11, %v10865_v58, -inf  ;;  %v10881_v59 = vrot.slane %v2528_v57, %v10152_v21 }
 0x7e3   : > { %v2942_v32 = vpop.f32.mrb[42].mxu0  ;;  %3329 = vmax.xlane.f32.xlu0 %v3328_v40  ;;  %12126 = vst [vmem:[#allocation65_spill] sm:$0xff] %v10878_v47 }
 0x7e4   : > { %v7204_v36 = vpop.f32.mrb[43].mxu0  ;;  %v3331_v56 = vsel %vm3321_vm11, %v10868_v61, -inf  ;;  %12127 = vst [vmem:[#allocation66_spill] sm:$0xff] %v10881_v59 }
 0x7e5   : > { %3332 = vmax.xlane.f32.xlu1 %v3331_v56 }
 0x81f   : > { %v3033_v48 = vpop.f32.mrb[40].mxu1 }
 0x820   : > { %v10884_v60 = vadd.f32 %v3033_v48, %v10878_v47  ;;  %v7223_v39 = vpop.f32.mrb[41].mxu1 }
 0x821   : > { %v3036_v40 = vpop.f32.mrb[42].mxu1  ;;  %v3127_v32 = vpop.f32.mrb[44].mxu0 }
 0x822   : > { %v10887_v36 = vadd.f32 %v3127_v32, %v10881_v59  ;;  %v7224_v38 = vpop.f32.mrb[43].mxu1  ;;  %v7243_v56 = vpop.f32.mrb[45].mxu0  ;;  %v3334_v35 = vsel %vm3321_vm11, %v10884_v60, -inf }
 0x823   : > { %v3130_v50 = vpop.f32.mrb[46].mxu0  ;;  %3335 = vmax.xlane.f32.xlu0 %v3334_v35 }
 0x824   : > { %v7244_v0 = vpop.f32.mrb[47].mxu0  ;;  %v3337_v57 = vsel %vm3321_vm11, %v10887_v36, -inf }
 0x825   : > { %3338 = vmax.xlane.f32.xlu1 %v3337_v57  ;;  %v5613_v57 = vrot.slane %v10839_v53, 7 }
 0x830   : > { %v3324_v48 = vpop.xlane.xlu0 %3323 }
 0x831   : > { %v3346_v39 = vsub.f32 %v10834_v52, %v3324_v48  ;;  %v5615_v48 = vrot.slane %v10865_v58, 6 }
 0x832   : > { %v3327_v40 = vpop.xlane.xlu1 %3326 }
 0x833   : > { %v3354_v55 = vmul.f32 1.442695, %v3346_v39  ;;  %v3347_v32 = vsub.f32 %v10839_v53, %v3327_v40  ;;  %v5617_v39 = vrot.slane %v10868_v61, 5 }
 0x835   : > { %8452 = vpow2.f32 %v3354_v55  ;;  %v3356_v38 = vmul.f32 1.442695, %v3347_v32  ;;  %v5614_v55 = vsel %vm2367_vm3, %v5613_v57, %v10834_v52  ;;  %v5619_v32 = vrot.slane %v10884_v60, 4 }
 0x836   : > { %v5616_v40 = vsel %vm2370_vm4, %v5615_v48, %v5614_v55 }
 0x837   : > { %8454 = vpow2.f32 %v3356_v38  ;;  %v10912_v38 = vcombine.high %v10878_v47, %v10878_v47  ;;  %v5618_v53 = vsel %vm2373_vm5, %v5617_v39, %v5616_v40 }
 0x838   : > { %v5620_v52 = vsel %vm2376_vm6, %v5619_v32, %v5618_v53 }
 0x839   : > { %12128 = vst [vmem:[#allocation67_spill] sm:$0xff] %v10912_v38 }
 0x83f   : > { %v10895_v56 = vpop.eup %8452 }
 0x840   : > { %v3370_v35 = vsel %vm3321_vm11, %v10895_v56, 0.0 }
 0x841   : > { %v10899_v0 = vpop.eup %8454  ;;  %3371 = vadd.xlane.f32.xlu0 %v3370_v35  ;;  %v10916_v35 = vcombine.high %v10881_v59, %v10881_v59 }
 0x842   : > { %v3373_v50 = vsel %vm3321_vm11, %v10899_v0, 0.0 }
 0x843   : > { %3374 = vadd.xlane.f32.xlu1 %v3373_v50  ;;  %v5621_v50 = vrot.slane %v10887_v36, 3 }
 0x845   : > { %v5622_v32 = vsel %vm2379_vm7, %v5621_v50, %v5620_v52 }
 0x85f   : > { %v3221_v54 = vpop.f32.mrb[44].mxu1 }
 0x860   : > { %v10922_v57 = vadd.f32 %v3221_v54, %v10912_v38  ;;  %v7263_v48 = vpop.f32.mrb[45].mxu1 }
 0x861   : > { %v3224_v55 = vpop.f32.mrb[46].mxu1  ;;  %v3315_v51 = vpop.f32.mrb[48].mxu0 }
 0x862   : > { %v5623_v47 = vrot.slane %v10922_v57, 2  ;;  %v10926_v59 = vadd.f32 %v3315_v51, %v10916_v35  ;;  %v7264_v46 = vpop.f32.mrb[47].mxu1  ;;  %v7283_v39 = vpop.f32.mrb[49].mxu0  ;;  %v3340_v40 = vsel %vm3321_vm11, %v10922_v57, -inf }
 0x863   : > { %v3318_v53 = vpop.f32.mrb[50].mxu0  ;;  %3341 = vmax.xlane.f32.xlu0 %v3340_v40 }
 0x864   : > { %v5624_v54 = vsel %vm2382_vm8, %v5623_v47, %v5622_v32  ;;  %v5625_v48 = vrot.slane %v10926_v59, 1  ;;  %v7284_v55 = vpop.f32.mrb[51].mxu0  ;;  %v3343_v38 = vsel %vm3321_vm11, %v10926_v59, -inf }
 0x865   : > { %3344 = vmax.xlane.f32.xlu1 %v3343_v38 }
 0x866   : > { %v5626_v51 = vsel %vm2385_vm9, %v5625_v48, %v5624_v54 }
 0x867   : > { %5628 = vst [vmem:[%s834_s15] sm:$0xff] %v5626_v51 }
 0x870   : > { %v3330_v46 = vpop.xlane.xlu0 %3329 }
 0x871   : > { %v3348_v39 = vsub.f32 %v10865_v58, %v3330_v46 }
 0x872   : > { %v3333_v50 = vpop.xlane.xlu1 %3332 }
 0x873   : > { %v3358_v52 = vmul.f32 1.442695, %v3348_v39  ;;  %v3349_v40 = vsub.f32 %v10868_v61, %v3333_v50 }
 0x875   : > { %8456 = vpow2.f32 %v3358_v52  ;;  %v3360_v47 = vmul.f32 1.442695, %v3349_v40 }
 0x877   : > { %8458 = vpow2.f32 %v3360_v47 }
 0x87f   : > { %v10941_v32 = vpop.eup %8456 }
 0x880   : > { %v3376_v38 = vsel %vm3321_vm11, %v10941_v32, 0.0 }
 0x881   : > { %v10945_v53 = vpop.eup %8458  ;;  %3377 = vadd.xlane.f32.xlu0 %v3376_v38 }
 0x882   : > { %v3379_v54 = vsel %vm3321_vm11, %v10945_v53, 0.0 }
 0x883   : > { %3380 = vadd.xlane.f32.xlu1 %v3379_v54 }
 0x8b0   : > { %v3336_v58 = vpop.xlane.xlu0 %3335 }
 0x8b1   : > { %v3350_v48 = vsub.f32 %v10884_v60, %v3336_v58 }
 0x8b2   : > { %v3339_v55 = vpop.xlane.xlu1 %3338 }
 0x8b3   : > { %v3362_v61 = vmul.f32 1.442695, %v3350_v48  ;;  %v3351_v51 = vsub.f32 %v10887_v36, %v3339_v55 }
 0x8b5   : > { %8460 = vpow2.f32 %v3362_v61  ;;  %v3364_v46 = vmul.f32 1.442695, %v3351_v51  ;;  %v12129_v61 = vmov 0.0  }
 0x8b7   : > { %8462 = vpow2.f32 %v3364_v46 }
 0x8bf   : > { %v10951_v39 = vpop.eup %8460 }
 0x8c0   : > { %v3382_v50 = vsel %vm3321_vm11, %v10951_v39, 0.0 }
 0x8c1   : > { %v10955_v52 = vpop.eup %8462  ;;  %3383 = vadd.xlane.f32.xlu0 %v3382_v50 }
 0x8c2   : > { %v3385_v40 = vsel %vm3321_vm11, %v10955_v52, 0.0 }
 0x8c3   : > { %3386 = vadd.xlane.f32.xlu1 %v3385_v40 }
 0x8ce   : > { %v3372_v60 = vpop.xlane.xlu0 %3371 }
 0x8cf   : > { %8464 = vrcp.f32 %v3372_v60 }
 0x8d0   : > { %v3375_v47 = vpop.xlane.xlu1 %3374 }
 0x8d1   : > { %8466 = vrcp.f32 %v3375_v47 }
 0x8d9   : > { %v8465_v36 = vpop.eup %8464 }
 0x8da   : > { %v3402_v38 = vmul.f32 %v8465_v36, %v10895_v56 }
 0x8db   : > { %v8467_v54 = vpop.eup %8466 }
 0x8dc   : > { %v3410_v58 = vpack.c.bf16 %v3402_v38, %v3402_v38  ;;  %v3403_v48 = vmul.f32 %v8467_v54, %v10899_v0 }
 0x8de   : > { %7302 = vmatmul.mubr.bf16.vlgmr.msra.gmra.mrb[48].mxu1 %v3410_v58  ;;  %v3411_v55 = vpack.c.bf16 %v3403_v48, %v3403_v48 }
 0x8df   : > { %7326 = vmatpush3.bf16.msra.mxu1 %v10516_v11  ;;  %7341 = vmatprep.mubr.msk.bf16.mxu1 %vm9207_vm0, %v12129_v61 }
 0x8e0   : > { %7322 = vmatmul.mubr.bf16.vlgmr.msra.gmra.mrb[52].mxu0 %v3411_v55  ;;  %7327 = vmatprep.subr.bf16.mxu1 %v12129_v61 }
 0x8e1   : > { %7346 = vmatpush3.bf16.msra.mxu0 %v10531_v12  ;;  %7361 = vmatprep.mubr.msk.bf16.mxu0 %vm9207_vm0, %v12129_v61 }
 0x8e2   : > { %7347 = vmatprep.subr.bf16.mxu0 %v12129_v61 }
 0x8e3   : > { %7328 = vmatpush3.bf16.msra.mxu1 %v10544_v3 }
 0x8e4   : > { %7329 = vmatprep.subr.bf16.mxu1 %v12129_v61 }
 0x8e5   : > { %7348 = vmatpush3.bf16.msra.mxu0 %v10547_v22 }
 0x8e6   : > { %7349 = vmatprep.subr.bf16.mxu0 %v12129_v61 }
 0x8e7   : > { %7330 = vmatpush3.bf16.msra.mxu1 %v10554_v13 }
 0x8e8   : > { %7331 = vmatprep.subr.bf16.mxu1 %v12129_v61 }
 0x8e9   : > { %7350 = vmatpush3.bf16.msra.mxu0 %v10557_v24 }
 0x8ea   : > { %7351 = vmatprep.subr.bf16.mxu0 %v12129_v61 }
 0x8eb   : > { %7332 = vmatpush3.bf16.msra.mxu1 %v10564_v18 }
 0x8ec   : > { %7333 = vmatprep.subr.bf16.mxu1 %v12129_v61 }
 0x8ed   : > { %7352 = vmatpush3.bf16.msra.mxu0 %v10567_v23 }
 0x8ee   : > { %7353 = vmatprep.subr.bf16.mxu0 %v12129_v61 }
 0x8ef   : > { %7334 = vmatpush3.bf16.msra.mxu1 %v10574_v25 }
 0x8f0   : > { %v3342_v3 = vpop.xlane.xlu0 %3341  ;;  %7335 = vmatprep.subr.bf16.mxu1 %v12129_v61 }
 0x8f1   : > { %v3352_v22 = vsub.f32 %v10922_v57, %v3342_v3  ;;  %7354 = vmatpush3.bf16.msra.mxu0 %v10577_v26 }
 0x8f2   : > { %v3345_v13 = vpop.xlane.xlu1 %3344  ;;  %7355 = vmatprep.subr.bf16.mxu0 %v12129_v61 }
 0x8f3   : > { %v3366_v24 = vmul.f32 1.442695, %v3352_v22  ;;  %v3353_v18 = vsub.f32 %v10926_v59, %v3345_v13  ;;  %7336 = vmatpush3.bf16.msra.mxu1 %v10584_v27 }
 0x8f4   : > { %7337 = vmatprep.subr.bf16.mxu1 %v12129_v61 }
 0x8f5   : > { %8468 = vpow2.f32 %v3366_v24  ;;  %v3368_v23 = vmul.f32 1.442695, %v3353_v18  ;;  %7356 = vmatpush3.bf16.msra.mxu0 %v10587_v28 }
 0x8f6   : > { %7357 = vmatprep.subr.bf16.mxu0 %v12129_v61 }
 0x8f7   : > { %8470 = vpow2.f32 %v3368_v23  ;;  %7338 = vmatpush3.bf16.msra.mxu1 %v10594_v29 }
 0x8f8   : > { %7339 = vmatprep.subr.bf16.mxu1 %v12129_v61 }
 0x8f9   : > { %7358 = vmatpush3.bf16.msra.mxu0 %v10597_v30 }
 0x8fa   : > { %7359 = vmatprep.subr.bf16.mxu0 %v12129_v61 }
 0x8fb   : > { %7340 = vmatpush3.bf16.msra.mxu1 %v10607_v33 }
 0x8fc   : > { %7365 = vmatprep.subr.bf16.mxu1 %v12129_v61 }
 0x8fd   : > { %7360 = vmatpush3.bf16.msra.mxu0 %v10610_v10 }
 0x8fe   : > { %7385 = vmatprep.subr.bf16.mxu0 %v12129_v61 }
 0x8ff   : > { %v10999_v25 = vpop.eup %8468 }
 0x900   : > { %v3388_v26 = vsel %vm3321_vm11, %v10999_v25, 0.0 }
 0x901   : > { %v11003_v27 = vpop.eup %8470  ;;  %3389 = vadd.xlane.f32.xlu0 %v3388_v26  ;;  %v8342_v26 = vld [vmem:[#allocation14 + $0x4] ss:$12 sps:$4 sm:$0xff]  }
 0x902   : > { %v3391_v28 = vsel %vm3321_vm11, %v11003_v27, 0.0 }
 0x903   : > { %3392 = vadd.xlane.f32.xlu1 %v3391_v28  ;;  %v8346_v28 = vld [vmem:[#allocation14 + $0x1c] ss:$12 sps:$4 sm:$0xff]  }
 0x90e   : > { %v3378_v29 = vpop.xlane.xlu0 %3377 }
 0x90f   : > { %8472 = vrcp.f32 %v3378_v29  ;;  %v8347_v29 = vld [vmem:[#allocation14 + $0x20] ss:$12 sps:$4 sm:$0xff]  }
 0x910   : > { %v3381_v30 = vpop.xlane.xlu1 %3380 }
 0x911   : > { %8474 = vrcp.f32 %v3381_v30  ;;  %v8344_v30 = vld [vmem:[#allocation14 + $0x18] ss:$12 sps:$4 sm:$0xff]  }
 0x919   : > { %v8473_v33 = vpop.eup %8472 }
 0x91a   : > { %v3404_v10 = vmul.f32 %v8473_v33, %v10941_v32  ;;  %v12138_v32 = vld [vmem:[#allocation59_spill] sm:$0xff] }
 0x91b   : > { %v8475_v59 = vpop.eup %8474  ;;  %v8350_v33 = vld [vmem:[#allocation14 + $0x34] ss:$12 sps:$4 sm:$0xff]  }
 0x91c   : > { %v3412_v56 = vpack.c.bf16 %v3404_v10, %v3404_v10  ;;  %v3405_v0 = vmul.f32 %v8475_v59, %v10945_v53  ;;  %v12139_v53 = vld [vmem:[#allocation60_spill] sm:$0xff]  ;;  %v8351_v10 = vld [vmem:[#allocation14 + $0x38] ss:$12 sps:$4 sm:$0xff]  }
 0x91d   : > { %v8348_v59 = vld [vmem:[#allocation14 + $0x30] ss:$12 sps:$4 sm:$0xff]  }
 0x91e   : > { %7342 = vmatmul.mubr.bf16.vlgmr.msra.gmra.mrb[52].mxu1 %v3412_v56  ;;  %v3413_v57 = vpack.c.bf16 %v3405_v0, %v3405_v0  ;;  %v8354_v56 = vld [vmem:[#allocation14 + $0x4c] ss:$12 sps:$4 sm:$0xff]   ;;  %v8355_v0 = vld [vmem:[#allocation14 + $0x50] ss:$12 sps:$4 sm:$0xff]  }
 0x91f   : > { %7366 = vmatpush3.bf16.msra.mxu1 %v10618_v34  ;;  %7381 = vmatprep.mubr.msk.bf16.mxu1 %vm9207_vm0, %v12129_v61 }
 0x920   : > { %7362 = vmatmul.mubr.bf16.vlgmr.msra.gmra.mrb[56].mxu0 %v3413_v57  ;;  %7367 = vmatprep.subr.bf16.mxu1 %v12129_v61  ;;  %v8352_v57 = vld [vmem:[#allocation14 + $0x48] ss:$12 sps:$4 sm:$0xff]  }
 0x921   : > { %7386 = vmatpush3.bf16.msra.mxu0 %v10623_v37  ;;  %7401 = vmatprep.mubr.msk.bf16.mxu0 %vm9207_vm0, %v12129_v61 }
 0x922   : > { %7387 = vmatprep.subr.bf16.mxu0 %v12129_v61 }
 0x923   : > { %7368 = vmatpush3.bf16.msra.mxu1 %v10636_v41 }
 0x924   : > { %7369 = vmatprep.subr.bf16.mxu1 %v12129_v61 }
 0x925   : > { %7388 = vmatpush3.bf16.msra.mxu0 %v10639_v42 }
 0x926   : > { %7389 = vmatprep.subr.bf16.mxu0 %v12129_v61 }
 0x927   : > { %7370 = vmatpush3.bf16.msra.mxu1 %v10646_v62 }
 0x928   : > { %7371 = vmatprep.subr.bf16.mxu1 %v12129_v61 }
 0x929   : > { %7390 = vmatpush3.bf16.msra.mxu0 %v10649_v8 }
 0x92a   : > { %7391 = vmatprep.subr.bf16.mxu0 %v12129_v61 }
 0x92b   : > { %7372 = vmatpush3.bf16.msra.mxu1 %v10656_v7 }
 0x92c   : > { %7373 = vmatprep.subr.bf16.mxu1 %v12129_v61 }
 0x92d   : > { %7392 = vmatpush3.bf16.msra.mxu0 %v10659_v14 }
 0x92e   : > { %7393 = vmatprep.subr.bf16.mxu0 %v12129_v61 }
 0x92f   : > { %7374 = vmatpush3.bf16.msra.mxu1 %v10666_v6 }
 0x930   : > { %7375 = vmatprep.subr.bf16.mxu1 %v12129_v61 }
 0x931   : > { %7394 = vmatpush3.bf16.msra.mxu0 %v10669_v63 }
 0x932   : > { %7395 = vmatprep.subr.bf16.mxu0 %v12129_v61 }
 0x933   : > { %7376 = vmatpush3.bf16.msra.mxu1 %v10676_v1  ;;  %v12130_v1 = vld [vmem:[#allocation50_spill] sm:$0xff] }
 0x934   : > { %7377 = vmatprep.subr.bf16.mxu1 %v12129_v61 }
 0x935   : > { %7396 = vmatpush3.bf16.msra.mxu0 %v10679_v20  ;;  %v12131_v20 = vld [vmem:[#allocation52_spill] sm:$0xff] }
 0x936   : > { %7397 = vmatprep.subr.bf16.mxu0 %v12129_v61 }
 0x937   : > { %7378 = vmatpush3.bf16.msra.mxu1 %v10686_v16  ;;  %v12132_v16 = vld [vmem:[#allocation53_spill] sm:$0xff] }
 0x938   : > { %7379 = vmatprep.subr.bf16.mxu1 %v12129_v61 }
 0x939   : > { %7398 = vmatpush3.bf16.msra.mxu0 %v10689_v5  ;;  %v12133_v5 = vld [vmem:[#allocation54_spill] sm:$0xff] }
 0x93a   : > { %7399 = vmatprep.subr.bf16.mxu0 %v12129_v61 }
 0x93b   : > { %7380 = vmatpush3.bf16.msra.mxu1 %v10698_v15  ;;  %v12134_v15 = vld [vmem:[#allocation55_spill] sm:$0xff] }
 0x93c   : > { %7405 = vmatprep.subr.bf16.mxu1 %v12129_v61 }
 0x93d   : > { %7400 = vmatpush3.bf16.msra.mxu0 %v10701_v4  ;;  %v12135_v4 = vld [vmem:[#allocation56_spill] sm:$0xff] }
 0x93e   : > { %7425 = vmatprep.subr.bf16.mxu0 %v12129_v61 }
 0x94e   : > { %v3384_v41 = vpop.xlane.xlu0 %3383 }
 0x94f   : > { %8476 = vrcp.f32 %v3384_v41  ;;  %v8358_v41 = vld [vmem:[#allocation14 + $0x64] ss:$12 sps:$4 sm:$0xff]  }
 0x950   : > { %v3387_v42 = vpop.xlane.xlu1 %3386 }
 0x951   : > { %8478 = vrcp.f32 %v3387_v42  ;;  %v8359_v42 = vld [vmem:[#allocation14 + $0x68] ss:$12 sps:$4 sm:$0xff]  }
 0x959   : > { %v8477_v62 = vpop.eup %8476 }
 0x95a   : > { %v3406_v8 = vmul.f32 %v8477_v62, %v10951_v39  ;;  %v8356_v62 = vld [vmem:[#allocation14 + $0x60] ss:$12 sps:$4 sm:$0xff]  }
 0x95b   : > { %v8479_v7 = vpop.eup %8478 }
 0x95c   : > { %v3414_v14 = vpack.c.bf16 %v3406_v8, %v3406_v8  ;;  %v3407_v6 = vmul.f32 %v8479_v7, %v10955_v52  ;;  %v8362_v8 = vld [vmem:[#allocation14 + $0x7c] ss:$12 sps:$4 sm:$0xff]   ;;  %v8360_v7 = vld [vmem:[#allocation14 + $0x78] ss:$12 sps:$4 sm:$0xff]  }
 0x95e   : > { %7382 = vmatmul.mubr.bf16.vlgmr.msra.gmra.mrb[56].mxu1 %v3414_v14  ;;  %v3415_v63 = vpack.c.bf16 %v3407_v6, %v3407_v6  ;;  %v8363_v14 = vld [vmem:[#allocation14 + $0x80] ss:$12 sps:$4 sm:$0xff]  }
 0x95f   : > { %7406 = vmatpush3.bf16.msra.mxu1 %v10706_v9  ;;  %7421 = vmatprep.mubr.msk.bf16.mxu1 %vm9207_vm0, %v12129_v61 }
 0x960   : > { %7402 = vmatmul.mubr.bf16.vlgmr.msra.gmra.mrb[60].mxu0 %v3415_v63  ;;  %7407 = vmatprep.subr.bf16.mxu1 %v12129_v61 }
 0x961   : > { %7426 = vmatpush3.bf16.msra.mxu0 %v10711_v19  ;;  %7441 = vmatprep.mubr.msk.bf16.mxu0 %vm9207_vm0, %v12129_v61 }
 0x962   : > { %7427 = vmatprep.subr.bf16.mxu0 %v12129_v61 }
 0x963   : > { %7408 = vmatpush3.bf16.msra.mxu1 %v10724_v49  ;;  %v12136_v49 = vld [vmem:[#allocation57_spill] sm:$0xff] }
 0x964   : > { %7409 = vmatprep.subr.bf16.mxu1 %v12129_v61 }
 0x965   : > { %7428 = vmatpush3.bf16.msra.mxu0 %v10727_v31  ;;  %v12137_v31 = vld [vmem:[#allocation58_spill] sm:$0xff] }
 0x966   : > { %7429 = vmatprep.subr.bf16.mxu0 %v12129_v61 }
 0x967   : > { %7410 = vmatpush3.bf16.msra.mxu1 %v12130_v1 }
 0x968   : > { %7411 = vmatprep.subr.bf16.mxu1 %v12129_v61 }
 0x969   : > { %7430 = vmatpush3.bf16.msra.mxu0 %v12131_v20  ;;  %v8366_v20 = vld [vmem:[#allocation14 + $0x94] ss:$12 sps:$4 sm:$0xff]  }
 0x96a   : > { %7431 = vmatprep.subr.bf16.mxu0 %v12129_v61 }
 0x96b   : > { %7412 = vmatpush3.bf16.msra.mxu1 %v12132_v16 }
 0x96c   : > { %7413 = vmatprep.subr.bf16.mxu1 %v12129_v61 }
 0x96d   : > { %7432 = vmatpush3.bf16.msra.mxu0 %v12133_v5 }
 0x96e   : > { %7433 = vmatprep.subr.bf16.mxu0 %v12129_v61 }
 0x96f   : > { %7414 = vmatpush3.bf16.msra.mxu1 %v12134_v15  ;;  %v8364_v15 = vld [vmem:[#allocation14 + $0x90] ss:$12 sps:$4 sm:$0xff]  }
 0x970   : > { %7415 = vmatprep.subr.bf16.mxu1 %v12129_v61 }
 0x971   : > { %7434 = vmatpush3.bf16.msra.mxu0 %v12135_v4  ;;  %v8367_v4 = vld [vmem:[#allocation14 + $0x98] ss:$12 sps:$4 sm:$0xff]  }
 0x972   : > { %7435 = vmatprep.subr.bf16.mxu0 %v12129_v61 }
 0x973   : > { %7416 = vmatpush3.bf16.msra.mxu1 %v12136_v49 }
 0x974   : > { %7417 = vmatprep.subr.bf16.mxu1 %v12129_v61 }
 0x975   : > { %7436 = vmatpush3.bf16.msra.mxu0 %v12137_v31 }
 0x976   : > { %7437 = vmatprep.subr.bf16.mxu0 %v12129_v61 }
 0x977   : > { %7418 = vmatpush3.bf16.msra.mxu1 %v12138_v32 }
 0x978   : > { %7419 = vmatprep.subr.bf16.mxu1 %v12129_v61 }
 0x979   : > { %7438 = vmatpush3.bf16.msra.mxu0 %v12139_v53 }
 0x97a   : > { %7439 = vmatprep.subr.bf16.mxu0 %v12129_v61 }
 0x97b   : > { %7420 = vmatpush3.bf16.msra.mxu1 %v10786_v17 }
 0x97c   : > { %3955 = vmatprep.subr.bf16.mxu1 %v8342_v26 }
 0x97d   : > { %7440 = vmatpush3.bf16.msra.mxu0 %v10789_v43 }
 0x97e   : > { %7445 = vmatprep.subr.bf16.mxu0 %v12129_v61 }
 0x98e   : > { %v3390_v51 = vpop.xlane.xlu0 %3389 }
 0x98f   : > { %8480 = vrcp.f32 %v3390_v51 }
 0x990   : > { %v3393_v46 = vpop.xlane.xlu1 %3392 }
 0x991   : > { %8482 = vrcp.f32 %v3393_v46 }
 0x999   : > { %v8481_v39 = vpop.eup %8480 }
 0x99a   : > { %v3408_v50 = vmul.f32 %v8481_v39, %v10999_v25  ;;  %v8340_v25 = vld [vmem:[#allocation14] ss:$12 sps:$4 sm:$0xff]  }
 0x99b   : > { %v8483_v52 = vpop.eup %8482 }
 0x99c   : > { %v3416_v40 = vpack.c.bf16 %v3408_v50, %v3408_v50  ;;  %v3409_v60 = vmul.f32 %v8483_v52, %v11003_v27  ;;  %v8343_v27 = vld [vmem:[#allocation14 + $0x8] ss:$12 sps:$4 sm:$0xff]   ;;  %v8370_v52 = vld [vmem:[#allocation14 + $0xac] ss:$12 sps:$4 sm:$0xff]  }
 0x99e   : > { %7422 = vmatmul.mubr.bf16.vlgmr.msra.gmra.mrb[60].mxu1 %v3416_v40  ;;  %v3417_v47 = vpack.c.bf16 %v3409_v60, %v3409_v60  ;;  %v8368_v40 = vld [vmem:[#allocation14 + $0xa8] ss:$12 sps:$4 sm:$0xff]   ;;  %v8371_v60 = vld [vmem:[#allocation14 + $0xb0] ss:$12 sps:$4 sm:$0xff]  }
 0x99f   : > { %3956 = vmatpush1.bf16.msra.mxu1 %v8340_v25 }
 0x9a0   : > { %7442 = vmatmul.mubr.bf16.vlgmr.msra.gmra.mrb[64].mxu0 %v3417_v47  ;;  %3957 = vmatprep.subr.bf16.mxu1 %v8346_v28 }
 0x9a1   : > { %7461 = vmatprep.mubr.msk.bf16.mxu0 %vm9207_vm0, %v12129_v61  ;;  %7446 = vmatpush3.bf16.msra.mxu0 %v8343_v27 }
 0x9a2   : > { %7447 = vmatprep.subr.bf16.mxu0 %v12129_v61 }
 0x9a3   : > { %3958 = vmatpush1.bf16.msra.mxu1 %v8344_v30 }
 0x9a4   : > { %3959 = vmatprep.subr.bf16.mxu1 %v8350_v33 }
 0x9a5   : > { %7448 = vmatpush3.bf16.msra.mxu0 %v8347_v29 }
 0x9a6   : > { %7449 = vmatprep.subr.bf16.mxu0 %v12129_v61 }
 0x9a7   : > { %3960 = vmatpush1.bf16.msra.mxu1 %v8348_v59 }
 0x9a8   : > { %3961 = vmatprep.subr.bf16.mxu1 %v8354_v56 }
 0x9a9   : > { %7450 = vmatpush3.bf16.msra.mxu0 %v8351_v10 }
 0x9aa   : > { %7451 = vmatprep.subr.bf16.mxu0 %v12129_v61 }
 0x9ab   : > { %3962 = vmatpush1.bf16.msra.mxu1 %v8352_v57 }
 0x9ac   : > { %3963 = vmatprep.subr.bf16.mxu1 %v8358_v41 }
 0x9ad   : > { %7452 = vmatpush3.bf16.msra.mxu0 %v8355_v0 }
 0x9ae   : > { %7453 = vmatprep.subr.bf16.mxu0 %v12129_v61 }
 0x9af   : > { %3964 = vmatpush1.bf16.msra.mxu1 %v8356_v62 }
 0x9b0   : > { %3965 = vmatprep.subr.bf16.mxu1 %v8362_v8 }
 0x9b1   : > { %v11086_v43 = vpop.f32.mrb[48].mxu1  ;;  %7454 = vmatpush3.bf16.msra.mxu0 %v8359_v42 }
 0x9b2   : > { %12140 = vst [vmem:[#allocation50_spill] sm:$0xff] %v11086_v43  ;;  %v7303_v17 = vpop.f32.mrb[49].mxu1  ;;  %v3738_v54 = vpack.c.bf16 %v11086_v43, %v11086_v43  ;;  %7455 = vmatprep.subr.bf16.mxu0 %v12129_v61  ;;  %v11473_v43 = vld [vmem:[%s9778_s13 + $0x1e8] sm:$0xff]  }
 0x9b3   : > { %v3455_v36 = vpop.f32.mrb[50].mxu1  ;;  %v11088_v38 = vpop.f32.mrb[52].mxu0  ;;  %3966 = vmatpush1.bf16.msra.mxu1 %v8360_v7  ;;  %12157 = vst [vmem:[#allocation69_spill] sm:$0xff] %v11473_v43 }
 0x9b4   : > { %12141 = vst [vmem:[#allocation52_spill] sm:$0xff] %v11088_v38  ;;  %v3739_v58 = vpack.c.bf16 %v11088_v38, %v11088_v38  ;;  %v7304_v48 = vpop.f32.mrb[51].mxu1  ;;  %v7323_v55 = vpop.f32.mrb[53].mxu0  ;;  %v3803_v24 = vunpack.c.l.b16 %v3738_v54  ;;  %3967 = vmatprep.subr.bf16.mxu1 %v8366_v20  ;;  %v8374_v54 = vld [vmem:[#allocation16 + $0x4] ss:$12 sps:$4 sm:$0xff]  }
 0x9b5   : > { %v3495_v3 = vpop.f32.mrb[54].mxu0  ;;  %7456 = vmatpush3.bf16.msra.mxu0 %v8363_v14  ;;  %v11468_v38 = vld [vmem:[%s9778_s13 + $0x1a8] sm:$0xff]  }
 0x9b6   : > { %v3804_v22 = vunpack.c.l.b16 %v3739_v58  ;;  %v7324_v13 = vpop.f32.mrb[55].mxu0  ;;  %7457 = vmatprep.subr.bf16.mxu0 %v12129_v61  ;;  %v9210_v58 = vmov 0   ;;  %12156 = vst [vmem:[#allocation68_spill] sm:$0xff] %v11468_v38 }
 0x9b7   : > { %3968 = vmatpush1.bf16.msra.mxu1 %v8364_v15  ;;  %3987 = vmatprep.mubr.bf16.mxu1 %v9210_v58 }
 0x9b8   : > { %v3811_v18 = vrot.slane %v3804_v22, 7  ;;  %3969 = vmatprep.subr.bf16.mxu1 %v8370_v52  ;;  %v8383_v52 = vld [vmem:[#allocation16 + $0x38] ss:$12 sps:$4 sm:$0xff]  }
 0x9b9   : > { %7458 = vmatpush3.bf16.msra.mxu0 %v8367_v4 }
 0x9ba   : > { %v11095_v23 = vsel %vm2367_vm3, %v3811_v18, %v3803_v24  ;;  %7459 = vmatprep.subr.bf16.mxu0 %v12129_v61 }
 0x9bb   : > { %3970 = vmatpush1.bf16.msra.mxu1 %v8368_v40  ;;  %v8386_v40 = vld [vmem:[#allocation16 + $0x4c] ss:$12 sps:$4 sm:$0xff]  }
 0x9bc   : > { %4213 = vmatprep.subr.bf16.mxu1 %v8374_v54  ;;  %v8391_v54 = vld [vmem:[#allocation16 + $0x68] ss:$12 sps:$4 sm:$0xff]  }
 0x9bd   : > { %7460 = vmatpush3.bf16.msra.mxu0 %v8371_v60  ;;  %v8384_v60 = vld [vmem:[#allocation16 + $0x48] ss:$12 sps:$4 sm:$0xff]  }
 0x9be   : > { %7465 = vmatprep.subr.bf16.mxu0 %v12129_v61 }
 0x9f1   : > { %v11102_v6 = vpop.f32.mrb[52].mxu1 }
 0x9f2   : > { %12142 = vst [vmem:[#allocation53_spill] sm:$0xff] %v11102_v6  ;;  %v3740_v63 = vpack.c.bf16 %v11102_v6, %v11102_v6  ;;  %v7343_v1 = vpop.f32.mrb[53].mxu1  ;;  %v11463_v6 = vld [vmem:[%s9778_s13 + $0x1e0] sm:$0xff]  }
 0x9f3   : > { %v3535_v16 = vpop.f32.mrb[54].mxu1  ;;  %v11107_v5 = vpop.f32.mrb[56].mxu0 }
 0x9f4   : > { %12143 = vst [vmem:[#allocation54_spill] sm:$0xff] %v11107_v5  ;;  %v3805_v49 = vunpack.c.l.b16 %v3740_v63  ;;  %v3741_v31 = vpack.c.bf16 %v11107_v5, %v11107_v5  ;;  %v7344_v32 = vpop.f32.mrb[55].mxu1  ;;  %v7363_v53 = vpop.f32.mrb[57].mxu0  ;;  %v11458_v5 = vld [vmem:[%s9778_s13 + $0x1a0] sm:$0xff]  }
 0x9f5   : > { %v3575_v51 = vpop.f32.mrb[58].mxu0  ;;  %v8378_v53 = vld [vmem:[#allocation16 + $0x1c] ss:$12 sps:$4 sm:$0xff]  }
 0x9f6   : > { %v3813_v46 = vrot.slane %v3805_v49, 6  ;;  %v3806_v39 = vunpack.c.l.b16 %v3741_v31  ;;  %v7364_v50 = vpop.f32.mrb[59].mxu0  ;;  %v8372_v49 = vld [vmem:[#allocation16] ss:$12 sps:$4 sm:$0xff]   ;;  %v8375_v31 = vld [vmem:[#allocation16 + $0x8] ss:$12 sps:$4 sm:$0xff]  }
 0x9f7   : > { %v8376_v51 = vld [vmem:[#allocation16 + $0x18] ss:$12 sps:$4 sm:$0xff]   ;;  %v8380_v50 = vld [vmem:[#allocation16 + $0x30] ss:$12 sps:$4 sm:$0xff]  }
 0x9f8   : > { %v3814_v47 = vsel %vm2370_vm4, %v3813_v46, %v11095_v23  ;;  %v3815_v17 = vrot.slane %v3806_v39, 5  ;;  %v8379_v46 = vld [vmem:[#allocation16 + $0x20] ss:$12 sps:$4 sm:$0xff]  }
 0x9f9   : > { %v8382_v39 = vld [vmem:[#allocation16 + $0x34] ss:$12 sps:$4 sm:$0xff]  }
 0x9fa   : > { %v3816_v36 = vsel %vm2373_vm5, %v3815_v17, %v3814_v47  ;;  %v8387_v47 = vld [vmem:[#allocation16 + $0x50] ss:$12 sps:$4 sm:$0xff]  }
 0x9fb   : > { %v8390_v17 = vld [vmem:[#allocation16 + $0x64] ss:$12 sps:$4 sm:$0xff]  }
 0xa31   : > { %v11116_v48 = vpop.f32.mrb[56].mxu1 }
 0xa32   : > { %12144 = vst [vmem:[#allocation55_spill] sm:$0xff] %v11116_v48  ;;  %v3742_v55 = vpack.c.bf16 %v11116_v48, %v11116_v48  ;;  %v7383_v3 = vpop.f32.mrb[57].mxu1 }
 0xa33   : > { %v3615_v22 = vpop.f32.mrb[58].mxu1  ;;  %v11120_v13 = vpop.f32.mrb[60].mxu0  ;;  %v8395_v3 = vld [vmem:[#allocation16 + $0x80] ss:$12 sps:$4 sm:$0xff]  }
 0xa34   : > { %12145 = vst [vmem:[#allocation56_spill] sm:$0xff] %v11120_v13  ;;  %v3807_v24 = vunpack.c.l.b16 %v3742_v55  ;;  %v3743_v18 = vpack.c.bf16 %v11120_v13, %v11120_v13  ;;  %v7384_v23 = vpop.f32.mrb[59].mxu1  ;;  %v7403_v25 = vpop.f32.mrb[61].mxu0  ;;  %v8392_v55 = vld [vmem:[#allocation16 + $0x78] ss:$12 sps:$4 sm:$0xff]  }
 0xa35   : > { %v3655_v26 = vpop.f32.mrb[62].mxu0  ;;  %v8398_v22 = vld [vmem:[#allocation16 + $0x94] ss:$12 sps:$4 sm:$0xff]   ;;  %v8402_v23 = vld [vmem:[#allocation16 + $0xac] ss:$12 sps:$4 sm:$0xff]  }
 0xa36   : > { %v3817_v27 = vrot.slane %v3807_v24, 4  ;;  %v3808_v28 = vunpack.c.l.b16 %v3743_v18  ;;  %v7404_v29 = vpop.f32.mrb[63].mxu0  ;;  %v8396_v24 = vld [vmem:[#allocation16 + $0x90] ss:$12 sps:$4 sm:$0xff]   ;;  %v8399_v18 = vld [vmem:[#allocation16 + $0x98] ss:$12 sps:$4 sm:$0xff]  }
 0xa37   : > { %v8400_v25 = vld [vmem:[#allocation16 + $0xa8] ss:$12 sps:$4 sm:$0xff]   ;;  %v8403_v26 = vld [vmem:[#allocation16 + $0xb0] ss:$12 sps:$4 sm:$0xff]  }
 0xa38   : > { %v3818_v30 = vsel %vm2376_vm6, %v3817_v27, %v3816_v36  ;;  %v3819_v33 = vrot.slane %v3808_v28, 3  ;;  %v8388_v36 = vld [vmem:[#allocation16 + $0x60] ss:$12 sps:$4 sm:$0xff]  }
 0xa39   : > { %v12148_v27 = vld [vmem:[#allocation48_spill] sm:$0xff] }
 0xa3a   : > { %v3820_v10 = vsel %vm2379_vm7, %v3819_v33, %v3818_v30  ;;  %v11156_v28 = vld [vmem:[%s9778_s13 + $0x8] sm:$0xff]   ;;  %v11161_v29 = vld [vmem:[%s9778_s13 + $0x10] sm:$0xff]   ;;  %v11166_v30 = vld [vmem:[%s9778_s13 + $0x18] sm:$0xff]  }
 0xa3b   : > { %v11171_v33 = vld [vmem:[%s9778_s13 + $0x20] sm:$0xff]  }
 0xa71   : > { %v11126_v59 = vpop.f32.mrb[60].mxu1 }
 0xa72   : > { %12146 = vst [vmem:[#allocation57_spill] sm:$0xff] %v11126_v59  ;;  %v3744_v56 = vpack.c.bf16 %v11126_v59, %v11126_v59  ;;  %v7423_v0 = vpop.f32.mrb[61].mxu1  ;;  %v11413_v59 = vld [vmem:[%s9778_s13 + $0x178] sm:$0xff]  }
 0xa73   : > { %v3695_v57 = vpop.f32.mrb[62].mxu1  ;;  %v11130_v41 = vpop.f32.mrb[64].mxu0  ;;  %v11186_v0 = vld [vmem:[%s9778_s13 + $0x38] sm:$0xff]  }
 0xa74   : > { %12147 = vst [vmem:[#allocation58_spill] sm:$0xff] %v11130_v41  ;;  %v3809_v42 = vunpack.c.l.b16 %v3744_v56  ;;  %v3745_v62 = vpack.c.bf16 %v11130_v41, %v11130_v41  ;;  %v7424_v8 = vpop.f32.mrb[63].mxu1  ;;  %v7443_v7 = vpop.f32.mrb[65].mxu0  ;;  %v11181_v56 = vld [vmem:[%s9778_s13 + $0x30] sm:$0xff]   ;;  %v8404_v57 = vld [vmem:[#allocation13] sm:$0xff]  }
 0xa75   : > { %v3735_v14 = vpop.f32.mrb[66].mxu0  ;;  %v8407_v8 = vld [vmem:[#allocation13 + $0x18] sm:$0xff]   ;;  %v8408_v7 = vld [vmem:[#allocation13 + $0x20] sm:$0xff]  }
 0xa76   : > { %v3821_v63 = vrot.slane %v3809_v42, 2  ;;  %v3810_v1 = vunpack.c.l.b16 %v3745_v62  ;;  %v7444_v20 = vpop.f32.mrb[67].mxu0  ;;  %v8405_v42 = vld [vmem:[#allocation13 + $0x8] sm:$0xff]   ;;  %v8406_v62 = vld [vmem:[#allocation13 + $0x10] sm:$0xff]  }
 0xa77   : > { %v8409_v14 = vld [vmem:[#allocation13 + $0x28] sm:$0xff]  }
 0xa78   : > { %v3822_v16 = vsel %vm2382_vm8, %v3821_v63, %v3820_v10  ;;  %v3823_v15 = vrot.slane %v3810_v1, 1  ;;  %v11176_v10 = vld [vmem:[%s9778_s13 + $0x28] sm:$0xff]   ;;  %v8410_v63 = vld [vmem:[#allocation13 + $0x30] sm:$0xff]   ;;  %v8411_v1 = vld [vmem:[#allocation13 + $0x38] sm:$0xff]  }
 0xa7a   : > { %v3824_v4 = vsel %vm2385_vm9, %v3823_v15, %v3822_v16 }
 0xa7b   : > { %v3825_v32 = vpack.c.b16 %v3824_v4, %v3824_v4 }
 0xa7d   : > { %3988 = vmatmul.mubr.bf16.vlgmr.msra.gmra.mrb[64].mxu1 %v3825_v32  ;;  %7462 = vmatmul.mubr.bf16.vlgmr.msra.gmra.mrb[68].mxu0 %v3825_v32 }
 0xa7e   : > { %4214 = vmatpush1.bf16.msra.mxu1 %v8372_v49  ;;  %7466 = vmatpush3.bf16.msra.mxu0 %v8375_v31  ;;  %v4068_v49 = vld [vmem:[#allocation19] sm:$0x7] }
 0xa7f   : > { %4215 = vmatprep.subr.bf16.mxu1 %v8378_v53  ;;  %7467 = vmatprep.subr.bf16.mxu0 %v12129_v61  ;;  %v12149_v31 = vld [vmem:[#allocation51_spill] sm:$0xff] }
 0xa80   : > { %4245 = vmatprep.mubr.bf16.mxu1 %v9210_v58  ;;  %7481 = vmatprep.mubr.msk.bf16.mxu0 %vm9207_vm0, %v12129_v61  ;;  %v8394_v58 = vld [vmem:[#allocation16 + $0x7c] ss:$12 sps:$4 sm:$0xff]   ;;  %v3786_v32 = vsub.s32 1, %v12149_v31  ;;  %v3778_v53 = vld [vmem:[#allocation17] sm:$0x7]  ;;  %12154 = vst [vmem:[#allocation51_spill] sm:$0xff] %v11458_v5 }
 0xa82   : > { %4216 = vmatpush1.bf16.msra.mxu1 %v8376_v51  ;;  %7468 = vmatpush3.bf16.msra.mxu0 %v8379_v46  ;;  %v3783_v51 = vrot.slane %v3778_v53, %v10176_v2  ;;  %v4073_v46 = vrot.slane %v4068_v49, %v10176_v2 }
 0xa83   : > { %4217 = vmatprep.subr.bf16.mxu1 %v8382_v39  ;;  %7469 = vmatprep.subr.bf16.mxu0 %v12129_v61  ;;  %v3787_v39 = vrot.slane %v3778_v53, %v3786_v32 }
 0xa86   : > { %4218 = vmatpush1.bf16.msra.mxu1 %v8380_v50  ;;  %7470 = vmatpush3.bf16.msra.mxu0 %v8383_v52  ;;  %v4077_v50 = vrot.slane %v4068_v49, %v3786_v32  ;;  %v8002_v52 = vadd.f32 %v4073_v46, %v3783_v51 }
 0xa87   : > { %4219 = vmatprep.subr.bf16.mxu1 %v8386_v40  ;;  %7471 = vmatprep.subr.bf16.mxu0 %v12129_v61 }
 0xa88   : > { %v8004_v40 = vadd.f32 %v4077_v50, %v3787_v39 }
 0xa8a   : > { %4220 = vmatpush1.bf16.msra.mxu1 %v8384_v60  ;;  %7472 = vmatpush3.bf16.msra.mxu0 %v8387_v47 }
 0xa8b   : > { %4221 = vmatprep.subr.bf16.mxu1 %v8390_v17  ;;  %7473 = vmatprep.subr.bf16.mxu0 %v12129_v61 }
 0xa8e   : > { %4222 = vmatpush1.bf16.msra.mxu1 %v8388_v36  ;;  %7474 = vmatpush3.bf16.msra.mxu0 %v8391_v54 }
 0xa8f   : > { %4223 = vmatprep.subr.bf16.mxu1 %v8394_v58  ;;  %7475 = vmatprep.subr.bf16.mxu0 %v12129_v61 }
 0xa92   : > { %4224 = vmatpush1.bf16.msra.mxu1 %v8392_v55  ;;  %7476 = vmatpush3.bf16.msra.mxu0 %v8395_v3 }
 0xa93   : > { %4225 = vmatprep.subr.bf16.mxu1 %v8398_v22  ;;  %7477 = vmatprep.subr.bf16.mxu0 %v12129_v61 }
 0xa96   : > { %4226 = vmatpush1.bf16.msra.mxu1 %v8396_v24  ;;  %7478 = vmatpush3.bf16.msra.mxu0 %v8399_v18 }
 0xa97   : > { %4227 = vmatprep.subr.bf16.mxu1 %v8402_v23  ;;  %7479 = vmatprep.subr.bf16.mxu0 %v12129_v61 }
 0xa9a   : > { %4228 = vmatpush1.bf16.msra.mxu1 %v8400_v25  ;;  %7480 = vmatpush3.bf16.msra.mxu0 %v8403_v26 }
 0xa9b   : > { %7485 = vmatprep.subr.bf16.mxu1 %v12129_v61  ;;  %7505 = vmatprep.subr.bf16.mxu0 %v12129_v61 }
 0xa9d   : > { %4246 = vmatmul.mubr.bf16.vlgmr.msra.gmra.mrb[64].mxu1 %v12148_v27  ;;  %7482 = vmatmul.mubr.bf16.vlgmr.msra.gmra.mrb[72].mxu0 %v12148_v27 }
 0xa9e   : > { %7501 = vmatprep.mubr.msk.bf16.mxu1 %vm9207_vm0, %v12129_v61  ;;  %7521 = vmatprep.mubr.msk.bf16.mxu0 %vm9207_vm0, %v12129_v61 }
 0xa9f   : > { %7486 = vmatpush3.bf16.msra.mxu1 %v8404_v57 }
 0xaa0   : > { %7487 = vmatprep.subr.bf16.mxu1 %v12129_v61 }
 0xaa3   : > { %7506 = vmatpush3.bf16.xpose.msra.mxu0 %v10410_v44  ;;  %7488 = vmatpush3.bf16.msra.mxu1 %v8405_v42  ;;  %v3790_v42 = vsub.s32 2, %v12149_v31 }
 0xaa4   : > { %7507 = vmatprep.subr.bf16.mxu0 %v12129_v61  ;;  %7489 = vmatprep.subr.bf16.mxu1 %v12129_v61 }
 0xaa7   : > { %7490 = vmatpush3.bf16.msra.mxu1 %v8406_v62  ;;  %v4081_v62 = vrot.slane %v4068_v49, %v3790_v42  ;;  %v11213_v49 = vld [vmem:[%s9778_s13 + $0x50] sm:$0xff]  }
 0xaa8   : > { %7491 = vmatprep.subr.bf16.mxu1 %v12129_v61 }
 0xaab   : > { %7508 = vmatpush3.bf16.xpose.msra.mxu0 %v11156_v28  ;;  %7492 = vmatpush3.bf16.msra.mxu1 %v8407_v8  ;;  %v3791_v8 = vrot.slane %v3778_v53, %v3790_v42  ;;  %v11218_v53 = vld [vmem:[%s9778_s13 + $0x58] sm:$0xff]   ;;  %v11270_v42 = vld [vmem:[%s9778_s13 + $0x90] sm:$0xff]  }
 0xaac   : > { %7509 = vmatprep.subr.bf16.mxu0 %v12129_v61  ;;  %7493 = vmatprep.subr.bf16.mxu1 %v12129_v61 }
 0xaaf   : > { %7494 = vmatpush3.bf16.msra.mxu1 %v8408_v7 }
 0xab0   : > { %7495 = vmatprep.subr.bf16.mxu1 %v12129_v61 }
 0xab3   : > { %7510 = vmatpush3.bf16.xpose.msra.mxu0 %v11161_v29  ;;  %7496 = vmatpush3.bf16.msra.mxu1 %v8409_v14 }
 0xab4   : > { %7511 = vmatprep.subr.bf16.mxu0 %v12129_v61  ;;  %7497 = vmatprep.subr.bf16.mxu1 %v12129_v61 }
 0xab7   : > { %7498 = vmatpush3.bf16.msra.mxu1 %v8410_v63 }
 0xab8   : > { %7499 = vmatprep.subr.bf16.mxu1 %v12129_v61 }
 0xabb   : > { %7512 = vmatpush3.bf16.xpose.msra.mxu0 %v11166_v30  ;;  %7500 = vmatpush3.bf16.msra.mxu1 %v8411_v1 }
 0xabc   : > { %7513 = vmatprep.subr.bf16.mxu0 %v12129_v61  ;;  %7525 = vmatprep.subr.bf16.mxu1 %v12129_v61 }
 0xac3   : > { %7514 = vmatpush3.bf16.xpose.msra.mxu0 %v11171_v33 }
 0xac4   : > { %7515 = vmatprep.subr.bf16.mxu0 %v12129_v61 }
 0xacb   : > { %7516 = vmatpush3.bf16.xpose.msra.mxu0 %v11176_v10 }
 0xacc   : > { %7517 = vmatprep.subr.bf16.mxu0 %v12129_v61 }
 0xad3   : > { %7518 = vmatpush3.bf16.xpose.msra.mxu0 %v11181_v56 }
 0xad4   : > { %7519 = vmatprep.subr.bf16.mxu0 %v12129_v61 }
 0xadb   : > { %7520 = vmatpush3.bf16.xpose.msra.mxu0 %v11186_v0 }
 0xadc   : > { %7545 = vmatprep.subr.bf16.mxu0 %v12129_v61 }
 0xb50   : > { %v4030_v20 = vpop.f32.mrb[68].mxu0 }
 0xb51   : > { %v7463_v16 = vpop.f32.mrb[69].mxu0  ;;  %v4031_v1 = vadd.f32 %v4030_v20, %v3791_v8  ;;  %v11208_v20 = vld [vmem:[%s9778_s13 + $0x48] sm:$0xff]   ;;  %v11280_v8 = vld [vmem:[%s9778_s13 + $0x98] sm:$0xff]  }
 0xb52   : > { %v4033_v15 = vpop.f32.mrb[70].mxu0 }
 0xb53   : > { %v7464_v4 = vpop.f32.mrb[71].mxu0  ;;  %v12150_v15 = vld [vmem:[#allocation46_spill] sm:$0xff] }
 0xb54   : > { %12155 = vst [vmem:[#allocation46_spill] sm:$0xff] %v11463_v6 }
 0xb70   : > { %v4247_v60 = vpop.f32.mrb[64].mxu1  ;;  %v4288_v47 = vpop.f32.mrb[72].mxu0 }
 0xb71   : > { %v8003_v17 = vadd.f32 %v8002_v52, %v4247_v60  ;;  %v4249_v36 = vpop.f32.mrb[65].mxu1  ;;  %v7483_v54 = vpop.f32.mrb[73].mxu0  ;;  %v4289_v7 = vadd.f32 %v4288_v47, %v4081_v62  ;;  %v11223_v52 = vld [vmem:[%s9778_s13 + $0x60] sm:$0xff]   ;;  %v11233_v60 = vld [vmem:[%s9778_s13 + $0x70] sm:$0xff]   ;;  %v11238_v47 = vld [vmem:[%s9778_s13 + $0x78] sm:$0xff]  }
 0xb72   : > { %v8005_v58 = vadd.f32 %v8004_v40, %v4249_v36  ;;  %v4251_v55 = vpop.f32.mrb[66].mxu1  ;;  %v4291_v3 = vpop.f32.mrb[74].mxu0  ;;  %v11228_v40 = vld [vmem:[%s9778_s13 + $0x68] sm:$0xff]   ;;  %v11275_v62 = vld [vmem:[%s9778_s13 + $0xd0] sm:$0xff]  }
 0xb73   : > { %v6239_v22 = vmul.f32 -1.442695, %v8003_v17  ;;  %v4252_v24 = vpop.f32.mrb[67].mxu1  ;;  %v7484_v18 = vpop.f32.mrb[75].mxu0 }
 0xb74   : > { %v6240_v23 = vmul.f32 -1.442695, %v8005_v58 }
 0xb75   : > { %8484 = vpow2.f32 %v6239_v22 }
 0xb76   : > { %8486 = vpow2.f32 %v6240_v23 }
 0xb7f   : > { %v8485_v25 = vpop.eup %8484 }
 0xb80   : > { %v8487_v26 = vpop.eup %8486  ;;  %v4298_v27 = vadd.f32 1.0, %v8485_v25 }
 0xb81   : > { %v4305_v57 = vadd.f32 1.0, %v8487_v26 }
 0xb82   : > { %8488 = vrcp.f32 %v4298_v27  ;;  %v11260_v27 = vld [vmem:[%s9778_s13 + $0x88] sm:$0xff]  }
 0xb83   : > { %8490 = vrcp.f32 %v4305_v57  ;;  %v11265_v57 = vld [vmem:[%s9778_s13 + $0xc8] sm:$0xff]  }
 0xb8c   : > { %v8489_v14 = vpop.eup %8488 }
 0xb8d   : > { %v8491_v63 = vpop.eup %8490  ;;  %v4308_v16 = vmul.f32 %v8489_v14, %v4289_v7  ;;  %v11285_v7 = vld [vmem:[%s9778_s13 + $0xd8] sm:$0xff]   ;;  %v11290_v14 = vld [vmem:[%s9778_s13 + $0xa0] sm:$0xff]  }
 0xb8e   : > { %v4336_v4 = vmul.f32 %v8491_v63, %v12150_v15  ;;  %v4311_v51 = vsub.f32 1.0, %v8491_v63  ;;  %v11295_v63 = vld [vmem:[%s9778_s13 + $0xe0] sm:$0xff]  }
 0xb8f   : > { %v4309_v32 = vadd.f32 %v4308_v16, %v4031_v1  ;;  %v11300_v1 = vld [vmem:[%s9778_s13 + $0xa8] sm:$0xff]  }
 0xb90   : > { %v11305_v16 = vld [vmem:[%s9778_s13 + $0xe8] sm:$0xff]  }
 0xb91   : > { %8492 = vtanh.f32 %v4309_v32  ;;  %v11315_v32 = vld [vmem:[%s9778_s13 + $0xf0] sm:$0xff]  }
 0xb9b   : > { %v8493_v46 = vpop.eup %8492 }
 0xb9c   : > { %v4312_v39 = vmul.f32 %v8493_v46, %v4311_v51 }
 0xb9e   : > { %v4337_v50 = vadd.f32 %v4336_v4, %v4312_v39  ;;  %v11310_v4 = vld [vmem:[%s9778_s13 + $0xb0] sm:$0xff]   ;;  %v11324_v39 = vld [vmem:[%s9778_s13 + $0xb8] sm:$0xff]  }
 0xba0   : > { %v4338_v31 = vpack.c.bf16 %v4337_v50, %v4337_v50 }
 0xba2   : > { %7502 = vmatmul.mubr.bf16.vlgmr.msra.gmra.mrb[68].mxu1 %v4338_v31  ;;  %v11331_v31 = vld [vmem:[%s9778_s13 + $0xf8] sm:$0xff]  }
 0xba3   : > { %7526 = vmatpush3.bf16.xpose.msra.mxu1 %v10413_v45  ;;  %7541 = vmatprep.mubr.msk.bf16.mxu1 %vm9207_vm0, %v12129_v61 }
 0xba4   : > { %7527 = vmatprep.subr.bf16.mxu1 %v12129_v61 }
 0xbab   : > { %7528 = vmatpush3.bf16.xpose.msra.mxu1 %v11208_v20 }
 0xbac   : > { %7529 = vmatprep.subr.bf16.mxu1 %v12129_v61 }
 0xbb3   : > { %7530 = vmatpush3.bf16.xpose.msra.mxu1 %v11213_v49 }
 0xbb4   : > { %7531 = vmatprep.subr.bf16.mxu1 %v12129_v61 }
 0xbbb   : > { %7532 = vmatpush3.bf16.xpose.msra.mxu1 %v11218_v53 }
 0xbbc   : > { %7533 = vmatprep.subr.bf16.mxu1 %v12129_v61 }
 0xbc3   : > { %7534 = vmatpush3.bf16.xpose.msra.mxu1 %v11223_v52 }
 0xbc4   : > { %7535 = vmatprep.subr.bf16.mxu1 %v12129_v61 }
 0xbcb   : > { %7536 = vmatpush3.bf16.xpose.msra.mxu1 %v11228_v40 }
 0xbcc   : > { %7537 = vmatprep.subr.bf16.mxu1 %v12129_v61 }
 0xbd3   : > { %7538 = vmatpush3.bf16.xpose.msra.mxu1 %v11233_v60 }
 0xbd4   : > { %7539 = vmatprep.subr.bf16.mxu1 %v12129_v61 }
 0xbdb   : > { %7540 = vmatpush3.bf16.xpose.msra.mxu1 %v11238_v47 }
 0xbdc   : > { %7565 = vmatprep.subr.bf16.mxu1 %v12129_v61 }
 0xc75   : > { %v4437_v17 = vpop.f32.mrb[68].mxu1 }
 0xc76   : > { %v4443_v36 = vpack.c.bf16 %v4437_v17, %v4437_v17  ;;  %v7503_v54 = vpop.f32.mrb[69].mxu1 }
 0xc77   : > { %v4440_v58 = vpop.f32.mrb[70].mxu1  ;;  %v11346_v54 = vld [vmem:[%s9778_s13 + $0x108] sm:$0xff]  }
 0xc78   : > { %v4451_v55 = vrot.slane %v4443_v36, %v10152_v21  ;;  %v7504_v3 = vpop.f32.mrb[71].mxu1  ;;  %v11351_v58 = vld [vmem:[%s9778_s13 + $0x148] sm:$0xff]  }
 0xc79   : > { %v11361_v3 = vld [vmem:[%s9778_s13 + $0x150] sm:$0xff]  }
 0xc7a   : > { %v11244_v22 = vrot.slane %v4451_v55, %v10152_v21  ;;  %v4452_v15 = vcombine.high %v4451_v55, %v4451_v55  ;;  %v11356_v55 = vld [vmem:[%s9778_s13 + $0x110] sm:$0xff]  }
 0xc7c   : > { %v4470_v24 = vunpack.i.h.s16 %v11244_v22  ;;  %v6249_v18 = vpack.i.b16 %v11244_v22, %v11244_v22  ;;  %v11319_v51 = vrot.slane %v4452_v15, %v10152_v21  ;;  %v11391_v15 = vld [vmem:[%s9778_s13 + $0x168] sm:$0xff]  }
 0xc7e   : > { %v4481_v23 = vrot.slane %v6249_v18, %v10176_v2  ;;  %v4523_v25 = vpack.i.b16 %v4470_v24, %v4470_v24  ;;  %v4472_v46 = vunpack.i.h.s16 %v11319_v51  ;;  %v6250_v50 = vpack.i.b16 %v11319_v51, %v11319_v51  ;;  %v11366_v24 = vld [vmem:[%s9778_s13 + $0x118] sm:$0xff]  }
 0xc7f   : > { %v11371_v18 = vld [vmem:[%s9778_s13 + $0x158] sm:$0xff]  }
 0xc80   : > { %7522 = vmatmul.mubr.bf16.vlgmr.msra.gmra.mrb[76].mxu0 %v4481_v23  ;;  %v4527_v26 = vrot.slane %v4523_v25, %v10176_v2  ;;  %v4615_v21 = vpack.i.b16 %v4472_v46, %v4472_v46  ;;  %v4573_v17 = vrot.slane %v6250_v50, %v10176_v2  ;;  %v11376_v23 = vld [vmem:[%s9778_s13 + $0x120] sm:$0xff]   ;;  %v11396_v46 = vld [vmem:[%s9778_s13 + $0x130] sm:$0xff]  }
 0xc81   : > { %7546 = vmatpush3.bf16.xpose.msra.mxu0 %v10516_v11  ;;  %7561 = vmatprep.mubr.msk.bf16.mxu0 %vm9207_vm0, %v12129_v61  ;;  %v11381_v25 = vld [vmem:[%s9778_s13 + $0x160] sm:$0xff]   ;;  %v11401_v50 = vld [vmem:[%s9778_s13 + $0x170] sm:$0xff]  }
 0xc82   : > { %7542 = vmatmul.mubr.bf16.vlgmr.msra.gmra.mrb[72].mxu1 %v4527_v26  ;;  %7547 = vmatprep.subr.bf16.mxu0 %v12129_v61  ;;  %v4619_v36 = vrot.slane %v4615_v21, %v10176_v2  ;;  %v11386_v26 = vld [vmem:[%s9778_s13 + $0x128] sm:$0xff]   ;;  %v4467_v21 = vcombine.high %v11244_v22, %v11244_v22 }
 0xc83   : > { %7566 = vmatpush3.bf16.xpose.msra.mxu1 %v10531_v12  ;;  %7581 = vmatprep.mubr.msk.bf16.mxu1 %vm9207_vm0, %v12129_v61 }
 0xc84   : > { %7567 = vmatprep.subr.bf16.mxu1 %v12129_v61  ;;  %v6251_v41 = vpack.i.b16 %v4467_v21, %v4467_v21 }
 0xc86   : > { %v4665_v22 = vrot.slane %v6251_v41, %v10176_v2  ;;  %v11428_v41 = vld [vmem:[%s9778_s13 + $0x188] sm:$0xff]  }
 0xc89   : > { %7548 = vmatpush3.bf16.xpose.msra.mxu0 %v11260_v27 }
 0xc8a   : > { %7549 = vmatprep.subr.bf16.mxu0 %v12129_v61 }
 0xc8b   : > { %7568 = vmatpush3.bf16.xpose.msra.mxu1 %v11265_v57 }
 0xc8c   : > { %7569 = vmatprep.subr.bf16.mxu1 %v12129_v61 }
 0xc91   : > { %7550 = vmatpush3.bf16.xpose.msra.mxu0 %v11270_v42 }
 0xc92   : > { %7551 = vmatprep.subr.bf16.mxu0 %v12129_v61 }
 0xc93   : > { %7570 = vmatpush3.bf16.xpose.msra.mxu1 %v11275_v62 }
 0xc94   : > { %7571 = vmatprep.subr.bf16.mxu1 %v12129_v61 }
 0xc99   : > { %7552 = vmatpush3.bf16.xpose.msra.mxu0 %v11280_v8 }
 0xc9a   : > { %7553 = vmatprep.subr.bf16.mxu0 %v12129_v61 }
 0xc9b   : > { %7572 = vmatpush3.bf16.xpose.msra.mxu1 %v11285_v7 }
 0xc9c   : > { %7573 = vmatprep.subr.bf16.mxu1 %v12129_v61 }
 0xca1   : > { %7554 = vmatpush3.bf16.xpose.msra.mxu0 %v11290_v14 }
 0xca2   : > { %7555 = vmatprep.subr.bf16.mxu0 %v12129_v61 }
 0xca3   : > { %7574 = vmatpush3.bf16.xpose.msra.mxu1 %v11295_v63 }
 0xca4   : > { %7575 = vmatprep.subr.bf16.mxu1 %v12129_v61 }
 0xca9   : > { %7556 = vmatpush3.bf16.xpose.msra.mxu0 %v11300_v1 }
 0xcaa   : > { %7557 = vmatprep.subr.bf16.mxu0 %v12129_v61 }
 0xcab   : > { %7576 = vmatpush3.bf16.xpose.msra.mxu1 %v11305_v16 }
 0xcac   : > { %7577 = vmatprep.subr.bf16.mxu1 %v12129_v61 }
 0xcb1   : > { %7558 = vmatpush3.bf16.xpose.msra.mxu0 %v11310_v4 }
 0xcb2   : > { %7559 = vmatprep.subr.bf16.mxu0 %v12129_v61 }
 0xcb3   : > { %7578 = vmatpush3.bf16.xpose.msra.mxu1 %v11315_v32 }
 0xcb4   : > { %7579 = vmatprep.subr.bf16.mxu1 %v12129_v61 }
 0xcb9   : > { %7560 = vmatpush3.bf16.xpose.msra.mxu0 %v11324_v39 }
 0xcba   : > { %7585 = vmatprep.subr.bf16.mxu0 %v12129_v61 }
 0xcbb   : > { %7580 = vmatpush3.bf16.xpose.msra.mxu1 %v11331_v31 }
 0xcbc   : > { %7605 = vmatprep.subr.bf16.mxu1 %v12129_v61 }
 0xcc0   : > { %7562 = vmatmul.mubr.bf16.vlgmr.msra.gmra.mrb[80].mxu0 %v4573_v17  ;;  %v4474_v17 = vunpack.i.h.s16 %v4467_v21  ;;  %v11443_v21 = vld [vmem:[%s9778_s13 + $0x1d0] sm:$0xff]  }
 0xcc1   : > { %7586 = vmatpush3.bf16.xpose.msra.mxu0 %v10618_v34  ;;  %7601 = vmatprep.mubr.msk.bf16.mxu0 %vm9207_vm0, %v12129_v61  ;;  %12151 = vst [vmem:[#allocation59_spill] sm:$0xff] %v11443_v21 }
 0xcc2   : > { %7582 = vmatmul.mubr.bf16.vlgmr.msra.gmra.mrb[76].mxu1 %v4619_v36  ;;  %7587 = vmatprep.subr.bf16.mxu0 %v12129_v61  ;;  %v11408_v36 = vld [vmem:[%s9778_s13 + $0x138] sm:$0xff]   ;;  %v4707_v13 = vpack.i.b16 %v4474_v17, %v4474_v17 }
 0xcc3   : > { %7606 = vmatpush3.bf16.xpose.msra.mxu1 %v10623_v37  ;;  %7621 = vmatprep.mubr.msk.bf16.mxu1 %vm9207_vm0, %v12129_v61  ;;  %v11448_v17 = vld [vmem:[%s9778_s13 + $0x198] sm:$0xff]  }
 0xcc4   : > { %7607 = vmatprep.subr.bf16.mxu1 %v12129_v61  ;;  %v4711_v48 = vrot.slane %v4707_v13, %v10176_v2  ;;  %v11433_v13 = vld [vmem:[%s9778_s13 + $0x1c8] sm:$0xff]   ;;  %12152 = vst [vmem:[#allocation60_spill] sm:$0xff] %v11448_v17 }
 0xcc9   : > { %7588 = vmatpush3.bf16.xpose.msra.mxu0 %v11346_v54 }
 0xcca   : > { %7589 = vmatprep.subr.bf16.mxu0 %v12129_v61 }
 0xccb   : > { %7608 = vmatpush3.bf16.xpose.msra.mxu1 %v11351_v58 }
 0xccc   : > { %7609 = vmatprep.subr.bf16.mxu1 %v12129_v61 }
 0xcd1   : > { %7590 = vmatpush3.bf16.xpose.msra.mxu0 %v11356_v55 }
 0xcd2   : > { %7591 = vmatprep.subr.bf16.mxu0 %v12129_v61 }
 0xcd3   : > { %7610 = vmatpush3.bf16.xpose.msra.mxu1 %v11361_v3 }
 0xcd4   : > { %7611 = vmatprep.subr.bf16.mxu1 %v12129_v61 }
 0xcd9   : > { %7592 = vmatpush3.bf16.xpose.msra.mxu0 %v11366_v24 }
 0xcda   : > { %7593 = vmatprep.subr.bf16.mxu0 %v12129_v61 }
 0xcdb   : > { %7612 = vmatpush3.bf16.xpose.msra.mxu1 %v11371_v18 }
 0xcdc   : > { %7613 = vmatprep.subr.bf16.mxu1 %v12129_v61 }
 0xce1   : > { %7594 = vmatpush3.bf16.xpose.msra.mxu0 %v11376_v23 }
 0xce2   : > { %7595 = vmatprep.subr.bf16.mxu0 %v12129_v61 }
 0xce3   : > { %7614 = vmatpush3.bf16.xpose.msra.mxu1 %v11381_v25 }
 0xce4   : > { %7615 = vmatprep.subr.bf16.mxu1 %v12129_v61 }
 0xce9   : > { %7596 = vmatpush3.bf16.xpose.msra.mxu0 %v11386_v26 }
 0xcea   : > { %7597 = vmatprep.subr.bf16.mxu0 %v12129_v61 }
 0xceb   : > { %7616 = vmatpush3.bf16.xpose.msra.mxu1 %v11391_v15 }
 0xcec   : > { %7617 = vmatprep.subr.bf16.mxu1 %v12129_v61 }
 0xcf1   : > { %7598 = vmatpush3.bf16.xpose.msra.mxu0 %v11396_v46 }
 0xcf2   : > { %7599 = vmatprep.subr.bf16.mxu0 %v12129_v61 }
 0xcf3   : > { %7618 = vmatpush3.bf16.xpose.msra.mxu1 %v11401_v50 }
 0xcf4   : > { %7619 = vmatprep.subr.bf16.mxu1 %v12129_v61 }
 0xcf9   : > { %7600 = vmatpush3.bf16.xpose.msra.mxu0 %v11408_v36 }
 0xcfa   : > { %7625 = vmatprep.subr.bf16.mxu0 %v12129_v61 }
 0xcfb   : > { %7620 = vmatpush3.bf16.xpose.msra.mxu1 %v11413_v59 }
 0xcfc   : > { %7645 = vmatprep.subr.bf16.mxu1 %v12129_v61 }
 0xd00   : > { %7602 = vmatmul.mubr.bf16.vlgmr.msra.gmra.mrb[84].mxu0 %v4665_v22  ;;  %v11453_v22 = vld [vmem:[%s9778_s13 + $0x1d8] sm:$0xff]  }
 0xd01   : > { %7626 = vmatpush3.bf16.xpose.msra.mxu0 %v10706_v9  ;;  %7641 = vmatprep.mubr.msk.bf16.mxu0 %vm9207_vm0, %v12129_v61  ;;  %12153 = vst [vmem:[#allocation48_spill] sm:$0xff] %v11453_v22 }
 0xd02   : > { %7622 = vmatmul.mubr.bf16.vlgmr.msra.gmra.mrb[80].mxu1 %v4711_v48  ;;  %7627 = vmatprep.subr.bf16.mxu0 %v12129_v61  ;;  %v11438_v48 = vld [vmem:[%s9778_s13 + $0x190] sm:$0xff]  }
 0xd03   : > { %7646 = vmatpush3.bf16.xpose.msra.mxu1 %v10711_v19  ;;  %7661 = vmatprep.mubr.msk.bf16.mxu1 %vm9207_vm0, %v12129_v61 }
 0xd04   : > { %7647 = vmatprep.subr.bf16.mxu1 %v12129_v61 }
 0xd09   : > { %7628 = vmatpush3.bf16.xpose.msra.mxu0 %v11428_v41 }
 0xd0a   : > { %7629 = vmatprep.subr.bf16.mxu0 %v12129_v61 }
 0xd0b   : > { %7648 = vmatpush3.bf16.xpose.msra.mxu1 %v11433_v13 }
 0xd0c   : > { %7649 = vmatprep.subr.bf16.mxu1 %v12129_v61 }
 0xd11   : > { %7630 = vmatpush3.bf16.xpose.msra.mxu0 %v11438_v48 }
 0xd12   : > { %7631 = vmatprep.subr.bf16.mxu0 %v12129_v61 }
 0xd13   : > { %7650 = vmatpush3.bf16.xpose.msra.mxu1 %v11443_v21 }
 0xd14   : > { %7651 = vmatprep.subr.bf16.mxu1 %v12129_v61 }
 0xd19   : > { %7632 = vmatpush3.bf16.xpose.msra.mxu0 %v11448_v17  ;;  %v11490_v17 = vld [vmem:[%s9778_s13 + $0x1b8] sm:$0xff]  }
 0xd1a   : > { %7633 = vmatprep.subr.bf16.mxu0 %v12129_v61 }
 0xd1b   : > { %7652 = vmatpush3.bf16.xpose.msra.mxu1 %v11453_v22 }
 0xd1c   : > { %7653 = vmatprep.subr.bf16.mxu1 %v12129_v61 }
 0xd21   : > { %7634 = vmatpush3.bf16.xpose.msra.mxu0 %v11458_v5  ;;  %v11478_v5 = vld [vmem:[%s9778_s13 + $0x1b0] sm:$0xff]  }
 0xd22   : > { %7635 = vmatprep.subr.bf16.mxu0 %v12129_v61  ;;  %12158 = vst [vmem:[#allocation70_spill] sm:$0xff] %v11478_v5 }
 0xd23   : > { %7654 = vmatpush3.bf16.xpose.msra.mxu1 %v11463_v6  ;;  %v11483_v6 = vld [vmem:[%s9778_s13 + $0x1f0] sm:$0xff]  }
 0xd24   : > { %7655 = vmatprep.subr.bf16.mxu1 %v12129_v61  ;;  %12159 = vst [vmem:[#allocation71_spill] sm:$0xff] %v11483_v6 }
 0xd29   : > { %7636 = vmatpush3.bf16.xpose.msra.mxu0 %v11468_v38  ;;  %v4468_v38 = vcombine.high %v11319_v51, %v11319_v51 }
 0xd2a   : > { %7637 = vmatprep.subr.bf16.mxu0 %v12129_v61 }
 0xd2b   : > { %7656 = vmatpush3.bf16.xpose.msra.mxu1 %v11473_v43  ;;  %v4476_v22 = vunpack.i.h.s16 %v4468_v38  ;;  %v6252_v43 = vpack.i.b16 %v4468_v38, %v4468_v38 }
 0xd2c   : > { %7657 = vmatprep.subr.bf16.mxu1 %v12129_v61 }
 0xd2d   : > { %v4799_v21 = vpack.i.b16 %v4476_v22, %v4476_v22 }
 0xd2f   : > { %v4803_v51 = vrot.slane %v4799_v21, %v10176_v2 }
 0xd31   : > { %7638 = vmatpush3.bf16.xpose.msra.mxu0 %v11478_v5  ;;  %v11495_v5 = vld [vmem:[%s9778_s13 + $0x1f8] sm:$0xff]  }
 0xd32   : > { %7639 = vmatprep.subr.bf16.mxu0 %v12129_v61 }
 0xd33   : > { %7658 = vmatpush3.bf16.xpose.msra.mxu1 %v11483_v6  ;;  %v4757_v6 = vrot.slane %v6252_v43, %v10176_v2 }
 0xd34   : > { %7659 = vmatprep.subr.bf16.mxu1 %v12129_v61 }
 0xd39   : > { %7640 = vmatpush3.bf16.xpose.msra.mxu0 %v11490_v17 }
 0xd3a   : > { %7665 = vmatprep.subr.bf16.mxu0 %v12129_v61 }
 0xd3b   : > { %7660 = vmatpush3.bf16.xpose.msra.mxu1 %v11495_v5 }
 0xd3c   : > { %7685 = vmatprep.subr.bf16.mxu1 %v12129_v61 }
 0xd40   : > { %7642 = vmatmul.mubr.bf16.vlgmr.msra.gmra.mrb[88].mxu0 %v4757_v6 }
 0xd41   : > { %7666 = vmatpush3.bf16.msra.mxu0 %v10410_v44  ;;  %7681 = vmatprep.mubr.msk.bf16.mxu0 %vm9207_vm0, %v12129_v61  ;;  %v12160_v44 = vld [vmem:[#allocation61_spill] sm:$0xff] }
 0xd42   : > { %7662 = vmatmul.mubr.bf16.vlgmr.msra.gmra.mrb[84].mxu1 %v4803_v51  ;;  %7667 = vmatprep.subr.bf16.mxu0 %v12129_v61 }
 0xd43   : > { %7686 = vmatpush3.bf16.msra.mxu1 %v10413_v45  ;;  %7701 = vmatprep.mubr.msk.bf16.mxu1 %vm9207_vm0, %v12129_v61 }
 0xd44   : > { %7687 = vmatprep.subr.bf16.mxu1 %v12129_v61 }
 0xd45   : > { %7668 = vmatpush3.bf16.msra.mxu0 %v11156_v28  ;;  %v12161_v28 = vld [vmem:[#allocation62_spill] sm:$0xff] }
 0xd46   : > { %7669 = vmatprep.subr.bf16.mxu0 %v12129_v61 }
 0xd47   : > { %7688 = vmatpush3.bf16.msra.mxu1 %v11208_v20 }
 0xd48   : > { %7689 = vmatprep.subr.bf16.mxu1 %v12129_v61 }
 0xd49   : > { %7670 = vmatpush3.bf16.msra.mxu0 %v11161_v29 }
 0xd4a   : > { %7671 = vmatprep.subr.bf16.mxu0 %v12129_v61 }
 0xd4b   : > { %7690 = vmatpush3.bf16.msra.mxu1 %v11213_v49 }
 0xd4c   : > { %7691 = vmatprep.subr.bf16.mxu1 %v12129_v61 }
 0xd4d   : > { %7672 = vmatpush3.bf16.msra.mxu0 %v11166_v30 }
 0xd4e   : > { %7673 = vmatprep.subr.bf16.mxu0 %v12129_v61 }
 0xd4f   : > { %7692 = vmatpush3.bf16.msra.mxu1 %v11218_v53 }
 0xd50   : > { %7693 = vmatprep.subr.bf16.mxu1 %v12129_v61 }
 0xd51   : > { %7674 = vmatpush3.bf16.msra.mxu0 %v11171_v33 }
 0xd52   : > { %7675 = vmatprep.subr.bf16.mxu0 %v12129_v61 }
 0xd53   : > { %v4517_v2 = vpop.f32.mrb[76].mxu0  ;;  %7694 = vmatpush3.bf16.msra.mxu1 %v11223_v52 }
 0xd54   : > { %v11525_v45 = vadd.f32 %v4517_v2, %v12160_v44  ;;  %v7523_v43 = vpop.f32.mrb[77].mxu0  ;;  %7695 = vmatprep.subr.bf16.mxu1 %v12129_v61  ;;  %v12163_v2 = vld [vmem:[#allocation64_spill] sm:$0xff] }
 0xd55   : > { %v4520_v38 = vpop.f32.mrb[78].mxu0  ;;  %v4563_v6 = vpop.f32.mrb[72].mxu1  ;;  %7676 = vmatpush3.bf16.msra.mxu0 %v11176_v10 }
 0xd56   : > { %v11530_v29 = vadd.f32 %v4563_v6, %v12161_v28  ;;  %v7524_v30 = vpop.f32.mrb[79].mxu0  ;;  %v7543_v33 = vpop.f32.mrb[73].mxu1  ;;  %v4845_v20 = vsel %vm3321_vm11, %v11525_v45, -inf  ;;  %7677 = vmatprep.subr.bf16.mxu0 %v12129_v61 }
 0xd57   : > { %4846 = vmax.xlane.f32.xlu0 %v4845_v20  ;;  %v4566_v49 = vpop.f32.mrb[74].mxu1  ;;  %7696 = vmatpush3.bf16.msra.mxu1 %v11228_v40  ;;  %v12162_v40 = vld [vmem:[#allocation63_spill] sm:$0xff]  ;;  %v12164_v30 = vld [vmem:[#allocation65_spill] sm:$0xff] }
 0xd58   : > { %v7544_v53 = vpop.f32.mrb[75].mxu1  ;;  %v4848_v52 = vsel %vm3321_vm11, %v11530_v29, -inf  ;;  %7697 = vmatprep.subr.bf16.mxu1 %v12129_v61 }
 0xd59   : > { %4849 = vmax.xlane.f32.xlu1 %v4848_v52  ;;  %7678 = vmatpush3.bf16.msra.mxu0 %v11181_v56  ;;  %v12165_v52 = vld [vmem:[#allocation66_spill] sm:$0xff] }
 0xd5a   : > { %7679 = vmatprep.subr.bf16.mxu0 %v12129_v61 }
 0xd5b   : > { %7698 = vmatpush3.bf16.msra.mxu1 %v11233_v60 }
 0xd5c   : > { %7699 = vmatprep.subr.bf16.mxu1 %v12129_v61 }
 0xd5d   : > { %7680 = vmatpush3.bf16.msra.mxu0 %v11186_v0 }
 0xd5e   : > { %7705 = vmatprep.subr.bf16.mxu0 %v12129_v61 }
 0xd5f   : > { %7700 = vmatpush3.bf16.msra.mxu1 %v11238_v47 }
 0xd60   : > { %7725 = vmatprep.subr.bf16.mxu1 %v12129_v61 }
 0xd93   : > { %v4609_v10 = vpop.f32.mrb[80].mxu0 }
 0xd94   : > { %v11548_v21 = vadd.f32 %v4609_v10, %v12162_v40  ;;  %v7563_v22 = vpop.f32.mrb[81].mxu0 }
 0xd95   : > { %v4612_v56 = vpop.f32.mrb[82].mxu0  ;;  %v4655_v51 = vpop.f32.mrb[76].mxu1 }
 0xd96   : > { %v11551_v44 = vadd.f32 %v4655_v51, %v12163_v2  ;;  %v7564_v60 = vpop.f32.mrb[83].mxu0  ;;  %v7583_v43 = vpop.f32.mrb[77].mxu1  ;;  %v4851_v0 = vsel %vm3321_vm11, %v11548_v21, -inf }
 0xd97   : > { %4852 = vmax.xlane.f32.xlu0 %v4851_v0  ;;  %v4658_v38 = vpop.f32.mrb[78].mxu1 }
 0xd98   : > { %v7584_v47 = vpop.f32.mrb[79].mxu1  ;;  %v4854_v6 = vsel %vm3321_vm11, %v11551_v44, -inf }
 0xd99   : > { %4855 = vmax.xlane.f32.xlu1 %v4854_v6 }
 0xdd3   : > { %v4701_v28 = vpop.f32.mrb[84].mxu0 }
 0xdd4   : > { %v11558_v33 = vadd.f32 %v4701_v28, %v12164_v30  ;;  %v7603_v20 = vpop.f32.mrb[85].mxu0 }
 0xdd5   : > { %v4704_v49 = vpop.f32.mrb[86].mxu0  ;;  %v4747_v53 = vpop.f32.mrb[80].mxu1 }
 0xdd6   : > { %v11561_v10 = vadd.f32 %v4747_v53, %v12165_v52  ;;  %v7604_v40 = vpop.f32.mrb[87].mxu0  ;;  %v7623_v22 = vpop.f32.mrb[81].mxu1  ;;  %v4857_v56 = vsel %vm3321_vm11, %v11558_v33, -inf  ;;  %v5637_v52 = vrot.slane %v11530_v29, 7 }
 0xdd7   : > { %4858 = vmax.xlane.f32.xlu0 %v4857_v56  ;;  %v4750_v51 = vpop.f32.mrb[82].mxu1  ;;  %v5639_v40 = vrot.slane %v11548_v21, 6  ;;  %v5641_v56 = vrot.slane %v11551_v44, 5 }
 0xdd8   : > { %v7624_v2 = vpop.f32.mrb[83].mxu1  ;;  %v4860_v60 = vsel %vm3321_vm11, %v11561_v10, -inf  ;;  %v5638_v22 = vsel %vm2367_vm3, %v5637_v52, %v11525_v45 }
 0xdd9   : > { %4861 = vmax.xlane.f32.xlu1 %v4860_v60  ;;  %v5640_v51 = vsel %vm2370_vm4, %v5639_v40, %v5638_v22  ;;  %v5643_v2 = vrot.slane %v11558_v33, 4 }
 0xdda   : > { %v5642_v60 = vsel %vm2373_vm5, %v5641_v56, %v5640_v51 }
 0xde4   : > { %v4847_v43 = vpop.xlane.xlu0 %4846 }
 0xde5   : > { %v4869_v0 = vsub.f32 %v11525_v45, %v4847_v43  ;;  %v5645_v43 = vrot.slane %v11561_v10, 3 }
 0xde6   : > { %v4850_v38 = vpop.xlane.xlu1 %4849 }
 0xde7   : > { %v4877_v47 = vmul.f32 1.442695, %v4869_v0  ;;  %v4870_v6 = vsub.f32 %v11530_v29, %v4850_v38  ;;  %v5644_v38 = vsel %vm2376_vm6, %v5643_v2, %v5642_v60 }
 0xde8   : > { %v5646_v56 = vsel %vm2379_vm7, %v5645_v43, %v5644_v38 }
 0xde9   : > { %8494 = vpow2.f32 %v4877_v47  ;;  %v4879_v28 = vmul.f32 1.442695, %v4870_v6  ;;  %v12166_v47 = vld [vmem:[#allocation67_spill] sm:$0xff] }
 0xdeb   : > { %8496 = vpow2.f32 %v4879_v28 }
 0xdf3   : > { %v11569_v30 = vpop.eup %8494 }
 0xdf4   : > { %v4893_v20 = vsel %vm3321_vm11, %v11569_v30, 0.0 }
 0xdf5   : > { %v11573_v49 = vpop.eup %8496  ;;  %4894 = vadd.xlane.f32.xlu0 %v4893_v20 }
 0xdf6   : > { %v4896_v53 = vsel %vm3321_vm11, %v11573_v49, 0.0 }
 0xdf7   : > { %4897 = vadd.xlane.f32.xlu1 %v4896_v53 }
 0xe13   : > { %v4793_v0 = vpop.f32.mrb[88].mxu0 }
 0xe14   : > { %v11588_v29 = vadd.f32 %v4793_v0, %v12166_v47  ;;  %v7643_v6 = vpop.f32.mrb[89].mxu0 }
 0xe15   : > { %v4796_v28 = vpop.f32.mrb[90].mxu0  ;;  %v4839_v45 = vpop.f32.mrb[84].mxu1 }
 0xe16   : > { %v5647_v20 = vrot.slane %v11588_v29, 2  ;;  %v11592_v53 = vadd.f32 %v4839_v45, %v10916_v35  ;;  %v7644_v52 = vpop.f32.mrb[91].mxu0  ;;  %v7663_v40 = vpop.f32.mrb[85].mxu1  ;;  %v4863_v22 = vsel %vm3321_vm11, %v11588_v29, -inf }
 0xe17   : > { %4864 = vmax.xlane.f32.xlu0 %v4863_v22  ;;  %v4842_v51 = vpop.f32.mrb[86].mxu1 }
 0xe18   : > { %v5648_v2 = vsel %vm2382_vm8, %v5647_v20, %v5646_v56  ;;  %v5649_v60 = vrot.slane %v11592_v53, 1  ;;  %v7664_v0 = vpop.f32.mrb[87].mxu1  ;;  %v4866_v47 = vsel %vm3321_vm11, %v11592_v53, -inf }
 0xe19   : > { %4867 = vmax.xlane.f32.xlu1 %v4866_v47 }
 0xe1a   : > { %v5650_v35 = vsel %vm2385_vm9, %v5649_v60, %v5648_v2 }
 0xe1b   : > { %5652 = vst [vmem:[%s841_s23] sm:$0xff] %v5650_v35 }
 0xe24   : > { %v4853_v6 = vpop.xlane.xlu0 %4852 }
 0xe25   : > { %v4871_v28 = vsub.f32 %v11548_v21, %v4853_v6 }
 0xe26   : > { %v4856_v43 = vpop.xlane.xlu1 %4855 }
 0xe27   : > { %v4881_v38 = vmul.f32 1.442695, %v4871_v28  ;;  %v4872_v45 = vsub.f32 %v11551_v44, %v4856_v43 }
 0xe29   : > { %8498 = vpow2.f32 %v4881_v38  ;;  %v4883_v20 = vmul.f32 1.442695, %v4872_v45 }
 0xe2b   : > { %8500 = vpow2.f32 %v4883_v20 }
 0xe33   : > { %v11607_v52 = vpop.eup %8498 }
 0xe34   : > { %v4899_v40 = vsel %vm3321_vm11, %v11607_v52, 0.0 }
 0xe35   : > { %v11611_v22 = vpop.eup %8500  ;;  %4900 = vadd.xlane.f32.xlu0 %v4899_v40 }
 0xe36   : > { %v4902_v56 = vsel %vm3321_vm11, %v11611_v22, 0.0 }
 0xe37   : > { %4903 = vadd.xlane.f32.xlu1 %v4902_v56 }
 0xe64   : > { %v4859_v21 = vpop.xlane.xlu0 %4858 }
 0xe65   : > { %v4873_v51 = vsub.f32 %v11558_v33, %v4859_v21 }
 0xe66   : > { %v4862_v2 = vpop.xlane.xlu1 %4861 }
 0xe67   : > { %v4885_v44 = vmul.f32 1.442695, %v4873_v51  ;;  %v4874_v60 = vsub.f32 %v11561_v10, %v4862_v2 }
 0xe69   : > { %8502 = vpow2.f32 %v4885_v44  ;;  %v4887_v0 = vmul.f32 1.442695, %v4874_v60 }
 0xe6b   : > { %8504 = vpow2.f32 %v4887_v0 }
 0xe73   : > { %v11617_v47 = vpop.eup %8502 }
 0xe74   : > { %v4905_v35 = vsel %vm3321_vm11, %v11617_v47, 0.0 }
 0xe75   : > { %v11621_v6 = vpop.eup %8504  ;;  %4906 = vadd.xlane.f32.xlu0 %v4905_v35  ;;  %v12175_v35 = vld [vmem:[#allocation70_spill] sm:$0xff] }
 0xe76   : > { %v4908_v28 = vsel %vm3321_vm11, %v11621_v6, 0.0 }
 0xe77   : > { %4909 = vadd.xlane.f32.xlu1 %v4908_v28  ;;  %v9211_v28 = vmov 0.0|0.0  }
 0xe82   : > { %v4895_v33 = vpop.xlane.xlu0 %4894 }
 0xe83   : > { %8506 = vrcp.f32 %v4895_v33 }
 0xe84   : > { %v4898_v43 = vpop.xlane.xlu1 %4897 }
 0xe85   : > { %8508 = vrcp.f32 %v4898_v43 }
 0xe8d   : > { %v8507_v10 = vpop.eup %8506 }
 0xe8e   : > { %v4925_v38 = vmul.f32 %v8507_v10, %v11569_v30  ;;  %v5293_v10 = vld [vmem:[#allocation22] sm:$0xff] }
 0xe8f   : > { %v8509_v45 = vpop.eup %8508 }
 0xe90   : > { %v4933_v20 = vpack.c.bf16 %v4925_v38, %v4925_v38  ;;  %v4926_v40 = vmul.f32 %v8509_v45, %v11573_v49  ;;  %v5294_v38 = vld [vmem:[#allocation22 + $0x8] sm:$0xff] }
 0xe92   : > { %7682 = vmatmul.mubr.bf16.vlgmr.msra.gmra.mrb[92].mxu0 %v4933_v20  ;;  %v4934_v56 = vpack.c.bf16 %v4926_v40, %v4926_v40 }
 0xe93   : > { %7706 = vmatpush3.bf16.msra.mxu0 %v10516_v11  ;;  %7721 = vmatprep.mubr.msk.bf16.mxu0 %vm9207_vm0, %v12129_v61 }
 0xe94   : > { %7702 = vmatmul.mubr.bf16.vlgmr.msra.gmra.mrb[88].mxu1 %v4934_v56  ;;  %7707 = vmatprep.subr.bf16.mxu0 %v12129_v61  ;;  %v7931_v56 = vpack.c.bf16 %v5294_v38, %v5293_v10  ;;  %v5500_v38 = vld [vmem:[#allocation23 + $0x28] sm:$0xff] }
 0xe95   : > { %7726 = vmatpush3.bf16.msra.mxu1 %v10531_v12  ;;  %7741 = vmatprep.mubr.msk.bf16.mxu1 %vm9207_vm0, %v12129_v61 }
 0xe96   : > { %7727 = vmatprep.subr.bf16.mxu1 %v12129_v61 }
 0xe97   : > { %7708 = vmatpush3.bf16.msra.mxu0 %v11260_v27 }
 0xe98   : > { %7709 = vmatprep.subr.bf16.mxu0 %v12129_v61 }
 0xe99   : > { %7728 = vmatpush3.bf16.msra.mxu1 %v11265_v57 }
 0xe9a   : > { %7729 = vmatprep.subr.bf16.mxu1 %v12129_v61 }
 0xe9b   : > { %7710 = vmatpush3.bf16.msra.mxu0 %v11270_v42 }
 0xe9c   : > { %7711 = vmatprep.subr.bf16.mxu0 %v12129_v61 }
 0xe9d   : > { %7730 = vmatpush3.bf16.msra.mxu1 %v11275_v62 }
 0xe9e   : > { %7731 = vmatprep.subr.bf16.mxu1 %v12129_v61 }
 0xe9f   : > { %7712 = vmatpush3.bf16.msra.mxu0 %v11280_v8 }
 0xea0   : > { %7713 = vmatprep.subr.bf16.mxu0 %v12129_v61 }
 0xea1   : > { %7732 = vmatpush3.bf16.msra.mxu1 %v11285_v7 }
 0xea2   : > { %7733 = vmatprep.subr.bf16.mxu1 %v12129_v61 }
 0xea3   : > { %7714 = vmatpush3.bf16.msra.mxu0 %v11290_v14 }
 0xea4   : > { %v4865_v11 = vpop.xlane.xlu0 %4864  ;;  %7715 = vmatprep.subr.bf16.mxu0 %v12129_v61 }
 0xea5   : > { %v4875_v12 = vsub.f32 %v11588_v29, %v4865_v11  ;;  %7734 = vmatpush3.bf16.msra.mxu1 %v11295_v63 }
 0xea6   : > { %v4868_v27 = vpop.xlane.xlu1 %4867  ;;  %7735 = vmatprep.subr.bf16.mxu1 %v12129_v61 }
 0xea7   : > { %v4889_v57 = vmul.f32 1.442695, %v4875_v12  ;;  %v4876_v42 = vsub.f32 %v11592_v53, %v4868_v27  ;;  %7716 = vmatpush3.bf16.msra.mxu0 %v11300_v1  ;;  %v5295_v12 = vld [vmem:[#allocation22 + $0x10] sm:$0xff]  ;;  %v5296_v27 = vld [vmem:[#allocation22 + $0x18] sm:$0xff] }
 0xea8   : > { %7717 = vmatprep.subr.bf16.mxu0 %v12129_v61 }
 0xea9   : > { %8510 = vpow2.f32 %v4889_v57  ;;  %v4891_v62 = vmul.f32 1.442695, %v4876_v42  ;;  %7736 = vmatpush3.bf16.msra.mxu1 %v11305_v16  ;;  %v7934_v57 = vpack.c.bf16 %v5296_v27, %v5295_v12  ;;  %v5297_v42 = vld [vmem:[#allocation22 + $0x20] sm:$0xff]  ;;  %v5286_v27 = vld [vmem:[#allocation20 + $0x48] sm:$0xff] }
 0xeaa   : > { %7737 = vmatprep.subr.bf16.mxu1 %v12129_v61 }
 0xeab   : > { %8512 = vpow2.f32 %v4891_v62  ;;  %7718 = vmatpush3.bf16.msra.mxu0 %v11310_v4  ;;  %v5298_v62 = vld [vmem:[#allocation22 + $0x28] sm:$0xff] }
 0xeac   : > { %7719 = vmatprep.subr.bf16.mxu0 %v12129_v61 }
 0xead   : > { %7738 = vmatpush3.bf16.msra.mxu1 %v11315_v32 }
 0xeae   : > { %7739 = vmatprep.subr.bf16.mxu1 %v12129_v61 }
 0xeaf   : > { %7720 = vmatpush3.bf16.msra.mxu0 %v11324_v39 }
 0xeb0   : > { %7745 = vmatprep.subr.bf16.mxu0 %v12129_v61 }
 0xeb1   : > { %7740 = vmatpush3.bf16.msra.mxu1 %v11331_v31 }
 0xeb2   : > { %7765 = vmatprep.subr.bf16.mxu1 %v12129_v61 }
 0xeb3   : > { %v11665_v8 = vpop.eup %8510 }
 0xeb4   : > { %v4911_v7 = vsel %vm3321_vm11, %v11665_v8, 0.0 }
 0xeb5   : > { %v11669_v14 = vpop.eup %8512  ;;  %4912 = vadd.xlane.f32.xlu0 %v4911_v7  ;;  %v5299_v7 = vld [vmem:[#allocation22 + $0x30] sm:$0xff] }
 0xeb6   : > { %v4914_v63 = vsel %vm3321_vm11, %v11669_v14, 0.0 }
 0xeb7   : > { %4915 = vadd.xlane.f32.xlu1 %v4914_v63 }
 0xec2   : > { %v4901_v1 = vpop.xlane.xlu0 %4900 }
 0xec3   : > { %8514 = vrcp.f32 %v4901_v1  ;;  %v5301_v1 = vld [vmem:[#allocation22 + $0x40] sm:$0xff] }
 0xec4   : > { %v4904_v16 = vpop.xlane.xlu1 %4903 }
 0xec5   : > { %8516 = vrcp.f32 %v4904_v16  ;;  %v5302_v16 = vld [vmem:[#allocation22 + $0x48] sm:$0xff] }
 0xecd   : > { %v8515_v4 = vpop.eup %8514 }
 0xece   : > { %v4927_v32 = vmul.f32 %v8515_v4, %v11607_v52  ;;  %v7943_v4 = vpack.c.bf16 %v5302_v16, %v5301_v1  ;;  %v5506_v1 = vld [vmem:[#allocation23 + $0x58] sm:$0xff] }
 0xecf   : > { %v8517_v39 = vpop.eup %8516 }
 0xed0   : > { %v4935_v31 = vpack.c.bf16 %v4927_v32, %v4927_v32  ;;  %v4928_v30 = vmul.f32 %v8517_v39, %v11611_v22  ;;  %v5303_v32 = vld [vmem:[#allocation22 + $0x50] sm:$0xff]  ;;  %v5304_v39 = vld [vmem:[#allocation22 + $0x58] sm:$0xff] }
 0xed2   : > { %7722 = vmatmul.mubr.bf16.vlgmr.msra.gmra.mrb[96].mxu0 %v4935_v31  ;;  %v4936_v49 = vpack.c.bf16 %v4928_v30, %v4928_v30  ;;  %v7946_v31 = vpack.c.bf16 %v5304_v39, %v5303_v32  ;;  %v5305_v30 = vld [vmem:[#allocation22 + $0x60] sm:$0xff]  ;;  %v5508_v39 = vld [vmem:[#allocation23 + $0x68] sm:$0xff] }
 0xed3   : > { %7746 = vmatpush3.bf16.msra.mxu0 %v10618_v34  ;;  %7761 = vmatprep.mubr.msk.bf16.mxu0 %vm9207_vm0, %v12129_v61  ;;  %v8592_v34 = vld [vmem:[%s9778_s13 + $0xc0] sm:$0xff]   ;;  %v5507_v32 = vld [vmem:[#allocation23 + $0x60] sm:$0xff] }
 0xed4   : > { %7742 = vmatmul.mubr.bf16.vlgmr.msra.gmra.mrb[92].mxu1 %v4936_v49  ;;  %7747 = vmatprep.subr.bf16.mxu0 %v12129_v61  ;;  %v5306_v49 = vld [vmem:[#allocation22 + $0x68] sm:$0xff] }
 0xed5   : > { %7766 = vmatpush3.bf16.msra.mxu1 %v10623_v37  ;;  %7781 = vmatprep.mubr.msk.bf16.mxu1 %vm9207_vm0, %v12129_v61  ;;  %v5272_v37 = vunpack.c.l.bf16 %v8592_v34 }
 0xed6   : > { %7767 = vmatprep.subr.bf16.mxu1 %v12129_v61 }
 0xed7   : > { %7748 = vmatpush3.bf16.msra.mxu0 %v11346_v54  ;;  %v8593_v54 = vld [vmem:[%s9778_s13 + $0x100] sm:$0xff]  }
 0xed8   : > { %7749 = vmatprep.subr.bf16.mxu0 %v12129_v61 }
 0xed9   : > { %7768 = vmatpush3.bf16.msra.mxu1 %v11351_v58  ;;  %v5273_v58 = vunpack.c.l.bf16 %v8593_v54 }
 0xeda   : > { %7769 = vmatprep.subr.bf16.mxu1 %v12129_v61 }
 0xedb   : > { %7750 = vmatpush3.bf16.msra.mxu0 %v11356_v55  ;;  %v8594_v55 = vld [vmem:[%s9778_s13 + $0x140] sm:$0xff]  }
 0xedc   : > { %7751 = vmatprep.subr.bf16.mxu0 %v12129_v61 }
 0xedd   : > { %7770 = vmatpush3.bf16.msra.mxu1 %v11361_v3  ;;  %v5274_v3 = vunpack.c.l.bf16 %v8594_v55 }
 0xede   : > { %7771 = vmatprep.subr.bf16.mxu1 %v12129_v61 }
 0xedf   : > { %7752 = vmatpush3.bf16.msra.mxu0 %v11366_v24  ;;  %v8595_v24 = vld [vmem:[%s9778_s13 + $0x180] sm:$0xff]   ;;  %v5325_v29 = vrot.slane %v5274_v3, 3 }
 0xee0   : > { %7753 = vmatprep.subr.bf16.mxu0 %v12129_v61 }
 0xee1   : > { %7772 = vmatpush3.bf16.msra.mxu1 %v11371_v18  ;;  %v5275_v18 = vunpack.c.l.bf16 %v8595_v24  ;;  %v7949_v24 = vpack.c.bf16 %v5306_v49, %v5305_v30  ;;  %v5509_v30 = vld [vmem:[#allocation23 + $0x70] sm:$0xff]  ;;  %v5510_v49 = vld [vmem:[#allocation23 + $0x78] sm:$0xff] }
 0xee2   : > { %7773 = vmatprep.subr.bf16.mxu1 %v12129_v61 }
 0xee3   : > { %7754 = vmatpush3.bf16.msra.mxu0 %v11376_v23  ;;  %v5321_v23 = vrot.slane %v5272_v37, 5  ;;  %v5327_v53 = vrot.slane %v5275_v18, 2  ;;  %v12177_v37 = vld [vmem:[#allocation50_spill] sm:$0xff] }
 0xee4   : > { %7755 = vmatprep.subr.bf16.mxu0 %v12129_v61  ;;  %v8596_v18 = vld [vmem:[%s9778_s13 + $0x1c0] sm:$0xff]   ;;  %s9029_s13 = sshll.u32 %s9212_s19, 4  ;;  %s9030_s13 = int_to_ptr.vmem [resolvable:$false] %s9029_s13 }
 0xee5   : > { %7774 = vmatpush3.bf16.msra.mxu1 %v11381_v25  ;;  %v5323_v25 = vrot.slane %v5273_v58, 4  ;;  %s9031_s0 = scalar_lea.vmem %s9030_s13, 256  ;;  %p9032_p8 = scmp.lt.s32.totalorder %s5693_s26, %s9030_s13 }
 0xee6   : > { %7775 = vmatprep.subr.bf16.mxu1 %v12129_v61  ;;  %p9033_p13 = scmp.lt.s32.totalorder %s9031_s0, %s9025_s20 }
 0xee7   : > { %7756 = vmatpush3.bf16.msra.mxu0 %v11386_v26  ;;  %v12167_v26 = vld [vmem:[#allocation49_spill] sm:$0xff] }
 0xee8   : > { %7757 = vmatprep.subr.bf16.mxu0 %v12129_v61  ;;  %v5322_v52 = vsel %vm2373_vm5, %v5321_v23, %v12167_v26  ;;  %v5276_v23 = vunpack.c.l.bf16 %v8596_v18  ;;  %p9034_p7 = por %p9033_p13, %p9032_p8 }
 0xee9   : > { %7776 = vmatpush3.bf16.msra.mxu1 %v11391_v15  ;;  %v5324_v15 = vsel %vm2376_vm6, %v5323_v25, %v5322_v52  ;;  %v12178_v25 = vld [vmem:[#allocation52_spill] sm:$0xff]  ;;  %v5307_v52 = vld [vmem:[#allocation22 + $0x70] sm:$0xff] }
 0xeea   : > { %7777 = vmatprep.subr.bf16.mxu1 %v12129_v61  ;;  %v5326_v22 = vsel %vm2379_vm7, %v5325_v29, %v5324_v15  ;;  %v5308_v15 = vld [vmem:[#allocation22 + $0x78] sm:$0xff]  ;;  %p9035_p12 = pnand %p9034_p7, %p9028_p9 }
 0xeeb   : > { %7758 = vmatpush3.bf16.msra.mxu0 %v11396_v46  ;;  %v11719_v46 = vsel %vm2382_vm8, %v5327_v53, %v5326_v22 }
 0xeec   : > { %7759 = vmatprep.subr.bf16.mxu0 %v12129_v61 }
 0xeed   : > { %7778 = vmatpush3.bf16.msra.mxu1 %v11401_v50 }
 0xeee   : > { %7779 = vmatprep.subr.bf16.mxu1 %v12129_v61 }
 0xeef   : > { %7760 = vmatpush3.bf16.msra.mxu0 %v11408_v36 }
 0xef0   : > { %7785 = vmatprep.subr.bf16.mxu0 %v12129_v61 }
 0xef1   : > { %7780 = vmatpush3.bf16.msra.mxu1 %v11413_v59  ;;  %v12170_v59 = vld [vmem:[#allocation48_spill] sm:$0xff] }
 0xef2   : > { %7805 = vmatprep.subr.bf16.mxu1 %v12129_v61 }
 0xf02   : > { %v4907_v50 = vpop.xlane.xlu0 %4906 }
 0xf03   : > { %8518 = vrcp.f32 %v4907_v50 }
 0xf04   : > { %v4910_v21 = vpop.xlane.xlu1 %4909 }
 0xf05   : > { %8520 = vrcp.f32 %v4910_v21 }
 0xf0d   : > { %v8519_v51 = vpop.eup %8518 }
 0xf0e   : > { %v4929_v36 = vmul.f32 %v8519_v51, %v11617_v47  ;;  %v12174_v47 = vld [vmem:[#allocation69_spill] sm:$0xff]  ;;  %v7952_v51 = vpack.c.bf16 %v5308_v15, %v5307_v52 }
 0xf0f   : > { %v8521_v2 = vpop.eup %8520 }
 0xf10   : > { %v4937_v44 = vpack.c.bf16 %v4929_v36, %v4929_v36  ;;  %v4930_v60 = vmul.f32 %v8521_v2, %v11621_v6  ;;  %v12176_v6 = vld [vmem:[#allocation71_spill] sm:$0xff]  ;;  %v5329_v36 = vrot.slane %v5276_v23, 1 }
 0xf11   : > { %v5495_v2 = vld [vmem:[#allocation23] sm:$0xff] }
 0xf12   : > { %7762 = vmatmul.mubr.bf16.vlgmr.msra.gmra.mrb[100].mxu0 %v4937_v44  ;;  %v4938_v0 = vpack.c.bf16 %v4930_v60, %v4930_v60  ;;  %v5496_v60 = vld [vmem:[#allocation23 + $0x8] sm:$0xff] }
 0xf13   : > { %7786 = vmatpush3.bf16.msra.mxu0 %v10706_v9  ;;  %7801 = vmatprep.mubr.msk.bf16.mxu0 %vm9207_vm0, %v12129_v61  ;;  %v12168_v9 = vld [vmem:[#allocation59_spill] sm:$0xff] }
 0xf14   : > { %7782 = vmatmul.mubr.bf16.vlgmr.msra.gmra.mrb[96].mxu1 %v4938_v0  ;;  %7787 = vmatprep.subr.bf16.mxu0 %v12129_v61  ;;  %v5277_v0 = vld [vmem:[#allocation20] sm:$0xff] }
 0xf15   : > { %7806 = vmatpush3.bf16.msra.mxu1 %v10711_v19  ;;  %7821 = vmatprep.mubr.msk.bf16.mxu1 %vm9207_vm0, %v12129_v61  ;;  %v12169_v19 = vld [vmem:[#allocation60_spill] sm:$0xff] }
 0xf16   : > { %7807 = vmatprep.subr.bf16.mxu1 %v12129_v61 }
 0xf17   : > { %7788 = vmatpush3.bf16.msra.mxu0 %v11428_v41  ;;  %v12171_v41 = vld [vmem:[#allocation51_spill] sm:$0xff] }
 0xf18   : > { %7789 = vmatprep.subr.bf16.mxu0 %v12129_v61 }
 0xf19   : > { %7808 = vmatpush3.bf16.msra.mxu1 %v11433_v13  ;;  %v12172_v13 = vld [vmem:[#allocation46_spill] sm:$0xff] }
 0xf1a   : > { %7809 = vmatprep.subr.bf16.mxu1 %v12129_v61 }
 0xf1b   : > { %7790 = vmatpush3.bf16.msra.mxu0 %v11438_v48  ;;  %v12173_v48 = vld [vmem:[#allocation68_spill] sm:$0xff] }
 0xf1c   : > { %7791 = vmatprep.subr.bf16.mxu0 %v12129_v61 }
 0xf1d   : > { %7810 = vmatpush3.bf16.msra.mxu1 %v12168_v9  ;;  %v5278_v9 = vld [vmem:[#allocation20 + $0x8] sm:$0xff] }
 0xf1e   : > { %7811 = vmatprep.subr.bf16.mxu1 %v12129_v61 }
 0xf1f   : > { %7792 = vmatpush3.bf16.msra.mxu0 %v12169_v19  ;;  %v7955_v19 = vpack.c.bf16 %v5278_v9, %v5277_v0 }
 0xf20   : > { %7793 = vmatprep.subr.bf16.mxu0 %v12129_v61 }
 0xf21   : > { %7812 = vmatpush3.bf16.msra.mxu1 %v12170_v59  ;;  %v5279_v59 = vld [vmem:[#allocation20 + $0x10] sm:$0xff] }
 0xf22   : > { %7813 = vmatprep.subr.bf16.mxu1 %v12129_v61 }
 0xf23   : > { %7794 = vmatpush3.bf16.msra.mxu0 %v12171_v41  ;;  %v5280_v41 = vld [vmem:[#allocation20 + $0x18] sm:$0xff] }
 0xf24   : > { %7795 = vmatprep.subr.bf16.mxu0 %v12129_v61 }
 0xf25   : > { %7814 = vmatpush3.bf16.msra.mxu1 %v12172_v13  ;;  %v5330_v13 = vsel %vm2385_vm9, %v5329_v36, %v11719_v46  ;;  %v5499_v46 = vld [vmem:[#allocation23 + $0x20] sm:$0xff] }
 0xf26   : > { %7815 = vmatprep.subr.bf16.mxu1 %v12129_v61 }
 0xf27   : > { %7796 = vmatpush3.bf16.msra.mxu0 %v12173_v48  ;;  %v7979_v48 = vpack.c.bf16 %v5496_v60, %v5495_v2 }
 0xf28   : > { %7797 = vmatprep.subr.bf16.mxu0 %v12129_v61 }
 0xf29   : > { %7816 = vmatpush3.bf16.msra.mxu1 %v12174_v47  ;;  %v5497_v47 = vld [vmem:[#allocation23 + $0x10] sm:$0xff] }
 0xf2a   : > { %7817 = vmatprep.subr.bf16.mxu1 %v12129_v61 }
 0xf2b   : > { %7798 = vmatpush3.bf16.msra.mxu0 %v12175_v35  ;;  %v5498_v35 = vld [vmem:[#allocation23 + $0x18] sm:$0xff] }
 0xf2c   : > { %7799 = vmatprep.subr.bf16.mxu0 %v12129_v61  ;;  %v7982_v10 = vpack.c.bf16 %v5498_v35, %v5497_v47 }
 0xf2d   : > { %7818 = vmatpush3.bf16.msra.mxu1 %v12176_v6  ;;  %v7958_v6 = vpack.c.bf16 %v5280_v41, %v5279_v59  ;;  %v12182_v59 = vld [vmem:[#allocation55_spill] sm:$0xff] }
 0xf2e   : > { %7819 = vmatprep.subr.bf16.mxu1 %v12129_v61 }
 0xf2f   : > { %7800 = vmatpush3.bf16.msra.mxu0 %v11490_v17 }
 0xf30   : > { %7930 = vmatprep.subr.bf16.mxu0 %v9211_v28 }
 0xf31   : > { %7820 = vmatpush3.bf16.msra.mxu1 %v11495_v5 }
 0xf32   : > { %7954 = vmatprep.subr.bf16.mxu1 %v9211_v28 }
 0xf42   : > { %v4913_v33 = vpop.xlane.xlu0 %4912 }
 0xf43   : > { %8522 = vrcp.f32 %v4913_v33  ;;  %v5281_v33 = vld [vmem:[#allocation20 + $0x20] sm:$0xff] }
 0xf44   : > { %v4916_v43 = vpop.xlane.xlu1 %4915 }
 0xf45   : > { %8524 = vrcp.f32 %v4916_v43  ;;  %v5282_v43 = vld [vmem:[#allocation20 + $0x28] sm:$0xff] }
 0xf4d   : > { %v8523_v45 = vpop.eup %8522 }
 0xf4e   : > { %v4931_v20 = vmul.f32 %v8523_v45, %v11665_v8  ;;  %v7937_v8 = vpack.c.bf16 %v5298_v62, %v5297_v42  ;;  %v7961_v45 = vpack.c.bf16 %v5282_v43, %v5281_v33  ;;  %v5504_v42 = vld [vmem:[#allocation23 + $0x48] sm:$0xff] }
 0xf4f   : > { %v8525_v40 = vpop.eup %8524 }
 0xf50   : > { %v4939_v11 = vpack.c.bf16 %v4931_v20, %v4931_v20  ;;  %v4932_v17 = vmul.f32 %v8525_v40, %v11669_v14  ;;  %v5300_v14 = vld [vmem:[#allocation22 + $0x38] sm:$0xff]  ;;  %v5283_v20 = vld [vmem:[#allocation20 + $0x30] sm:$0xff] }
 0xf51   : > { %v7940_v63 = vpack.c.bf16 %v5300_v14, %v5299_v7  ;;  %v5284_v40 = vld [vmem:[#allocation20 + $0x38] sm:$0xff] }
 0xf52   : > { %7802 = vmatmul.mubr.bf16.vlgmr.msra.gmra.mrb[104].mxu0 %v4939_v11  ;;  %v4940_v5 = vpack.c.bf16 %v4932_v17, %v4932_v17  ;;  %v5501_v11 = vld [vmem:[#allocation23 + $0x30] sm:$0xff]  ;;  %v5502_v17 = vld [vmem:[#allocation23 + $0x38] sm:$0xff]  ;;  %v7964_v12 = vpack.c.bf16 %v5284_v40, %v5283_v20 }
 0xf53   : > { %7932 = vmatpush3.bf16.msra.mxu0 %v7931_v56  ;;  %7857 = vmatprep.mubr.msk.f32.mxu0 %vm9207_vm0, %v12129_v61  ;;  %v7985_v56 = vpack.c.bf16 %v5500_v38, %v5499_v46  ;;  %v5288_v7 = vld [vmem:[#allocation20 + $0x58] sm:$0xff]  ;;  %v12184_v40 = vld [vmem:[#allocation57_spill] sm:$0xff] }
 0xf54   : > { %7822 = vmatmul.mubr.bf16.vlgmr.msra.gmra.mrb[100].mxu1 %v4940_v5  ;;  %7933 = vmatprep.subr.bf16.mxu0 %v9211_v28  ;;  %v7988_v5 = vpack.c.bf16 %v5502_v17, %v5501_v11 }
 0xf55   : > { %7892 = vmatprep.mubr.msk.f32.mxu1 %vm9207_vm0, %v12129_v61  ;;  %7956 = vmatpush3.bf16.msra.mxu1 %v7955_v19 }
 0xf56   : > { %7957 = vmatprep.subr.bf16.mxu1 %v9211_v28 }
 0xf57   : > { %7935 = vmatpush3.bf16.msra.mxu0 %v7934_v57  ;;  %v5503_v57 = vld [vmem:[#allocation23 + $0x40] sm:$0xff] }
 0xf58   : > { %7936 = vmatprep.subr.bf16.mxu0 %v9211_v28  ;;  %v7991_v14 = vpack.c.bf16 %v5504_v42, %v5503_v57 }
 0xf59   : > { %7959 = vmatpush3.bf16.msra.mxu1 %v7958_v6 }
 0xf5a   : > { %7960 = vmatprep.subr.bf16.mxu1 %v9211_v28 }
 0xf5b   : > { %7938 = vmatpush3.bf16.msra.mxu0 %v7937_v8  ;;  %v5287_v8 = vld [vmem:[#allocation20 + $0x50] sm:$0xff] }
 0xf5c   : > { %7939 = vmatprep.subr.bf16.mxu0 %v9211_v28  ;;  %v7970_v16 = vpack.c.bf16 %v5288_v7, %v5287_v8 }
 0xf5d   : > { %7962 = vmatpush3.bf16.msra.mxu1 %v7961_v45 }
 0xf5e   : > { %7963 = vmatprep.subr.bf16.mxu1 %v9211_v28 }
 0xf5f   : > { %7941 = vmatpush3.bf16.msra.mxu0 %v7940_v63  ;;  %v5505_v63 = vld [vmem:[#allocation23 + $0x50] sm:$0xff] }
 0xf60   : > { %7942 = vmatprep.subr.bf16.mxu0 %v9211_v28 }
 0xf61   : > { %7965 = vmatpush3.bf16.msra.mxu1 %v7964_v12 }
 0xf62   : > { %7966 = vmatprep.subr.bf16.mxu1 %v9211_v28 }
 0xf63   : > { %7944 = vmatpush3.bf16.msra.mxu0 %v7943_v4  ;;  %v7994_v4 = vpack.c.bf16 %v5506_v1, %v5505_v63 }
 0xf64   : > { %7945 = vmatprep.subr.bf16.mxu0 %v9211_v28 }
 0xf65   : > { %v4975_v34 = vpop.f32.mrb[92].mxu0 }
 0xf66   : > { %v5261_v54 = vadd.f32 %v4975_v34, %v12177_v37  ;;  %v7683_v58 = vpop.f32.mrb[93].mxu0  ;;  %v8000_v34 = vpack.c.bf16 %v5510_v49, %v5509_v30  ;;  %v12179_v37 = vld [vmem:[#allocation47_spill] sm:$0xff] }
 0xf67   : > { %7947 = vmatpush3.bf16.msra.mxu0 %v7946_v31  ;;  %v4978_v55 = vpop.f32.mrb[94].mxu0  ;;  %v5015_v3 = vpop.f32.mrb[88].mxu1  ;;  %v7997_v31 = vpack.c.bf16 %v5508_v39, %v5507_v32  ;;  %v5290_v58 = vld [vmem:[#allocation20 + $0x68] sm:$0xff] }
 0xf68   : > { %v5262_v29 = vadd.f32 %v5015_v3, %v12178_v25  ;;  %v7684_v53 = vpop.f32.mrb[95].mxu0  ;;  %v7703_v26 = vpop.f32.mrb[89].mxu1  ;;  %7948 = vmatprep.subr.bf16.mxu0 %v9211_v28 }
 0xf69   : > { %v5018_v22 = vpop.f32.mrb[90].mxu1  ;;  %v12181_v26 = vld [vmem:[#allocation54_spill] sm:$0xff] }
 0xf6a   : > { %v5410_v50 = vrot.slane %v5262_v29, 7  ;;  %v7704_v21 = vpop.f32.mrb[91].mxu1 }
 0xf6b   : > { %7950 = vmatpush3.bf16.msra.mxu0 %v7949_v24  ;;  %v12180_v24 = vld [vmem:[#allocation53_spill] sm:$0xff]  ;;  %v5292_v21 = vld [vmem:[#allocation20 + $0x78] sm:$0xff] }
 0xf6c   : > { %v11776_v44 = vsel %vm2367_vm3, %v5410_v50, %v5261_v54  ;;  %7951 = vmatprep.subr.bf16.mxu0 %v9211_v28  ;;  %v5289_v54 = vld [vmem:[#allocation20 + $0x60] sm:$0xff]  ;;  %v5291_v50 = vld [vmem:[#allocation20 + $0x70] sm:$0xff] }
 0xf6d   : > { %v7973_v3 = vpack.c.bf16 %v5290_v58, %v5289_v54  ;;  %v7976_v36 = vpack.c.bf16 %v5292_v21, %v5291_v50 }
 0xf6f   : > { %7953 = vmatpush3.bf16.msra.mxu0 %v7952_v51 }
 0xf70   : > { %7978 = vmatprep.subr.bf16.mxu0 %v9211_v28 }
 0xf72   : > { %7858 = vmatmul.mubr.f32.vlgmr.msra.gmra.mrb[108].mxu0 %v5330_v13 }
 0xf73   : > { %7980 = vmatpush3.bf16.msra.mxu0 %v7979_v48  ;;  %7927 = vmatprep.mubr.msk.f32.mxu0 %vm9207_vm0, %v12129_v61  ;;  %v5285_v61 = vld [vmem:[#allocation20 + $0x40] sm:$0xff] }
 0xf74   : > { %7981 = vmatprep.subr.bf16.mxu0 %v9211_v28  ;;  %v7967_v62 = vpack.c.bf16 %v5286_v27, %v5285_v61  ;;  %v12185_v27 = vld [vmem:[#allocation58_spill] sm:$0xff] }
 0xf76   : > { %7968 = vmatpush3.bf16.msra.mxu1 %v7967_v62 }
 0xf77   : > { %7983 = vmatpush3.bf16.msra.mxu0 %v7982_v10  ;;  %7969 = vmatprep.subr.bf16.mxu1 %v9211_v28 }
 0xf78   : > { %7984 = vmatprep.subr.bf16.mxu0 %v9211_v28 }
 0xf7a   : > { %7971 = vmatpush3.bf16.msra.mxu1 %v7970_v16 }
 0xf7b   : > { %7986 = vmatpush3.bf16.msra.mxu0 %v7985_v56  ;;  %7972 = vmatprep.subr.bf16.mxu1 %v9211_v28 }
 0xf7c   : > { %7987 = vmatprep.subr.bf16.mxu0 %v9211_v28 }
 0xf7e   : > { %7974 = vmatpush3.bf16.msra.mxu1 %v7973_v3 }
 0xf7f   : > { %7989 = vmatpush3.bf16.msra.mxu0 %v7988_v5  ;;  %7975 = vmatprep.subr.bf16.mxu1 %v9211_v28 }
 0xf80   : > { %7990 = vmatprep.subr.bf16.mxu0 %v9211_v28 }
 0xf82   : > { %7977 = vmatpush3.bf16.msra.mxu1 %v7976_v36 }
 0xf83   : > { %7992 = vmatpush3.bf16.msra.mxu0 %v7991_v14 }
 0xf84   : > { %7993 = vmatprep.subr.bf16.mxu0 %v9211_v28 }
 0xf87   : > { %7995 = vmatpush3.bf16.msra.mxu0 %v7994_v4 }
 0xf88   : > { %7996 = vmatprep.subr.bf16.mxu0 %v9211_v28 }
 0xf8b   : > { %7998 = vmatpush3.bf16.msra.mxu0 %v7997_v31 }
 0xf8c   : > { %7999 = vmatprep.subr.bf16.mxu0 %v9211_v28  ;;  %v12183_v28 = vld [vmem:[#allocation56_spill] sm:$0xff] }
 0xf8f   : > { %8001 = vmatpush3.bf16.msra.mxu0 %v8000_v34 }
 0xf92   : > { %7928 = vmatmul.mubr.f32.vlgmr.msra.gmra.mrb[110].mxu0 %v12179_v37 }
 0xfa5   : > { %v5055_v55 = vpop.f32.mrb[96].mxu0 }
 0xfa6   : > { %v5263_v18 = vadd.f32 %v5055_v55, %v12180_v24  ;;  %v7723_v23 = vpop.f32.mrb[97].mxu0 }
 0xfa7   : > { %v5058_v25 = vpop.f32.mrb[98].mxu0  ;;  %v5095_v29 = vpop.f32.mrb[92].mxu1 }
 0xfa8   : > { %v5412_v53 = vrot.slane %v5263_v18, 6  ;;  %v5264_v52 = vadd.f32 %v5095_v29, %v12181_v26  ;;  %v7724_v15 = vpop.f32.mrb[99].mxu0  ;;  %v7743_v22 = vpop.f32.mrb[93].mxu1 }
 0xfa9   : > { %v5098_v51 = vpop.f32.mrb[94].mxu1 }
 0xfaa   : > { %v5413_v2 = vsel %vm2370_vm4, %v5412_v53, %v11776_v44  ;;  %v5414_v60 = vrot.slane %v5264_v52, 5  ;;  %v7744_v0 = vpop.f32.mrb[95].mxu1 }
 0xfac   : > { %v5415_v9 = vsel %vm2373_vm5, %v5414_v60, %v5413_v2 }
 0xfe5   : > { %v5135_v19 = vpop.f32.mrb[100].mxu0 }
 0xfe6   : > { %v5265_v41 = vadd.f32 %v5135_v19, %v12182_v59  ;;  %v7763_v13 = vpop.f32.mrb[101].mxu0 }
 0xfe7   : > { %v5138_v48 = vpop.f32.mrb[102].mxu0  ;;  %v5175_v47 = vpop.f32.mrb[96].mxu1 }
 0xfe8   : > { %v5416_v35 = vrot.slane %v5265_v41, 4  ;;  %v5266_v6 = vadd.f32 %v5175_v47, %v12183_v28  ;;  %v7764_v33 = vpop.f32.mrb[103].mxu0  ;;  %v7783_v43 = vpop.f32.mrb[97].mxu1 }
 0xfe9   : > { %v5178_v10 = vpop.f32.mrb[98].mxu1 }
 0xfea   : > { %v5417_v46 = vsel %vm2376_vm6, %v5416_v35, %v5415_v9  ;;  %v5418_v44 = vrot.slane %v5266_v6, 3  ;;  %v7784_v38 = vpop.f32.mrb[99].mxu1 }
 0xfec   : > { %v5419_v45 = vsel %vm2379_vm7, %v5418_v44, %v5417_v46 }
0x1025   : > { %v5215_v20 = vpop.f32.mrb[104].mxu0 }
0x1026   : > { %v5267_v56 = vadd.f32 %v5215_v20, %v12184_v40  ;;  %v7803_v11 = vpop.f32.mrb[105].mxu0 }
0x1027   : > { %v5218_v17 = vpop.f32.mrb[106].mxu0  ;;  %v5255_v12 = vpop.f32.mrb[100].mxu1 }
0x1028   : > { %v5420_v61 = vrot.slane %v5267_v56, 2  ;;  %v5268_v5 = vadd.f32 %v5255_v12, %v12185_v27  ;;  %v7804_v57 = vpop.f32.mrb[107].mxu0  ;;  %v7823_v42 = vpop.f32.mrb[101].mxu1 }
0x1029   : > { %v5258_v62 = vpop.f32.mrb[102].mxu1 }
0x102a   : > { %v5421_v8 = vsel %vm2382_vm8, %v5420_v61, %v5419_v45  ;;  %v5422_v7 = vrot.slane %v5268_v5, 1  ;;  %v7824_v14 = vpop.f32.mrb[103].mxu1 }
0x102c   : > { %v5423_v63 = vsel %vm2385_vm9, %v5422_v7, %v5421_v8 }
0x102d   : > { %7893 = vmatmul.mubr.f32.vlgmr.msra.gmra.mrb[104].mxu1 %v5423_v63 }
0x1045   : > { %v11812_v1 = vpop.f32.mrb[108].mxu0 }
0x1046   : > { %v7859_v16 = vpop.f32.mrb[109].mxu0 }
0x1065   : > { %v11814_v4 = vpop.f32.mrb[110].mxu0 }
0x1066   : > { %v7929_v32 = vpop.f32.mrb[111].mxu0 }
0x1067   : > { %9038 = shalt.err (!%p9035_p12)
}
0x1068   : > { %s9039_s3 = scalar_lea.hbm %s11823_s16, 128  ;;  %s9043_s11 = scalar_lea.hbm %s12186_s28, 256 }
0x1069   : > { %p9040_p4 = scmp.ne.s32.totalorder %s11823_s16, %s9039_s3  ;;  %p9044_p2 = scmp.lt.u32.totalorder %s11823_s16, %s12186_s28 }
0x106a   : > { %p9045_p3 = scmp.lt.u32.totalorder %s9043_s11, %s9039_s3  ;;  %p9047_p0 = scmp.lt.u32.totalorder %s9039_s3, %s11823_s16 }
0x106b   : > { %p9041_p10 = pnand %p9040_p4, %p12187_p6 }
0x106c   : > { %p9046_p5 = por %p9045_p3, %p9044_p2 }
0x106d   : > { %p9042_p1 = pneg %p9041_p10 }
0x106e   : > { %p9048_p11 = por %p9047_p0, %p9046_p5 }
0x1070   : > { %p9049_p9 = pnand %p9048_p11, %p9042_p1 }
0x1072   : > { %9052 = shalt.err (!%p9049_p9)
}
0x1073   : > { %8063 = dma.vmem_to_hbm [thread:$0]  (%p12187_p6), %s5693_s26, 128, %s11823_s16, %s5661_s8  }
0x1074   : > { %s12188_s20 = sld [smem:[#allocation85_spill]]  ;;  %s5679_s13 = sshll.u32 %s834_s15, 4  ;;  %s5680_s13 = int_to_ptr.vmem [resolvable:$true] %s5679_s13 }
0x1075   : > { %s5656_s0 = scalar_lea.sflag [#allocation4], %s9774_s30  ;;  %s9053_s3 = scalar_lea.vmem %s5680_s13, 128 }
0x1076   : > { %p9054_p8 = scmp.ne.s32.totalorder %s5680_s13, %s9053_s3  ;;  %s9213_s1 = smov [#allocation26]  }
0x1077   : > { %s9057_s4 = sshll.u32 %s9213_s1, 4  ;;  %s9058_s4 = int_to_ptr.vmem [resolvable:$false] %s9057_s4 }
0x1078   : > { %p9055_p13 = pnand %p9054_p8, %p12187_p6  ;;  %s9059_s11 = scalar_lea.vmem %s9058_s4, 256 }
0x1079   : > { %p9060_p12 = scmp.lt.s32.totalorder %s5680_s13, %s9058_s4  ;;  %p9061_p4 = scmp.lt.s32.totalorder %s9059_s11, %s9053_s3 }
0x107a   : > { %s11851_s19 = scalar_lea.hbm %s12188_s20, %s11817_s18  ;;  %p9056_p7 = pneg %p9055_p13 }
0x107b   : > { %p9062_p10 = por %p9061_p4, %p9060_p12 }
0x107d   : > { %p9063_p1 = pnand %p9062_p10, %p9056_p7 }
0x107f   : > { %9066 = shalt.err (!%p9063_p1)
}
0x1080   : > { %s9067_s30 = scalar_lea.hbm %s11851_s19, 128  ;;  %s9071_s26 = scalar_lea.hbm %s12188_s20, 256 }
0x1081   : > { %p9068_p2 = scmp.ne.s32.totalorder %s11851_s19, %s9067_s30  ;;  %p9072_p0 = scmp.lt.u32.totalorder %s11851_s19, %s12188_s20 }
0x1082   : > { %p9073_p11 = scmp.lt.u32.totalorder %s9071_s26, %s9067_s30  ;;  %p9075_p8 = scmp.lt.u32.totalorder %s9067_s30, %s11851_s19 }
0x1083   : > { %p9069_p3 = pnand %p9068_p2, %p12187_p6 }
0x1084   : > { %p9074_p9 = por %p9073_p11, %p9072_p0 }
0x1085   : > { %p9070_p5 = pneg %p9069_p3 }
0x1086   : > { %p9076_p13 = por %p9075_p8, %p9074_p9 }
0x1088   : > { %p9077_p7 = pnand %p9076_p13, %p9070_p5 }
0x108a   : > { %9080 = shalt.err (!%p9077_p7)
}
0x108b   : > { %8062 = dma.vmem_to_hbm [thread:$0]  (%p12187_p6), %s5680_s13, 128, %s11851_s19, %s5656_s0   ;;  %v6253_v49 = vld [vmem:[#allocation25] ss:$0 sm:$0xff]  ;;  %vm5653_vm12 = vcmask 15360  }
0x108c   : > { %s848_s2 = scalar_lea.vmem [#allocation29], %s9795_s17  ;;  %s12189_s4 = sld [smem:[#allocation87_spill]] }
0x108d   : > { %s5705_s14 = sshll.u32 %s848_s2, 4  ;;  %s9214_s19 = smov [#allocation29]   ;;  %s5706_s14 = int_to_ptr.vmem [resolvable:$true] %s5705_s14 }
0x108e   : > { %s9081_s30 = scalar_lea.vmem %s5706_s14, 128  ;;  %s9085_s13 = sshll.u32 %s9214_s19, 4  ;;  %s9086_s13 = int_to_ptr.vmem [resolvable:$false] %s9085_s13 }
0x108f   : > { %p9082_p12 = scmp.ne.s32.totalorder %s5706_s14, %s9081_s30  ;;  %s9087_s17 = scalar_lea.vmem %s9086_s13, 256 }
0x1090   : > { %p9088_p1 = scmp.lt.s32.totalorder %s5706_s14, %s9086_s13  ;;  %p9089_p2 = scmp.lt.s32.totalorder %s9087_s17, %s9081_s30 }
0x1091   : > { %p9083_p4 = pnand %p9082_p12, %p12187_p6 }
0x1092   : > { %s11880_s11 = scalar_lea.hbm %s12189_s4, %s11817_s18  ;;  %p9090_p3 = por %p9089_p2, %p9088_p1 }
0x1093   : > { %p9084_p10 = pneg %p9083_p4 }
0x1095   : > { %p9091_p5 = pnand %p9090_p3, %p9084_p10 }
0x1100   : > { %v5491_v39 = vpop.f32.mrb[104].mxu1 }
0x1101   : > { %v5492_v31 = vadd.f32 %v5491_v39, %v11812_v1  ;;  %v7894_v30 = vpop.f32.mrb[105].mxu1 }
0x1103   : > { %v5596_v34 = vadd.f32 %v11814_v4, %v5492_v31 }
0x1105   : > { %v5604_v37 = vadd.f32 %v6253_v49, %v5596_v34 }
0x1107   : > { %5654 = vst.msk [vmem:[%s848_s2] sm:$0xff] %vm5653_vm12, %v5604_v37 }
0x1108   : > { %9094 = shalt.err (!%p9091_p5)
}
0x1109   : > { %s9095_s18 = scalar_lea.hbm %s11880_s11, 128  ;;  %s9099_s16 = scalar_lea.hbm %s12189_s4, 256 }
0x110a   : > { %p9096_p0 = scmp.ne.s32.totalorder %s11880_s11, %s9095_s18  ;;  %p9100_p8 = scmp.lt.u32.totalorder %s11880_s11, %s12189_s4 }
0x110b   : > { %p9101_p13 = scmp.lt.u32.totalorder %s9099_s16, %s9095_s18  ;;  %p9103_p12 = scmp.lt.u32.totalorder %s9095_s18, %s11880_s11 }
0x110c   : > { %p9097_p11 = pnand %p9096_p0, %p12187_p6 }
0x110d   : > { %p9102_p7 = por %p9101_p13, %p9100_p8 }
0x110e   : > { %p9098_p9 = pneg %p9097_p11 }
0x110f   : > { %p9104_p4 = por %p9103_p12, %p9102_p7 }
0x1111   : > { %p9105_p10 = pnand %p9104_p4, %p9098_p9 }
0x1113   : > { %9108 = shalt.err (!%p9105_p10)
}
0x1114   : > { %8064 = dma.vmem_to_hbm [thread:$0]  (%p12187_p6), %s5706_s14, 128, %s11880_s11, %s5661_s8  }
0x1115 PF: > { %s12190_s23 = sld [smem:[#allocation45_spill]]  ;;  %s5717_s2 = sand.u32 1, %s9171_s24  }
0x1116   : > { %p12192_p2 = scmp.ge.s32.totalorder %s9183_s27, 2  ;;  %s5718_s3 = scalar_lea.sflag [#allocation4], %s5717_s2 }
0x111b   : > { %p12191_p1 = scmp.ne.s32.totalorder %s12190_s23, 0 }
0x111d   : > { %p8116_p3 = pnand %p12192_p2, %p12191_p1 }
0x111f   : > { %9162 = dma.done.wait (!%p8116_p3), %s5718_s3, 128  }
0x1120   : > { %9164 = vsyncadd (!%p8116_p3), %s5718_s3, 4294967168  ;;  %s12193_s1 = sadd.s32 4294967294, %s9183_s27  }
0x1121   : > { %s5726_s30 = sand.u32 1, %s12193_s1  }
0x1122   : > { %s5727_s19 = scalar_lea.sflag [#allocation28], %s5726_s30 }
0x1123   : > { %9166 = dma.done.wait (!%p8116_p3), %s5727_s19, 256  }
0x1124   : > { %9168 = vsyncadd (!%p8116_p3), %s5727_s19, 4294967040  ;;  %s12194_s27 = sld [smem:[#allocation43_spill]]  ;;  %s12195_s29 = sld [smem:[#allocation41_spill]] }
0x1125   : > { %s12196_s26 = sld [smem:[#allocation44_spill]]  ;;  %s12197_s24 = smov %s9175_s25 }
0x112a   : > { %p45_p6 = scmp.ge.s32.totalorder %s12194_s27, 4   ;;  %s12198_s25 = smov %s12195_s29 }
0x112c   :  { %47 = sbr.rel (!%p45_p6) target bundleno = 33 (0x21), region = 238 }
0x1133   :  { %5741 = vsyncpa [#allocation3], 1 }
0x1134   :  { %5743 = vsyncpa [#allocation3 + $0x1], 1 }
0x1135   :  { %5744 = vsyncpa [#allocation6], 1 }
0x1136   :  { %5746 = vsyncpa [#allocation6 + $0x1], 1 }
0x1137   :  { %5747 = vsyncpa [#allocation9], 1 }
0x1138   :  { %5749 = vsyncpa [#allocation9 + $0x1], 1 }
0x1139   :  { %5750 = vsyncpa [#allocation12], 1 }
0x113a   :  { %5751 = vsyncpa [#allocation15], 1 }
0x113b   :  { %5752 = vsyncpa [#allocation18], 1 }
0x113c   :  { %5753 = vsyncpa [#allocation21], 1 }
0x113d   :  { %5754 = vsyncpa [#allocation24], 1 }
0x113e   :  { %5755 = vsyncpa [#allocation4], 1 }
0x113f   :  { %5757 = vsyncpa [#allocation4 + $0x1], 1 }
0x1140   :  { %5758 = vsyncpa [#allocation28], 1 }
0x1141   :  { %5760 = vsyncpa [#allocation28 + $0x1], 1 }

</bundles_post_ra>
